<compile_context>
chip_gen: v7x
topology: tpu7x:2x2x1
jax: 0.10.0
libtpu: 0.0.40
codegen_flags: <defaults>
</compile_context>

<pallas_src>
import functools

import jax
import jax.numpy as jnp
from jax import lax
from jax.experimental import pallas as pl
from jax.experimental.pallas import tpu as pltpu


def _round_up(x, m):
    return (x + m - 1) // m * m


# ---------------------------------------------------------------------------
# Kernel 1: embedding row gather + mean over the context axis.
# ---------------------------------------------------------------------------
def gather_mean_kernel(idx_ref,    # SMEM scalar prefetch: (Bp*C,) int32 indices
                       emb_hbm,    # HBM (pl.ANY): (V, Dp) f32 embedding table
                       avg_ref,    # VMEM out: (Bp, Dp) f32 mean embeddings
                       gbuf,       # VMEM scratch: (2, Bp, Dp) f32 double buffer
                       gsem,       # DMA sems: (2, Bp)
                       *, batch, context):
    pending = [None, None]

    def issue_slab(c, slot):
        cps = []
        for b in range(batch):
            cp = pltpu.make_async_copy(
                emb_hbm.at[pl.ds(idx_ref[b * context + c], 1)],  # (1, Dp) row
                gbuf.at[slot, pl.ds(b, 1)],                      # (1, Dp) slot
                gsem.at[slot, b])
            cp.start()
            cps.append(cp)
        pending[slot] = cps

    # Prime both buffer slots, then wait/accumulate/refill slab by slab so the
    # latency of the tiny row DMAs overlaps with the VPU accumulation.
    issue_slab(0, 0)
    if context > 1:
        issue_slab(1, 1)

    acc = None
    for c in range(context):
        slot = c & 1
        for cp in pending[slot]:
            cp.wait()
        slab = gbuf[slot]                       # (Bp, Dp) f32
        acc = slab if acc is None else acc + slab
        if c + 2 < context:
            issue_slab(c + 2, slot)             # refill the consumed slot

    avg_ref[...] = acc * (1.0 / context)


# ---------------------------------------------------------------------------
# Kernel 2: output projection  logits = avg @ W.T + b  (vocab axis tiled).
# ---------------------------------------------------------------------------
def projection_kernel(avg_ref,    # VMEM resident: (Bp, Dp) f32 mean embeddings
                      w_ref,      # VMEM tile:     (tn, Dp) bf16 W tile
                      b_ref,      # VMEM resident: (1, Vp) f32 bias
                      out_ref,    # VMEM tile:     (Bp, tn) f32 logits tile
                      *, tn):
    j = pl.program_id(0)
    a = avg_ref[...].astype(w_ref.dtype)        # tiny (Bp, Dp) cast to bf16
    logits = lax.dot_general(                   # bf16 x bf16 MXU, f32 accumulate
        a, w_ref[...],
        dimension_numbers=(((1,), (1,)), ((), ())),
        preferred_element_type=jnp.float32)     # (Bp, tn)
    col0 = pl.multiple_of(j * tn, 128)
    out_ref[...] = logits + b_ref[:, pl.ds(col0, tn)]


# ---------------------------------------------------------------------------
# One-time parameter preparation (padding / casting hoisted out of forward).
# ---------------------------------------------------------------------------
def _pick_vocab_tile(vp128, dp, *, max_tn=2048, budget_bytes=24 << 20, max_b=256):
    tn = max(128, min(max_tn, vp128) - min(max_tn, vp128) % 128)
    while tn > 128:
        need = (2 * tn * dp * 2          # double-buffered bf16 W tiles
                + 2 * max_b * tn * 4     # double-buffered f32 out tiles
                + max_b * dp * 4)        # resident f32 avg activation
        if need <= budget_bytes:         # keep well under v7x's 64 MiB VMEM
            break
        tn -= 128
    return tn


def prepare_cbow_params(emb_weight, out_weight, out_bias):
    V, D = emb_weight.shape
    Dp = _round_up(D, 128)
    tn = _pick_vocab_tile(_round_up(V, 128), Dp)
    assert tn % 128 == 0
    Vp = _round_up(V, tn)

    emb_p = jnp.zeros((V, Dp), jnp.float32).at[:, :D].set(
        emb_weight.astype(jnp.float32))
    # Stream the projection weights as bf16 (halves HBM traffic); accumulation
    # stays f32 inside the kernel.
    w_p = jnp.zeros((Vp, Dp), jnp.bfloat16).at[:V, :D].set(
        out_weight.astype(jnp.bfloat16))
    b_p = jnp.zeros((1, Vp), jnp.float32).at[0, :V].set(
        out_bias.astype(jnp.float32))
    return dict(emb=emb_p, w=w_p, b=b_p, tn=tn, V=V, D=D)


# ---------------------------------------------------------------------------
# Forward pass.
# ---------------------------------------------------------------------------
def cbow_forward(params, context_words):
    emb_p, w_p, b_p, tn = params["emb"], params["w"], params["b"], params["tn"]
    V = params["V"]
    Vp, Dp = w_p.shape
    B, C = context_words.shape
    Bp = _round_up(max(B, 8), 8)

    # Padded batch rows gather embedding row 0 (always valid); they are sliced
    # off before returning.
    flat_idx = jnp.zeros((Bp * C,), jnp.int32).at[: B * C].set(
        context_words.reshape(B * C).astype(jnp.int32))

    # --- Kernel 1: gather + mean -> (Bp, Dp) f32 ---------------------------
    avg = pl.pallas_call(
        functools.partial(gather_mean_kernel, batch=Bp, context=C),
        out_shape=jax.ShapeDtypeStruct((Bp, Dp), jnp.float32),
        grid_spec=pltpu.PrefetchScalarGridSpec(
            num_scalar_prefetch=1,                        # indices -> SMEM
            grid=(1,),
            in_specs=[pl.BlockSpec(memory_space=pl.ANY)],  # table stays in HBM
            out_specs=pl.BlockSpec((Bp, Dp), lambda i, idx: (0, 0)),
            scratch_shapes=[pltpu.VMEM((2, Bp, Dp), jnp.float32),
                            pltpu.SemaphoreType.DMA((2, Bp))],
        ),
        compiler_params=pltpu.CompilerParams(
            dimension_semantics=("arbitrary",)),
    )(flat_idx, emb_p)

    # --- Kernel 2: logits = avg @ W.T + b, vocab axis tiled & parallel -----
    out = pl.pallas_call(
        functools.partial(projection_kernel, tn=tn),
        out_shape=jax.ShapeDtypeStruct((Bp, Vp), jnp.float32),
        grid_spec=pltpu.PrefetchScalarGridSpec(
            num_scalar_prefetch=0,
            grid=(Vp // tn,),
            in_specs=[
                pl.BlockSpec((Bp, Dp), lambda j: (0, 0)),   # avg, resident
                pl.BlockSpec((tn, Dp), lambda j: (j, 0)),   # bf16 W tile, streamed
                pl.BlockSpec((1, Vp), lambda j: (0, 0)),    # bias, resident
            ],
            out_specs=pl.BlockSpec((Bp, tn), lambda j: (0, j)),
        ),
        compiler_params=pltpu.CompilerParams(
            dimension_semantics=("parallel",),              # shards across TCs
            vmem_limit_bytes=48 << 20,                      # < 64 MiB (v7x safe)
        ),
    )(avg, w_p, b_p)

    return out[:B, :V]


if __name__ == "__main__":
    # Small, CBOW-consistent shapes.
    vocab_size = 64
    embedding_dim = 50
    batch = 8
    context = 4   # e.g. window_size=2 -> 4 context words per target

    key = jax.random.PRNGKey(0)
    k_idx, k_emb, k_w, k_b = jax.random.split(key, 4)

    # Parameter init mirroring PyTorch defaults:
    #   nn.Embedding.weight ~ N(0, 1)
    #   nn.Linear weight/bias ~ U(-1/sqrt(in_features), 1/sqrt(in_features))
    emb_weight = jax.random.normal(k_emb, (vocab_size, embedding_dim), jnp.float32)
    bound = 1.0 / (embedding_dim ** 0.5)
    out_weight = jax.random.uniform(
        k_w, (vocab_size, embedding_dim), jnp.float32, -bound, bound)
    out_bias = jax.random.uniform(
        k_b, (vocab_size,), jnp.float32, -bound, bound)

    context_words = jax.random.randint(
        k_idx, (batch, context), 0, vocab_size, dtype=jnp.int32)

    params = prepare_cbow_params(emb_weight, out_weight, out_bias)  # one-time
    logits = cbow_forward(params, context_words)
    logits = jax.block_until_ready(logits)

    # Pure-JAX f32 reference of the forward semantics.
    ref_embeds = jnp.take(emb_weight, context_words, axis=0)   # (B, C, D)
    ref_avg = jnp.mean(ref_embeds, axis=1)                     # (B, D)
    ref_logits = ref_avg @ out_weight.T + out_bias             # (B, V)

    assert logits.shape == (batch, vocab_size)
    # Tolerance covers the bf16 weight-streaming path (f32 accumulation).
    assert jnp.allclose(logits, ref_logits, atol=2e-2, rtol=2e-2)

    print("KERNEL_OK")
</pallas_src>

<mosaic_0001>
module attributes {stable_mosaic.version = 11 : i64} {
  func.func @gather_mean_kernel(%arg0: i32, %arg1: memref<32xi32, #tpu.memory_space<smem>>, %arg2: memref<64x128xf32, #tpu.memory_space<any>>, %arg3: memref<8x128xf32, #tpu.memory_space<vmem>>, %arg4: memref<2x8x128xf32, #tpu.memory_space<vmem>>, %arg5: memref<2x8x!tpu.dma_semaphore, #tpu.memory_space<semaphore_mem>>) attributes {dimension_semantics = [#tpu.dimension_semantics<arbitrary>], iteration_bounds = array<i64: 1>, scalar_prefetch = 1 : i64, scratch_operands = 2 : i64, tpu.core_type = #tpu.core_type<tc>, window_params = [{}, {pipeline_mode = #tpu.pipeline_mode<synchronous>, transform_indices = @transform_1, window_bounds = array<i64: 8, 128>}]} {
    %c0 = arith.constant 0 : index
    %0 = memref.load %arg1[%c0] : memref<32xi32, #tpu.memory_space<smem>>
    %c0_i32 = arith.constant 0 : i32
    %c0_i32_0 = arith.constant 0 : i32
    %c0_i32_1 = arith.constant 0 : i32
    %c0_i32_2 = arith.constant 0 : i32
    %1 = tpu.memref_slice %arg2[%0, %c0_i32_2] : memref<64x128xf32, #tpu.memory_space<any>> -> memref<1x128xf32, #tpu.memory_space<any>>
    %c0_i32_3 = arith.constant 0 : i32
    %c0_i32_4 = arith.constant 0 : i32
    %2 = tpu.memref_slice %arg4[%c0_i32, %c0_i32_3, %c0_i32_4] : memref<2x8x128xf32, #tpu.memory_space<vmem>> -> memref<1x1x128xf32, #tpu.memory_space<vmem>>
    %3 = tpu.memref_squeeze %2 : memref<1x1x128xf32, #tpu.memory_space<vmem>> -> memref<1x128xf32, #tpu.memory_space<vmem>>
    %4 = tpu.memref_slice %arg5[%c0_i32_0, %c0_i32_1] : memref<2x8x!tpu.dma_semaphore, #tpu.memory_space<semaphore_mem>> -> memref<1x1x!tpu.dma_semaphore, #tpu.memory_space<semaphore_mem>>
    %5 = tpu.memref_squeeze %4 : memref<1x1x!tpu.dma_semaphore, #tpu.memory_space<semaphore_mem>> -> memref<!tpu.dma_semaphore, #tpu.memory_space<semaphore_mem>>
    tpu.enqueue_dma source(%1 : memref<1x128xf32, #tpu.memory_space<any>>) target(%3 : memref<1x128xf32, #tpu.memory_space<vmem>>) target_semaphore(%5 : memref<!tpu.dma_semaphore, #tpu.memory_space<semaphore_mem>>)
    %c4 = arith.constant 4 : index
    %6 = memref.load %arg1[%c4] : memref<32xi32, #tpu.memory_space<smem>>
    %c0_i32_5 = arith.constant 0 : i32
    %c0_i32_6 = arith.constant 0 : i32
    %c1_i32 = arith.constant 1 : i32
    %c0_i32_7 = arith.constant 0 : i32
    %7 = tpu.memref_slice %arg2[%6, %c0_i32_7] : memref<64x128xf32, #tpu.memory_space<any>> -> memref<1x128xf32, #tpu.memory_space<any>>
    %c1_i32_8 = arith.constant 1 : i32
    %c0_i32_9 = arith.constant 0 : i32
    %8 = tpu.memref_slice %arg4[%c0_i32_5, %c1_i32_8, %c0_i32_9] : memref<2x8x128xf32, #tpu.memory_space<vmem>> -> memref<1x1x128xf32, #tpu.memory_space<vmem>>
    %9 = tpu.memref_squeeze %8 : memref<1x1x128xf32, #tpu.memory_space<vmem>> -> memref<1x128xf32, #tpu.memory_space<vmem>>
    %10 = tpu.memref_slice %arg5[%c0_i32_6, %c1_i32] : memref<2x8x!tpu.dma_semaphore, #tpu.memory_space<semaphore_mem>> -> memref<1x1x!tpu.dma_semaphore, #tpu.memory_space<semaphore_mem>>
    %11 = tpu.memref_squeeze %10 : memref<1x1x!tpu.dma_semaphore, #tpu.memory_space<semaphore_mem>> -> memref<!tpu.dma_semaphore, #tpu.memory_space<semaphore_mem>>
    tpu.enqueue_dma source(%7 : memref<1x128xf32, #tpu.memory_space<any>>) target(%9 : memref<1x128xf32, #tpu.memory_space<vmem>>) target_semaphore(%11 : memref<!tpu.dma_semaphore, #tpu.memory_space<semaphore_mem>>)
    %c8 = arith.constant 8 : index
    %12 = memref.load %arg1[%c8] : memref<32xi32, #tpu.memory_space<smem>>
    %c0_i32_10 = arith.constant 0 : i32
    %c0_i32_11 = arith.constant 0 : i32
    %c2_i32 = arith.constant 2 : i32
    %c0_i32_12 = arith.constant 0 : i32
    %13 = tpu.memref_slice %arg2[%12, %c0_i32_12] : memref<64x128xf32, #tpu.memory_space<any>> -> memref<1x128xf32, #tpu.memory_space<any>>
    %c2_i32_13 = arith.constant 2 : i32
    %c0_i32_14 = arith.constant 0 : i32
    %14 = tpu.memref_slice %arg4[%c0_i32_10, %c2_i32_13, %c0_i32_14] : memref<2x8x128xf32, #tpu.memory_space<vmem>> -> memref<1x1x128xf32, #tpu.memory_space<vmem>>
    %15 = tpu.memref_squeeze %14 : memref<1x1x128xf32, #tpu.memory_space<vmem>> -> memref<1x128xf32, #tpu.memory_space<vmem>>
    %16 = tpu.memref_slice %arg5[%c0_i32_11, %c2_i32] : memref<2x8x!tpu.dma_semaphore, #tpu.memory_space<semaphore_mem>> -> memref<1x1x!tpu.dma_semaphore, #tpu.memory_space<semaphore_mem>>
    %17 = tpu.memref_squeeze %16 : memref<1x1x!tpu.dma_semaphore, #tpu.memory_space<semaphore_mem>> -> memref<!tpu.dma_semaphore, #tpu.memory_space<semaphore_mem>>
    tpu.enqueue_dma source(%13 : memref<1x128xf32, #tpu.memory_space<any>>) target(%15 : memref<1x128xf32, #tpu.memory_space<vmem>>) target_semaphore(%17 : memref<!tpu.dma_semaphore, #tpu.memory_space<semaphore_mem>>)
    %c12 = arith.constant 12 : index
    %18 = memref.load %arg1[%c12] : memref<32xi32, #tpu.memory_space<smem>>
    %c0_i32_15 = arith.constant 0 : i32
    %c0_i32_16 = arith.constant 0 : i32
    %c3_i32 = arith.constant 3 : i32
    %c0_i32_17 = arith.constant 0 : i32
    %19 = tpu.memref_slice %arg2[%18, %c0_i32_17] : memref<64x128xf32, #tpu.memory_space<any>> -> memref<1x128xf32, #tpu.memory_space<any>>
    %c3_i32_18 = arith.constant 3 : i32
    %c0_i32_19 = arith.constant 0 : i32
    %20 = tpu.memref_slice %arg4[%c0_i32_15, %c3_i32_18, %c0_i32_19] : memref<2x8x128xf32, #tpu.memory_space<vmem>> -> memref<1x1x128xf32, #tpu.memory_space<vmem>>
    %21 = tpu.memref_squeeze %20 : memref<1x1x128xf32, #tpu.memory_space<vmem>> -> memref<1x128xf32, #tpu.memory_space<vmem>>
    %22 = tpu.memref_slice %arg5[%c0_i32_16, %c3_i32] : memref<2x8x!tpu.dma_semaphore, #tpu.memory_space<semaphore_mem>> -> memref<1x1x!tpu.dma_semaphore, #tpu.memory_space<semaphore_mem>>
    %23 = tpu.memref_squeeze %22 : memref<1x1x!tpu.dma_semaphore, #tpu.memory_space<semaphore_mem>> -> memref<!tpu.dma_semaphore, #tpu.memory_space<semaphore_mem>>
    tpu.enqueue_dma source(%19 : memref<1x128xf32, #tpu.memory_space<any>>) target(%21 : memref<1x128xf32, #tpu.memory_space<vmem>>) target_semaphore(%23 : memref<!tpu.dma_semaphore, #tpu.memory_space<semaphore_mem>>)
    %c16 = arith.constant 16 : index
    %24 = memref.load %arg1[%c16] : memref<32xi32, #tpu.memory_space<smem>>
    %c0_i32_20 = arith.constant 0 : i32
    %c0_i32_21 = arith.constant 0 : i32
    %c4_i32 = arith.constant 4 : i32
    %c0_i32_22 = arith.constant 0 : i32
    %25 = tpu.memref_slice %arg2[%24, %c0_i32_22] : memref<64x128xf32, #tpu.memory_space<any>> -> memref<1x128xf32, #tpu.memory_space<any>>
    %c4_i32_23 = arith.constant 4 : i32
    %c0_i32_24 = arith.constant 0 : i32
    %26 = tpu.memref_slice %arg4[%c0_i32_20, %c4_i32_23, %c0_i32_24] : memref<2x8x128xf32, #tpu.memory_space<vmem>> -> memref<1x1x128xf32, #tpu.memory_space<vmem>>
    %27 = tpu.memref_squeeze %26 : memref<1x1x128xf32, #tpu.memory_space<vmem>> -> memref<1x128xf32, #tpu.memory_space<vmem>>
    %28 = tpu.memref_slice %arg5[%c0_i32_21, %c4_i32] : memref<2x8x!tpu.dma_semaphore, #tpu.memory_space<semaphore_mem>> -> memref<1x1x!tpu.dma_semaphore, #tpu.memory_space<semaphore_mem>>
    %29 = tpu.memref_squeeze %28 : memref<1x1x!tpu.dma_semaphore, #tpu.memory_space<semaphore_mem>> -> memref<!tpu.dma_semaphore, #tpu.memory_space<semaphore_mem>>
    tpu.enqueue_dma source(%25 : memref<1x128xf32, #tpu.memory_space<any>>) target(%27 : memref<1x128xf32, #tpu.memory_space<vmem>>) target_semaphore(%29 : memref<!tpu.dma_semaphore, #tpu.memory_space<semaphore_mem>>)
    %c20 = arith.constant 20 : index
    %30 = memref.load %arg1[%c20] : memref<32xi32, #tpu.memory_space<smem>>
    %c0_i32_25 = arith.constant 0 : i32
    %c0_i32_26 = arith.constant 0 : i32
    %c5_i32 = arith.constant 5 : i32
    %c0_i32_27 = arith.constant 0 : i32
    %31 = tpu.memref_slice %arg2[%30, %c0_i32_27] : memref<64x128xf32, #tpu.memory_space<any>> -> memref<1x128xf32, #tpu.memory_space<any>>
    %c5_i32_28 = arith.constant 5 : i32
    %c0_i32_29 = arith.constant 0 : i32
    %32 = tpu.memref_slice %arg4[%c0_i32_25, %c5_i32_28, %c0_i32_29] : memref<2x8x128xf32, #tpu.memory_space<vmem>> -> memref<1x1x128xf32, #tpu.memory_space<vmem>>
    %33 = tpu.memref_squeeze %32 : memref<1x1x128xf32, #tpu.memory_space<vmem>> -> memref<1x128xf32, #tpu.memory_space<vmem>>
    %34 = tpu.memref_slice %arg5[%c0_i32_26, %c5_i32] : memref<2x8x!tpu.dma_semaphore, #tpu.memory_space<semaphore_mem>> -> memref<1x1x!tpu.dma_semaphore, #tpu.memory_space<semaphore_mem>>
    %35 = tpu.memref_squeeze %34 : memref<1x1x!tpu.dma_semaphore, #tpu.memory_space<semaphore_mem>> -> memref<!tpu.dma_semaphore, #tpu.memory_space<semaphore_mem>>
    tpu.enqueue_dma source(%31 : memref<1x128xf32, #tpu.memory_space<any>>) target(%33 : memref<1x128xf32, #tpu.memory_space<vmem>>) target_semaphore(%35 : memref<!tpu.dma_semaphore, #tpu.memory_space<semaphore_mem>>)
    %c24 = arith.constant 24 : index
    %36 = memref.load %arg1[%c24] : memref<32xi32, #tpu.memory_space<smem>>
    %c0_i32_30 = arith.constant 0 : i32
    %c0_i32_31 = arith.constant 0 : i32
    %c6_i32 = arith.constant 6 : i32
    %c0_i32_32 = arith.constant 0 : i32
    %37 = tpu.memref_slice %arg2[%36, %c0_i32_32] : memref<64x128xf32, #tpu.memory_space<any>> -> memref<1x128xf32, #tpu.memory_space<any>>
    %c6_i32_33 = arith.constant 6 : i32
    %c0_i32_34 = arith.constant 0 : i32
    %38 = tpu.memref_slice %arg4[%c0_i32_30, %c6_i32_33, %c0_i32_34] : memref<2x8x128xf32, #tpu.memory_space<vmem>> -> memref<1x1x128xf32, #tpu.memory_space<vmem>>
    %39 = tpu.memref_squeeze %38 : memref<1x1x128xf32, #tpu.memory_space<vmem>> -> memref<1x128xf32, #tpu.memory_space<vmem>>
    %40 = tpu.memref_slice %arg5[%c0_i32_31, %c6_i32] : memref<2x8x!tpu.dma_semaphore, #tpu.memory_space<semaphore_mem>> -> memref<1x1x!tpu.dma_semaphore, #tpu.memory_space<semaphore_mem>>
    %41 = tpu.memref_squeeze %40 : memref<1x1x!tpu.dma_semaphore, #tpu.memory_space<semaphore_mem>> -> memref<!tpu.dma_semaphore, #tpu.memory_space<semaphore_mem>>
    tpu.enqueue_dma source(%37 : memref<1x128xf32, #tpu.memory_space<any>>) target(%39 : memref<1x128xf32, #tpu.memory_space<vmem>>) target_semaphore(%41 : memref<!tpu.dma_semaphore, #tpu.memory_space<semaphore_mem>>)
    %c28 = arith.constant 28 : index
    %42 = memref.load %arg1[%c28] : memref<32xi32, #tpu.memory_space<smem>>
    %c0_i32_35 = arith.constant 0 : i32
    %c0_i32_36 = arith.constant 0 : i32
    %c7_i32 = arith.constant 7 : i32
    %c0_i32_37 = arith.constant 0 : i32
    %43 = tpu.memref_slice %arg2[%42, %c0_i32_37] : memref<64x128xf32, #tpu.memory_space<any>> -> memref<1x128xf32, #tpu.memory_space<any>>
    %c7_i32_38 = arith.constant 7 : i32
    %c0_i32_39 = arith.constant 0 : i32
    %44 = tpu.memref_slice %arg4[%c0_i32_35, %c7_i32_38, %c0_i32_39] : memref<2x8x128xf32, #tpu.memory_space<vmem>> -> memref<1x1x128xf32, #tpu.memory_space<vmem>>
    %45 = tpu.memref_squeeze %44 : memref<1x1x128xf32, #tpu.memory_space<vmem>> -> memref<1x128xf32, #tpu.memory_space<vmem>>
    %46 = tpu.memref_slice %arg5[%c0_i32_36, %c7_i32] : memref<2x8x!tpu.dma_semaphore, #tpu.memory_space<semaphore_mem>> -> memref<1x1x!tpu.dma_semaphore, #tpu.memory_space<semaphore_mem>>
    %47 = tpu.memref_squeeze %46 : memref<1x1x!tpu.dma_semaphore, #tpu.memory_space<semaphore_mem>> -> memref<!tpu.dma_semaphore, #tpu.memory_space<semaphore_mem>>
    tpu.enqueue_dma source(%43 : memref<1x128xf32, #tpu.memory_space<any>>) target(%45 : memref<1x128xf32, #tpu.memory_space<vmem>>) target_semaphore(%47 : memref<!tpu.dma_semaphore, #tpu.memory_space<semaphore_mem>>)
    %c1 = arith.constant 1 : index
    %48 = memref.load %arg1[%c1] : memref<32xi32, #tpu.memory_space<smem>>
    %c1_i32_40 = arith.constant 1 : i32
    %c1_i32_41 = arith.constant 1 : i32
    %c0_i32_42 = arith.constant 0 : i32
    %c0_i32_43 = arith.constant 0 : i32
    %49 = tpu.memref_slice %arg2[%48, %c0_i32_43] : memref<64x128xf32, #tpu.memory_space<any>> -> memref<1x128xf32, #tpu.memory_space<any>>
    %c0_i32_44 = arith.constant 0 : i32
    %c0_i32_45 = arith.constant 0 : i32
    %50 = tpu.memref_slice %arg4[%c1_i32_40, %c0_i32_44, %c0_i32_45] : memref<2x8x128xf32, #tpu.memory_space<vmem>> -> memref<1x1x128xf32, #tpu.memory_space<vmem>>
    %51 = tpu.memref_squeeze %50 : memref<1x1x128xf32, #tpu.memory_space<vmem>> -> memref<1x128xf32, #tpu.memory_space<vmem>>
    %52 = tpu.memref_slice %arg5[%c1_i32_41, %c0_i32_42] : memref<2x8x!tpu.dma_semaphore, #tpu.memory_space<semaphore_mem>> -> memref<1x1x!tpu.dma_semaphore, #tpu.memory_space<semaphore_mem>>
    %53 = tpu.memref_squeeze %52 : memref<1x1x!tpu.dma_semaphore, #tpu.memory_space<semaphore_mem>> -> memref<!tpu.dma_semaphore, #tpu.memory_space<semaphore_mem>>
    tpu.enqueue_dma source(%49 : memref<1x128xf32, #tpu.memory_space<any>>) target(%51 : memref<1x128xf32, #tpu.memory_space<vmem>>) target_semaphore(%53 : memref<!tpu.dma_semaphore, #tpu.memory_space<semaphore_mem>>)
    %c5 = arith.constant 5 : index
    %54 = memref.load %arg1[%c5] : memref<32xi32, #tpu.memory_space<smem>>
    %c1_i32_46 = arith.constant 1 : i32
    %c1_i32_47 = arith.constant 1 : i32
    %c1_i32_48 = arith.constant 1 : i32
    %c0_i32_49 = arith.constant 0 : i32
    %55 = tpu.memref_slice %arg2[%54, %c0_i32_49] : memref<64x128xf32, #tpu.memory_space<any>> -> memref<1x128xf32, #tpu.memory_space<any>>
    %c1_i32_50 = arith.constant 1 : i32
    %c0_i32_51 = arith.constant 0 : i32
    %56 = tpu.memref_slice %arg4[%c1_i32_46, %c1_i32_50, %c0_i32_51] : memref<2x8x128xf32, #tpu.memory_space<vmem>> -> memref<1x1x128xf32, #tpu.memory_space<vmem>>
    %57 = tpu.memref_squeeze %56 : memref<1x1x128xf32, #tpu.memory_space<vmem>> -> memref<1x128xf32, #tpu.memory_space<vmem>>
    %58 = tpu.memref_slice %arg5[%c1_i32_47, %c1_i32_48] : memref<2x8x!tpu.dma_semaphore, #tpu.memory_space<semaphore_mem>> -> memref<1x1x!tpu.dma_semaphore, #tpu.memory_space<semaphore_mem>>
    %59 = tpu.memref_squeeze %58 : memref<1x1x!tpu.dma_semaphore, #tpu.memory_space<semaphore_mem>> -> memref<!tpu.dma_semaphore, #tpu.memory_space<semaphore_mem>>
    tpu.enqueue_dma source(%55 : memref<1x128xf32, #tpu.memory_space<any>>) target(%57 : memref<1x128xf32, #tpu.memory_space<vmem>>) target_semaphore(%59 : memref<!tpu.dma_semaphore, #tpu.memory_space<semaphore_mem>>)
    %c9 = arith.constant 9 : index
    %60 = memref.load %arg1[%c9] : memref<32xi32, #tpu.memory_space<smem>>
    %c1_i32_52 = arith.constant 1 : i32
    %c1_i32_53 = arith.constant 1 : i32
    %c2_i32_54 = arith.constant 2 : i32
    %c0_i32_55 = arith.constant 0 : i32
    %61 = tpu.memref_slice %arg2[%60, %c0_i32_55] : memref<64x128xf32, #tpu.memory_space<any>> -> memref<1x128xf32, #tpu.memory_space<any>>
    %c2_i32_56 = arith.constant 2 : i32
    %c0_i32_57 = arith.constant 0 : i32
    %62 = tpu.memref_slice %arg4[%c1_i32_52, %c2_i32_56, %c0_i32_57] : memref<2x8x128xf32, #tpu.memory_space<vmem>> -> memref<1x1x128xf32, #tpu.memory_space<vmem>>
    %63 = tpu.memref_squeeze %62 : memref<1x1x128xf32, #tpu.memory_space<vmem>> -> memref<1x128xf32, #tpu.memory_space<vmem>>
    %64 = tpu.memref_slice %arg5[%c1_i32_53, %c2_i32_54] : memref<2x8x!tpu.dma_semaphore, #tpu.memory_space<semaphore_mem>> -> memref<1x1x!tpu.dma_semaphore, #tpu.memory_space<semaphore_mem>>
    %65 = tpu.memref_squeeze %64 : memref<1x1x!tpu.dma_semaphore, #tpu.memory_space<semaphore_mem>> -> memref<!tpu.dma_semaphore, #tpu.memory_space<semaphore_mem>>
    tpu.enqueue_dma source(%61 : memref<1x128xf32, #tpu.memory_space<any>>) target(%63 : memref<1x128xf32, #tpu.memory_space<vmem>>) target_semaphore(%65 : memref<!tpu.dma_semaphore, #tpu.memory_space<semaphore_mem>>)
    %c13 = arith.constant 13 : index
    %66 = memref.load %arg1[%c13] : memref<32xi32, #tpu.memory_space<smem>>
    %c1_i32_58 = arith.constant 1 : i32
    %c1_i32_59 = arith.constant 1 : i32
    %c3_i32_60 = arith.constant 3 : i32
    %c0_i32_61 = arith.constant 0 : i32
    %67 = tpu.memref_slice %arg2[%66, %c0_i32_61] : memref<64x128xf32, #tpu.memory_space<any>> -> memref<1x128xf32, #tpu.memory_space<any>>
    %c3_i32_62 = arith.constant 3 : i32
    %c0_i32_63 = arith.constant 0 : i32
    %68 = tpu.memref_slice %arg4[%c1_i32_58, %c3_i32_62, %c0_i32_63] : memref<2x8x128xf32, #tpu.memory_space<vmem>> -> memref<1x1x128xf32, #tpu.memory_space<vmem>>
    %69 = tpu.memref_squeeze %68 : memref<1x1x128xf32, #tpu.memory_space<vmem>> -> memref<1x128xf32, #tpu.memory_space<vmem>>
    %70 = tpu.memref_slice %arg5[%c1_i32_59, %c3_i32_60] : memref<2x8x!tpu.dma_semaphore, #tpu.memory_space<semaphore_mem>> -> memref<1x1x!tpu.dma_semaphore, #tpu.memory_space<semaphore_mem>>
    %71 = tpu.memref_squeeze %70 : memref<1x1x!tpu.dma_semaphore, #tpu.memory_space<semaphore_mem>> -> memref<!tpu.dma_semaphore, #tpu.memory_space<semaphore_mem>>
    tpu.enqueue_dma source(%67 : memref<1x128xf32, #tpu.memory_space<any>>) target(%69 : memref<1x128xf32, #tpu.memory_space<vmem>>) target_semaphore(%71 : memref<!tpu.dma_semaphore, #tpu.memory_space<semaphore_mem>>)
    %c17 = arith.constant 17 : index
    %72 = memref.load %arg1[%c17] : memref<32xi32, #tpu.memory_space<smem>>
    %c1_i32_64 = arith.constant 1 : i32
    %c1_i32_65 = arith.constant 1 : i32
    %c4_i32_66 = arith.constant 4 : i32
    %c0_i32_67 = arith.constant 0 : i32
    %73 = tpu.memref_slice %arg2[%72, %c0_i32_67] : memref<64x128xf32, #tpu.memory_space<any>> -> memref<1x128xf32, #tpu.memory_space<any>>
    %c4_i32_68 = arith.constant 4 : i32
    %c0_i32_69 = arith.constant 0 : i32
    %74 = tpu.memref_slice %arg4[%c1_i32_64, %c4_i32_68, %c0_i32_69] : memref<2x8x128xf32, #tpu.memory_space<vmem>> -> memref<1x1x128xf32, #tpu.memory_space<vmem>>
    %75 = tpu.memref_squeeze %74 : memref<1x1x128xf32, #tpu.memory_space<vmem>> -> memref<1x128xf32, #tpu.memory_space<vmem>>
    %76 = tpu.memref_slice %arg5[%c1_i32_65, %c4_i32_66] : memref<2x8x!tpu.dma_semaphore, #tpu.memory_space<semaphore_mem>> -> memref<1x1x!tpu.dma_semaphore, #tpu.memory_space<semaphore_mem>>
    %77 = tpu.memref_squeeze %76 : memref<1x1x!tpu.dma_semaphore, #tpu.memory_space<semaphore_mem>> -> memref<!tpu.dma_semaphore, #tpu.memory_space<semaphore_mem>>
    tpu.enqueue_dma source(%73 : memref<1x128xf32, #tpu.memory_space<any>>) target(%75 : memref<1x128xf32, #tpu.memory_space<vmem>>) target_semaphore(%77 : memref<!tpu.dma_semaphore, #tpu.memory_space<semaphore_mem>>)
    %c21 = arith.constant 21 : index
    %78 = memref.load %arg1[%c21] : memref<32xi32, #tpu.memory_space<smem>>
    %c1_i32_70 = arith.constant 1 : i32
    %c1_i32_71 = arith.constant 1 : i32
    %c5_i32_72 = arith.constant 5 : i32
    %c0_i32_73 = arith.constant 0 : i32
    %79 = tpu.memref_slice %arg2[%78, %c0_i32_73] : memref<64x128xf32, #tpu.memory_space<any>> -> memref<1x128xf32, #tpu.memory_space<any>>
    %c5_i32_74 = arith.constant 5 : i32
    %c0_i32_75 = arith.constant 0 : i32
    %80 = tpu.memref_slice %arg4[%c1_i32_70, %c5_i32_74, %c0_i32_75] : memref<2x8x128xf32, #tpu.memory_space<vmem>> -> memref<1x1x128xf32, #tpu.memory_space<vmem>>
    %81 = tpu.memref_squeeze %80 : memref<1x1x128xf32, #tpu.memory_space<vmem>> -> memref<1x128xf32, #tpu.memory_space<vmem>>
    %82 = tpu.memref_slice %arg5[%c1_i32_71, %c5_i32_72] : memref<2x8x!tpu.dma_semaphore, #tpu.memory_space<semaphore_mem>> -> memref<1x1x!tpu.dma_semaphore, #tpu.memory_space<semaphore_mem>>
    %83 = tpu.memref_squeeze %82 : memref<1x1x!tpu.dma_semaphore, #tpu.memory_space<semaphore_mem>> -> memref<!tpu.dma_semaphore, #tpu.memory_space<semaphore_mem>>
    tpu.enqueue_dma source(%79 : memref<1x128xf32, #tpu.memory_space<any>>) target(%81 : memref<1x128xf32, #tpu.memory_space<vmem>>) target_semaphore(%83 : memref<!tpu.dma_semaphore, #tpu.memory_space<semaphore_mem>>)
    %c25 = arith.constant 25 : index
    %84 = memref.load %arg1[%c25] : memref<32xi32, #tpu.memory_space<smem>>
    %c1_i32_76 = arith.constant 1 : i32
    %c1_i32_77 = arith.constant 1 : i32
    %c6_i32_78 = arith.constant 6 : i32
    %c0_i32_79 = arith.constant 0 : i32
    %85 = tpu.memref_slice %arg2[%84, %c0_i32_79] : memref<64x128xf32, #tpu.memory_space<any>> -> memref<1x128xf32, #tpu.memory_space<any>>
    %c6_i32_80 = arith.constant 6 : i32
    %c0_i32_81 = arith.constant 0 : i32
    %86 = tpu.memref_slice %arg4[%c1_i32_76, %c6_i32_80, %c0_i32_81] : memref<2x8x128xf32, #tpu.memory_space<vmem>> -> memref<1x1x128xf32, #tpu.memory_space<vmem>>
    %87 = tpu.memref_squeeze %86 : memref<1x1x128xf32, #tpu.memory_space<vmem>> -> memref<1x128xf32, #tpu.memory_space<vmem>>
    %88 = tpu.memref_slice %arg5[%c1_i32_77, %c6_i32_78] : memref<2x8x!tpu.dma_semaphore, #tpu.memory_space<semaphore_mem>> -> memref<1x1x!tpu.dma_semaphore, #tpu.memory_space<semaphore_mem>>
    %89 = tpu.memref_squeeze %88 : memref<1x1x!tpu.dma_semaphore, #tpu.memory_space<semaphore_mem>> -> memref<!tpu.dma_semaphore, #tpu.memory_space<semaphore_mem>>
    tpu.enqueue_dma source(%85 : memref<1x128xf32, #tpu.memory_space<any>>) target(%87 : memref<1x128xf32, #tpu.memory_space<vmem>>) target_semaphore(%89 : memref<!tpu.dma_semaphore, #tpu.memory_space<semaphore_mem>>)
    %c29 = arith.constant 29 : index
    %90 = memref.load %arg1[%c29] : memref<32xi32, #tpu.memory_space<smem>>
    %c1_i32_82 = arith.constant 1 : i32
    %c1_i32_83 = arith.constant 1 : i32
    %c7_i32_84 = arith.constant 7 : i32
    %c0_i32_85 = arith.constant 0 : i32
    %91 = tpu.memref_slice %arg2[%90, %c0_i32_85] : memref<64x128xf32, #tpu.memory_space<any>> -> memref<1x128xf32, #tpu.memory_space<any>>
    %c7_i32_86 = arith.constant 7 : i32
    %c0_i32_87 = arith.constant 0 : i32
    %92 = tpu.memref_slice %arg4[%c1_i32_82, %c7_i32_86, %c0_i32_87] : memref<2x8x128xf32, #tpu.memory_space<vmem>> -> memref<1x1x128xf32, #tpu.memory_space<vmem>>
    %93 = tpu.memref_squeeze %92 : memref<1x1x128xf32, #tpu.memory_space<vmem>> -> memref<1x128xf32, #tpu.memory_space<vmem>>
    %94 = tpu.memref_slice %arg5[%c1_i32_83, %c7_i32_84] : memref<2x8x!tpu.dma_semaphore, #tpu.memory_space<semaphore_mem>> -> memref<1x1x!tpu.dma_semaphore, #tpu.memory_space<semaphore_mem>>
    %95 = tpu.memref_squeeze %94 : memref<1x1x!tpu.dma_semaphore, #tpu.memory_space<semaphore_mem>> -> memref<!tpu.dma_semaphore, #tpu.memory_space<semaphore_mem>>
    tpu.enqueue_dma source(%91 : memref<1x128xf32, #tpu.memory_space<any>>) target(%93 : memref<1x128xf32, #tpu.memory_space<vmem>>) target_semaphore(%95 : memref<!tpu.dma_semaphore, #tpu.memory_space<semaphore_mem>>)
    %c0_i32_88 = arith.constant 0 : i32
    %c0_i32_89 = arith.constant 0 : i32
    %c0_i32_90 = arith.constant 0 : i32
    %c0_i32_91 = arith.constant 0 : i32
    %96 = tpu.memref_slice %arg2[%0, %c0_i32_91] : memref<64x128xf32, #tpu.memory_space<any>> -> memref<1x128xf32, #tpu.memory_space<any>>
    %c0_i32_92 = arith.constant 0 : i32
    %c0_i32_93 = arith.constant 0 : i32
    %97 = tpu.memref_slice %arg4[%c0_i32_88, %c0_i32_92, %c0_i32_93] : memref<2x8x128xf32, #tpu.memory_space<vmem>> -> memref<1x1x128xf32, #tpu.memory_space<vmem>>
    %98 = tpu.memref_squeeze %97 : memref<1x1x128xf32, #tpu.memory_space<vmem>> -> memref<1x128xf32, #tpu.memory_space<vmem>>
    %99 = tpu.memref_slice %arg5[%c0_i32_89, %c0_i32_90] : memref<2x8x!tpu.dma_semaphore, #tpu.memory_space<semaphore_mem>> -> memref<1x1x!tpu.dma_semaphore, #tpu.memory_space<semaphore_mem>>
    %100 = tpu.memref_squeeze %99 : memref<1x1x!tpu.dma_semaphore, #tpu.memory_space<semaphore_mem>> -> memref<!tpu.dma_semaphore, #tpu.memory_space<semaphore_mem>>
    tpu.wait_dma2 semaphore(%100 : memref<!tpu.dma_semaphore, #tpu.memory_space<semaphore_mem>>) src(%96 : memref<1x128xf32, #tpu.memory_space<any>>) dst(%98 : memref<1x128xf32, #tpu.memory_space<vmem>>)
    %c0_i32_94 = arith.constant 0 : i32
    %c0_i32_95 = arith.constant 0 : i32
    %c1_i32_96 = arith.constant 1 : i32
    %c0_i32_97 = arith.constant 0 : i32
    %101 = tpu.memref_slice %arg2[%6, %c0_i32_97] : memref<64x128xf32, #tpu.memory_space<any>> -> memref<1x128xf32, #tpu.memory_space<any>>
    %c1_i32_98 = arith.constant 1 : i32
    %c0_i32_99 = arith.constant 0 : i32
    %102 = tpu.memref_slice %arg4[%c0_i32_94, %c1_i32_98, %c0_i32_99] : memref<2x8x128xf32, #tpu.memory_space<vmem>> -> memref<1x1x128xf32, #tpu.memory_space<vmem>>
    %103 = tpu.memref_squeeze %102 : memref<1x1x128xf32, #tpu.memory_space<vmem>> -> memref<1x128xf32, #tpu.memory_space<vmem>>
    %104 = tpu.memref_slice %arg5[%c0_i32_95, %c1_i32_96] : memref<2x8x!tpu.dma_semaphore, #tpu.memory_space<semaphore_mem>> -> memref<1x1x!tpu.dma_semaphore, #tpu.memory_space<semaphore_mem>>
    %105 = tpu.memref_squeeze %104 : memref<1x1x!tpu.dma_semaphore, #tpu.memory_space<semaphore_mem>> -> memref<!tpu.dma_semaphore, #tpu.memory_space<semaphore_mem>>
    tpu.wait_dma2 semaphore(%105 : memref<!tpu.dma_semaphore, #tpu.memory_space<semaphore_mem>>) src(%101 : memref<1x128xf32, #tpu.memory_space<any>>) dst(%103 : memref<1x128xf32, #tpu.memory_space<vmem>>)
    %c0_i32_100 = arith.constant 0 : i32
    %c0_i32_101 = arith.constant 0 : i32
    %c2_i32_102 = arith.constant 2 : i32
    %c0_i32_103 = arith.constant 0 : i32
    %106 = tpu.memref_slice %arg2[%12, %c0_i32_103] : memref<64x128xf32, #tpu.memory_space<any>> -> memref<1x128xf32, #tpu.memory_space<any>>
    %c2_i32_104 = arith.constant 2 : i32
    %c0_i32_105 = arith.constant 0 : i32
    %107 = tpu.memref_slice %arg4[%c0_i32_100, %c2_i32_104, %c0_i32_105] : memref<2x8x128xf32, #tpu.memory_space<vmem>> -> memref<1x1x128xf32, #tpu.memory_space<vmem>>
    %108 = tpu.memref_squeeze %107 : memref<1x1x128xf32, #tpu.memory_space<vmem>> -> memref<1x128xf32, #tpu.memory_space<vmem>>
    %109 = tpu.memref_slice %arg5[%c0_i32_101, %c2_i32_102] : memref<2x8x!tpu.dma_semaphore, #tpu.memory_space<semaphore_mem>> -> memref<1x1x!tpu.dma_semaphore, #tpu.memory_space<semaphore_mem>>
    %110 = tpu.memref_squeeze %109 : memref<1x1x!tpu.dma_semaphore, #tpu.memory_space<semaphore_mem>> -> memref<!tpu.dma_semaphore, #tpu.memory_space<semaphore_mem>>
    tpu.wait_dma2 semaphore(%110 : memref<!tpu.dma_semaphore, #tpu.memory_space<semaphore_mem>>) src(%106 : memref<1x128xf32, #tpu.memory_space<any>>) dst(%108 : memref<1x128xf32, #tpu.memory_space<vmem>>)
    %c0_i32_106 = arith.constant 0 : i32
    %c0_i32_107 = arith.constant 0 : i32
    %c3_i32_108 = arith.constant 3 : i32
    %c0_i32_109 = arith.constant 0 : i32
    %111 = tpu.memref_slice %arg2[%18, %c0_i32_109] : memref<64x128xf32, #tpu.memory_space<any>> -> memref<1x128xf32, #tpu.memory_space<any>>
    %c3_i32_110 = arith.constant 3 : i32
    %c0_i32_111 = arith.constant 0 : i32
    %112 = tpu.memref_slice %arg4[%c0_i32_106, %c3_i32_110, %c0_i32_111] : memref<2x8x128xf32, #tpu.memory_space<vmem>> -> memref<1x1x128xf32, #tpu.memory_space<vmem>>
    %113 = tpu.memref_squeeze %112 : memref<1x1x128xf32, #tpu.memory_space<vmem>> -> memref<1x128xf32, #tpu.memory_space<vmem>>
    %114 = tpu.memref_slice %arg5[%c0_i32_107, %c3_i32_108] : memref<2x8x!tpu.dma_semaphore, #tpu.memory_space<semaphore_mem>> -> memref<1x1x!tpu.dma_semaphore, #tpu.memory_space<semaphore_mem>>
    %115 = tpu.memref_squeeze %114 : memref<1x1x!tpu.dma_semaphore, #tpu.memory_space<semaphore_mem>> -> memref<!tpu.dma_semaphore, #tpu.memory_space<semaphore_mem>>
    tpu.wait_dma2 semaphore(%115 : memref<!tpu.dma_semaphore, #tpu.memory_space<semaphore_mem>>) src(%111 : memref<1x128xf32, #tpu.memory_space<any>>) dst(%113 : memref<1x128xf32, #tpu.memory_space<vmem>>)
    %c0_i32_112 = arith.constant 0 : i32
    %c0_i32_113 = arith.constant 0 : i32
    %c4_i32_114 = arith.constant 4 : i32
    %c0_i32_115 = arith.constant 0 : i32
    %116 = tpu.memref_slice %arg2[%24, %c0_i32_115] : memref<64x128xf32, #tpu.memory_space<any>> -> memref<1x128xf32, #tpu.memory_space<any>>
    %c4_i32_116 = arith.constant 4 : i32
    %c0_i32_117 = arith.constant 0 : i32
    %117 = tpu.memref_slice %arg4[%c0_i32_112, %c4_i32_116, %c0_i32_117] : memref<2x8x128xf32, #tpu.memory_space<vmem>> -> memref<1x1x128xf32, #tpu.memory_space<vmem>>
    %118 = tpu.memref_squeeze %117 : memref<1x1x128xf32, #tpu.memory_space<vmem>> -> memref<1x128xf32, #tpu.memory_space<vmem>>
    %119 = tpu.memref_slice %arg5[%c0_i32_113, %c4_i32_114] : memref<2x8x!tpu.dma_semaphore, #tpu.memory_space<semaphore_mem>> -> memref<1x1x!tpu.dma_semaphore, #tpu.memory_space<semaphore_mem>>
    %120 = tpu.memref_squeeze %119 : memref<1x1x!tpu.dma_semaphore, #tpu.memory_space<semaphore_mem>> -> memref<!tpu.dma_semaphore, #tpu.memory_space<semaphore_mem>>
    tpu.wait_dma2 semaphore(%120 : memref<!tpu.dma_semaphore, #tpu.memory_space<semaphore_mem>>) src(%116 : memref<1x128xf32, #tpu.memory_space<any>>) dst(%118 : memref<1x128xf32, #tpu.memory_space<vmem>>)
    %c0_i32_118 = arith.constant 0 : i32
    %c0_i32_119 = arith.constant 0 : i32
    %c5_i32_120 = arith.constant 5 : i32
    %c0_i32_121 = arith.constant 0 : i32
    %121 = tpu.memref_slice %arg2[%30, %c0_i32_121] : memref<64x128xf32, #tpu.memory_space<any>> -> memref<1x128xf32, #tpu.memory_space<any>>
    %c5_i32_122 = arith.constant 5 : i32
    %c0_i32_123 = arith.constant 0 : i32
    %122 = tpu.memref_slice %arg4[%c0_i32_118, %c5_i32_122, %c0_i32_123] : memref<2x8x128xf32, #tpu.memory_space<vmem>> -> memref<1x1x128xf32, #tpu.memory_space<vmem>>
    %123 = tpu.memref_squeeze %122 : memref<1x1x128xf32, #tpu.memory_space<vmem>> -> memref<1x128xf32, #tpu.memory_space<vmem>>
    %124 = tpu.memref_slice %arg5[%c0_i32_119, %c5_i32_120] : memref<2x8x!tpu.dma_semaphore, #tpu.memory_space<semaphore_mem>> -> memref<1x1x!tpu.dma_semaphore, #tpu.memory_space<semaphore_mem>>
    %125 = tpu.memref_squeeze %124 : memref<1x1x!tpu.dma_semaphore, #tpu.memory_space<semaphore_mem>> -> memref<!tpu.dma_semaphore, #tpu.memory_space<semaphore_mem>>
    tpu.wait_dma2 semaphore(%125 : memref<!tpu.dma_semaphore, #tpu.memory_space<semaphore_mem>>) src(%121 : memref<1x128xf32, #tpu.memory_space<any>>) dst(%123 : memref<1x128xf32, #tpu.memory_space<vmem>>)
    %c0_i32_124 = arith.constant 0 : i32
    %c0_i32_125 = arith.constant 0 : i32
    %c6_i32_126 = arith.constant 6 : i32
    %c0_i32_127 = arith.constant 0 : i32
    %126 = tpu.memref_slice %arg2[%36, %c0_i32_127] : memref<64x128xf32, #tpu.memory_space<any>> -> memref<1x128xf32, #tpu.memory_space<any>>
    %c6_i32_128 = arith.constant 6 : i32
    %c0_i32_129 = arith.constant 0 : i32
    %127 = tpu.memref_slice %arg4[%c0_i32_124, %c6_i32_128, %c0_i32_129] : memref<2x8x128xf32, #tpu.memory_space<vmem>> -> memref<1x1x128xf32, #tpu.memory_space<vmem>>
    %128 = tpu.memref_squeeze %127 : memref<1x1x128xf32, #tpu.memory_space<vmem>> -> memref<1x128xf32, #tpu.memory_space<vmem>>
    %129 = tpu.memref_slice %arg5[%c0_i32_125, %c6_i32_126] : memref<2x8x!tpu.dma_semaphore, #tpu.memory_space<semaphore_mem>> -> memref<1x1x!tpu.dma_semaphore, #tpu.memory_space<semaphore_mem>>
    %130 = tpu.memref_squeeze %129 : memref<1x1x!tpu.dma_semaphore, #tpu.memory_space<semaphore_mem>> -> memref<!tpu.dma_semaphore, #tpu.memory_space<semaphore_mem>>
    tpu.wait_dma2 semaphore(%130 : memref<!tpu.dma_semaphore, #tpu.memory_space<semaphore_mem>>) src(%126 : memref<1x128xf32, #tpu.memory_space<any>>) dst(%128 : memref<1x128xf32, #tpu.memory_space<vmem>>)
    %c0_i32_130 = arith.constant 0 : i32
    %c0_i32_131 = arith.constant 0 : i32
    %c7_i32_132 = arith.constant 7 : i32
    %c0_i32_133 = arith.constant 0 : i32
    %131 = tpu.memref_slice %arg2[%42, %c0_i32_133] : memref<64x128xf32, #tpu.memory_space<any>> -> memref<1x128xf32, #tpu.memory_space<any>>
    %c7_i32_134 = arith.constant 7 : i32
    %c0_i32_135 = arith.constant 0 : i32
    %132 = tpu.memref_slice %arg4[%c0_i32_130, %c7_i32_134, %c0_i32_135] : memref<2x8x128xf32, #tpu.memory_space<vmem>> -> memref<1x1x128xf32, #tpu.memory_space<vmem>>
    %133 = tpu.memref_squeeze %132 : memref<1x1x128xf32, #tpu.memory_space<vmem>> -> memref<1x128xf32, #tpu.memory_space<vmem>>
    %134 = tpu.memref_slice %arg5[%c0_i32_131, %c7_i32_132] : memref<2x8x!tpu.dma_semaphore, #tpu.memory_space<semaphore_mem>> -> memref<1x1x!tpu.dma_semaphore, #tpu.memory_space<semaphore_mem>>
    %135 = tpu.memref_squeeze %134 : memref<1x1x!tpu.dma_semaphore, #tpu.memory_space<semaphore_mem>> -> memref<!tpu.dma_semaphore, #tpu.memory_space<semaphore_mem>>
    tpu.wait_dma2 semaphore(%135 : memref<!tpu.dma_semaphore, #tpu.memory_space<semaphore_mem>>) src(%131 : memref<1x128xf32, #tpu.memory_space<any>>) dst(%133 : memref<1x128xf32, #tpu.memory_space<vmem>>)
    %c0_136 = arith.constant 0 : index
    %c0_137 = arith.constant 0 : index
    %c0_138 = arith.constant 0 : index
    %136 = vector.load %arg4[%c0_136, %c0_137, %c0_138] : memref<2x8x128xf32, #tpu.memory_space<vmem>>, vector<1x8x128xf32>
    %137 = vector.shape_cast %136 : vector<1x8x128xf32> to vector<8x128xf32>
    %c2 = arith.constant 2 : index
    %138 = memref.load %arg1[%c2] : memref<32xi32, #tpu.memory_space<smem>>
    %c0_i32_139 = arith.constant 0 : i32
    %c0_i32_140 = arith.constant 0 : i32
    %c0_i32_141 = arith.constant 0 : i32
    %c0_i32_142 = arith.constant 0 : i32
    %139 = tpu.memref_slice %arg2[%138, %c0_i32_142] : memref<64x128xf32, #tpu.memory_space<any>> -> memref<1x128xf32, #tpu.memory_space<any>>
    %c0_i32_143 = arith.constant 0 : i32
    %c0_i32_144 = arith.constant 0 : i32
    %140 = tpu.memref_slice %arg4[%c0_i32_139, %c0_i32_143, %c0_i32_144] : memref<2x8x128xf32, #tpu.memory_space<vmem>> -> memref<1x1x128xf32, #tpu.memory_space<vmem>>
    %141 = tpu.memref_squeeze %140 : memref<1x1x128xf32, #tpu.memory_space<vmem>> -> memref<1x128xf32, #tpu.memory_space<vmem>>
    %142 = tpu.memref_slice %arg5[%c0_i32_140, %c0_i32_141] : memref<2x8x!tpu.dma_semaphore, #tpu.memory_space<semaphore_mem>> -> memref<1x1x!tpu.dma_semaphore, #tpu.memory_space<semaphore_mem>>
    %143 = tpu.memref_squeeze %142 : memref<1x1x!tpu.dma_semaphore, #tpu.memory_space<semaphore_mem>> -> memref<!tpu.dma_semaphore, #tpu.memory_space<semaphore_mem>>
    tpu.enqueue_dma source(%139 : memref<1x128xf32, #tpu.memory_space<any>>) target(%141 : memref<1x128xf32, #tpu.memory_space<vmem>>) target_semaphore(%143 : memref<!tpu.dma_semaphore, #tpu.memory_space<semaphore_mem>>)
    %c6 = arith.constant 6 : index
    %144 = memref.load %arg1[%c6] : memref<32xi32, #tpu.memory_space<smem>>
    %c0_i32_145 = arith.constant 0 : i32
    %c0_i32_146 = arith.constant 0 : i32
    %c1_i32_147 = arith.constant 1 : i32
    %c0_i32_148 = arith.constant 0 : i32
    %145 = tpu.memref_slice %arg2[%144, %c0_i32_148] : memref<64x128xf32, #tpu.memory_space<any>> -> memref<1x128xf32, #tpu.memory_space<any>>
    %c1_i32_149 = arith.constant 1 : i32
    %c0_i32_150 = arith.constant 0 : i32
    %146 = tpu.memref_slice %arg4[%c0_i32_145, %c1_i32_149, %c0_i32_150] : memref<2x8x128xf32, #tpu.memory_space<vmem>> -> memref<1x1x128xf32, #tpu.memory_space<vmem>>
    %147 = tpu.memref_squeeze %146 : memref<1x1x128xf32, #tpu.memory_space<vmem>> -> memref<1x128xf32, #tpu.memory_space<vmem>>
    %148 = tpu.memref_slice %arg5[%c0_i32_146, %c1_i32_147] : memref<2x8x!tpu.dma_semaphore, #tpu.memory_space<semaphore_mem>> -> memref<1x1x!tpu.dma_semaphore, #tpu.memory_space<semaphore_mem>>
    %149 = tpu.memref_squeeze %148 : memref<1x1x!tpu.dma_semaphore, #tpu.memory_space<semaphore_mem>> -> memref<!tpu.dma_semaphore, #tpu.memory_space<semaphore_mem>>
    tpu.enqueue_dma source(%145 : memref<1x128xf32, #tpu.memory_space<any>>) target(%147 : memref<1x128xf32, #tpu.memory_space<vmem>>) target_semaphore(%149 : memref<!tpu.dma_semaphore, #tpu.memory_space<semaphore_mem>>)
    %c10 = arith.constant 10 : index
    %150 = memref.load %arg1[%c10] : memref<32xi32, #tpu.memory_space<smem>>
    %c0_i32_151 = arith.constant 0 : i32
    %c0_i32_152 = arith.constant 0 : i32
    %c2_i32_153 = arith.constant 2 : i32
    %c0_i32_154 = arith.constant 0 : i32
    %151 = tpu.memref_slice %arg2[%150, %c0_i32_154] : memref<64x128xf32, #tpu.memory_space<any>> -> memref<1x128xf32, #tpu.memory_space<any>>
    %c2_i32_155 = arith.constant 2 : i32
    %c0_i32_156 = arith.constant 0 : i32
    %152 = tpu.memref_slice %arg4[%c0_i32_151, %c2_i32_155, %c0_i32_156] : memref<2x8x128xf32, #tpu.memory_space<vmem>> -> memref<1x1x128xf32, #tpu.memory_space<vmem>>
    %153 = tpu.memref_squeeze %152 : memref<1x1x128xf32, #tpu.memory_space<vmem>> -> memref<1x128xf32, #tpu.memory_space<vmem>>
    %154 = tpu.memref_slice %arg5[%c0_i32_152, %c2_i32_153] : memref<2x8x!tpu.dma_semaphore, #tpu.memory_space<semaphore_mem>> -> memref<1x1x!tpu.dma_semaphore, #tpu.memory_space<semaphore_mem>>
    %155 = tpu.memref_squeeze %154 : memref<1x1x!tpu.dma_semaphore, #tpu.memory_space<semaphore_mem>> -> memref<!tpu.dma_semaphore, #tpu.memory_space<semaphore_mem>>
    tpu.enqueue_dma source(%151 : memref<1x128xf32, #tpu.memory_space<any>>) target(%153 : memref<1x128xf32, #tpu.memory_space<vmem>>) target_semaphore(%155 : memref<!tpu.dma_semaphore, #tpu.memory_space<semaphore_mem>>)
    %c14 = arith.constant 14 : index
    %156 = memref.load %arg1[%c14] : memref<32xi32, #tpu.memory_space<smem>>
    %c0_i32_157 = arith.constant 0 : i32
    %c0_i32_158 = arith.constant 0 : i32
    %c3_i32_159 = arith.constant 3 : i32
    %c0_i32_160 = arith.constant 0 : i32
    %157 = tpu.memref_slice %arg2[%156, %c0_i32_160] : memref<64x128xf32, #tpu.memory_space<any>> -> memref<1x128xf32, #tpu.memory_space<any>>
    %c3_i32_161 = arith.constant 3 : i32
    %c0_i32_162 = arith.constant 0 : i32
    %158 = tpu.memref_slice %arg4[%c0_i32_157, %c3_i32_161, %c0_i32_162] : memref<2x8x128xf32, #tpu.memory_space<vmem>> -> memref<1x1x128xf32, #tpu.memory_space<vmem>>
    %159 = tpu.memref_squeeze %158 : memref<1x1x128xf32, #tpu.memory_space<vmem>> -> memref<1x128xf32, #tpu.memory_space<vmem>>
    %160 = tpu.memref_slice %arg5[%c0_i32_158, %c3_i32_159] : memref<2x8x!tpu.dma_semaphore, #tpu.memory_space<semaphore_mem>> -> memref<1x1x!tpu.dma_semaphore, #tpu.memory_space<semaphore_mem>>
    %161 = tpu.memref_squeeze %160 : memref<1x1x!tpu.dma_semaphore, #tpu.memory_space<semaphore_mem>> -> memref<!tpu.dma_semaphore, #tpu.memory_space<semaphore_mem>>
    tpu.enqueue_dma source(%157 : memref<1x128xf32, #tpu.memory_space<any>>) target(%159 : memref<1x128xf32, #tpu.memory_space<vmem>>) target_semaphore(%161 : memref<!tpu.dma_semaphore, #tpu.memory_space<semaphore_mem>>)
    %c18 = arith.constant 18 : index
    %162 = memref.load %arg1[%c18] : memref<32xi32, #tpu.memory_space<smem>>
    %c0_i32_163 = arith.constant 0 : i32
    %c0_i32_164 = arith.constant 0 : i32
    %c4_i32_165 = arith.constant 4 : i32
    %c0_i32_166 = arith.constant 0 : i32
    %163 = tpu.memref_slice %arg2[%162, %c0_i32_166] : memref<64x128xf32, #tpu.memory_space<any>> -> memref<1x128xf32, #tpu.memory_space<any>>
    %c4_i32_167 = arith.constant 4 : i32
    %c0_i32_168 = arith.constant 0 : i32
    %164 = tpu.memref_slice %arg4[%c0_i32_163, %c4_i32_167, %c0_i32_168] : memref<2x8x128xf32, #tpu.memory_space<vmem>> -> memref<1x1x128xf32, #tpu.memory_space<vmem>>
    %165 = tpu.memref_squeeze %164 : memref<1x1x128xf32, #tpu.memory_space<vmem>> -> memref<1x128xf32, #tpu.memory_space<vmem>>
    %166 = tpu.memref_slice %arg5[%c0_i32_164, %c4_i32_165] : memref<2x8x!tpu.dma_semaphore, #tpu.memory_space<semaphore_mem>> -> memref<1x1x!tpu.dma_semaphore, #tpu.memory_space<semaphore_mem>>
    %167 = tpu.memref_squeeze %166 : memref<1x1x!tpu.dma_semaphore, #tpu.memory_space<semaphore_mem>> -> memref<!tpu.dma_semaphore, #tpu.memory_space<semaphore_mem>>
    tpu.enqueue_dma source(%163 : memref<1x128xf32, #tpu.memory_space<any>>) target(%165 : memref<1x128xf32, #tpu.memory_space<vmem>>) target_semaphore(%167 : memref<!tpu.dma_semaphore, #tpu.memory_space<semaphore_mem>>)
    %c22 = arith.constant 22 : index
    %168 = memref.load %arg1[%c22] : memref<32xi32, #tpu.memory_space<smem>>
    %c0_i32_169 = arith.constant 0 : i32
    %c0_i32_170 = arith.constant 0 : i32
    %c5_i32_171 = arith.constant 5 : i32
    %c0_i32_172 = arith.constant 0 : i32
    %169 = tpu.memref_slice %arg2[%168, %c0_i32_172] : memref<64x128xf32, #tpu.memory_space<any>> -> memref<1x128xf32, #tpu.memory_space<any>>
    %c5_i32_173 = arith.constant 5 : i32
    %c0_i32_174 = arith.constant 0 : i32
    %170 = tpu.memref_slice %arg4[%c0_i32_169, %c5_i32_173, %c0_i32_174] : memref<2x8x128xf32, #tpu.memory_space<vmem>> -> memref<1x1x128xf32, #tpu.memory_space<vmem>>
    %171 = tpu.memref_squeeze %170 : memref<1x1x128xf32, #tpu.memory_space<vmem>> -> memref<1x128xf32, #tpu.memory_space<vmem>>
    %172 = tpu.memref_slice %arg5[%c0_i32_170, %c5_i32_171] : memref<2x8x!tpu.dma_semaphore, #tpu.memory_space<semaphore_mem>> -> memref<1x1x!tpu.dma_semaphore, #tpu.memory_space<semaphore_mem>>
    %173 = tpu.memref_squeeze %172 : memref<1x1x!tpu.dma_semaphore, #tpu.memory_space<semaphore_mem>> -> memref<!tpu.dma_semaphore, #tpu.memory_space<semaphore_mem>>
    tpu.enqueue_dma source(%169 : memref<1x128xf32, #tpu.memory_space<any>>) target(%171 : memref<1x128xf32, #tpu.memory_space<vmem>>) target_semaphore(%173 : memref<!tpu.dma_semaphore, #tpu.memory_space<semaphore_mem>>)
    %c26 = arith.constant 26 : index
    %174 = memref.load %arg1[%c26] : memref<32xi32, #tpu.memory_space<smem>>
    %c0_i32_175 = arith.constant 0 : i32
    %c0_i32_176 = arith.constant 0 : i32
    %c6_i32_177 = arith.constant 6 : i32
    %c0_i32_178 = arith.constant 0 : i32
    %175 = tpu.memref_slice %arg2[%174, %c0_i32_178] : memref<64x128xf32, #tpu.memory_space<any>> -> memref<1x128xf32, #tpu.memory_space<any>>
    %c6_i32_179 = arith.constant 6 : i32
    %c0_i32_180 = arith.constant 0 : i32
    %176 = tpu.memref_slice %arg4[%c0_i32_175, %c6_i32_179, %c0_i32_180] : memref<2x8x128xf32, #tpu.memory_space<vmem>> -> memref<1x1x128xf32, #tpu.memory_space<vmem>>
    %177 = tpu.memref_squeeze %176 : memref<1x1x128xf32, #tpu.memory_space<vmem>> -> memref<1x128xf32, #tpu.memory_space<vmem>>
    %178 = tpu.memref_slice %arg5[%c0_i32_176, %c6_i32_177] : memref<2x8x!tpu.dma_semaphore, #tpu.memory_space<semaphore_mem>> -> memref<1x1x!tpu.dma_semaphore, #tpu.memory_space<semaphore_mem>>
    %179 = tpu.memref_squeeze %178 : memref<1x1x!tpu.dma_semaphore, #tpu.memory_space<semaphore_mem>> -> memref<!tpu.dma_semaphore, #tpu.memory_space<semaphore_mem>>
    tpu.enqueue_dma source(%175 : memref<1x128xf32, #tpu.memory_space<any>>) target(%177 : memref<1x128xf32, #tpu.memory_space<vmem>>) target_semaphore(%179 : memref<!tpu.dma_semaphore, #tpu.memory_space<semaphore_mem>>)
    %c30 = arith.constant 30 : index
    %180 = memref.load %arg1[%c30] : memref<32xi32, #tpu.memory_space<smem>>
    %c0_i32_181 = arith.constant 0 : i32
    %c0_i32_182 = arith.constant 0 : i32
    %c7_i32_183 = arith.constant 7 : i32
    %c0_i32_184 = arith.constant 0 : i32
    %181 = tpu.memref_slice %arg2[%180, %c0_i32_184] : memref<64x128xf32, #tpu.memory_space<any>> -> memref<1x128xf32, #tpu.memory_space<any>>
    %c7_i32_185 = arith.constant 7 : i32
    %c0_i32_186 = arith.constant 0 : i32
    %182 = tpu.memref_slice %arg4[%c0_i32_181, %c7_i32_185, %c0_i32_186] : memref<2x8x128xf32, #tpu.memory_space<vmem>> -> memref<1x1x128xf32, #tpu.memory_space<vmem>>
    %183 = tpu.memref_squeeze %182 : memref<1x1x128xf32, #tpu.memory_space<vmem>> -> memref<1x128xf32, #tpu.memory_space<vmem>>
    %184 = tpu.memref_slice %arg5[%c0_i32_182, %c7_i32_183] : memref<2x8x!tpu.dma_semaphore, #tpu.memory_space<semaphore_mem>> -> memref<1x1x!tpu.dma_semaphore, #tpu.memory_space<semaphore_mem>>
    %185 = tpu.memref_squeeze %184 : memref<1x1x!tpu.dma_semaphore, #tpu.memory_space<semaphore_mem>> -> memref<!tpu.dma_semaphore, #tpu.memory_space<semaphore_mem>>
    tpu.enqueue_dma source(%181 : memref<1x128xf32, #tpu.memory_space<any>>) target(%183 : memref<1x128xf32, #tpu.memory_space<vmem>>) target_semaphore(%185 : memref<!tpu.dma_semaphore, #tpu.memory_space<semaphore_mem>>)
    %c1_i32_187 = arith.constant 1 : i32
    %c1_i32_188 = arith.constant 1 : i32
    %c0_i32_189 = arith.constant 0 : i32
    %c0_i32_190 = arith.constant 0 : i32
    %186 = tpu.memref_slice %arg2[%48, %c0_i32_190] : memref<64x128xf32, #tpu.memory_space<any>> -> memref<1x128xf32, #tpu.memory_space<any>>
    %c0_i32_191 = arith.constant 0 : i32
    %c0_i32_192 = arith.constant 0 : i32
    %187 = tpu.memref_slice %arg4[%c1_i32_187, %c0_i32_191, %c0_i32_192] : memref<2x8x128xf32, #tpu.memory_space<vmem>> -> memref<1x1x128xf32, #tpu.memory_space<vmem>>
    %188 = tpu.memref_squeeze %187 : memref<1x1x128xf32, #tpu.memory_space<vmem>> -> memref<1x128xf32, #tpu.memory_space<vmem>>
    %189 = tpu.memref_slice %arg5[%c1_i32_188, %c0_i32_189] : memref<2x8x!tpu.dma_semaphore, #tpu.memory_space<semaphore_mem>> -> memref<1x1x!tpu.dma_semaphore, #tpu.memory_space<semaphore_mem>>
    %190 = tpu.memref_squeeze %189 : memref<1x1x!tpu.dma_semaphore, #tpu.memory_space<semaphore_mem>> -> memref<!tpu.dma_semaphore, #tpu.memory_space<semaphore_mem>>
    tpu.wait_dma2 semaphore(%190 : memref<!tpu.dma_semaphore, #tpu.memory_space<semaphore_mem>>) src(%186 : memref<1x128xf32, #tpu.memory_space<any>>) dst(%188 : memref<1x128xf32, #tpu.memory_space<vmem>>)
    %c1_i32_193 = arith.constant 1 : i32
    %c1_i32_194 = arith.constant 1 : i32
    %c1_i32_195 = arith.constant 1 : i32
    %c0_i32_196 = arith.constant 0 : i32
    %191 = tpu.memref_slice %arg2[%54, %c0_i32_196] : memref<64x128xf32, #tpu.memory_space<any>> -> memref<1x128xf32, #tpu.memory_space<any>>
    %c1_i32_197 = arith.constant 1 : i32
    %c0_i32_198 = arith.constant 0 : i32
    %192 = tpu.memref_slice %arg4[%c1_i32_193, %c1_i32_197, %c0_i32_198] : memref<2x8x128xf32, #tpu.memory_space<vmem>> -> memref<1x1x128xf32, #tpu.memory_space<vmem>>
    %193 = tpu.memref_squeeze %192 : memref<1x1x128xf32, #tpu.memory_space<vmem>> -> memref<1x128xf32, #tpu.memory_space<vmem>>
    %194 = tpu.memref_slice %arg5[%c1_i32_194, %c1_i32_195] : memref<2x8x!tpu.dma_semaphore, #tpu.memory_space<semaphore_mem>> -> memref<1x1x!tpu.dma_semaphore, #tpu.memory_space<semaphore_mem>>
    %195 = tpu.memref_squeeze %194 : memref<1x1x!tpu.dma_semaphore, #tpu.memory_space<semaphore_mem>> -> memref<!tpu.dma_semaphore, #tpu.memory_space<semaphore_mem>>
    tpu.wait_dma2 semaphore(%195 : memref<!tpu.dma_semaphore, #tpu.memory_space<semaphore_mem>>) src(%191 : memref<1x128xf32, #tpu.memory_space<any>>) dst(%193 : memref<1x128xf32, #tpu.memory_space<vmem>>)
    %c1_i32_199 = arith.constant 1 : i32
    %c1_i32_200 = arith.constant 1 : i32
    %c2_i32_201 = arith.constant 2 : i32
    %c0_i32_202 = arith.constant 0 : i32
    %196 = tpu.memref_slice %arg2[%60, %c0_i32_202] : memref<64x128xf32, #tpu.memory_space<any>> -> memref<1x128xf32, #tpu.memory_space<any>>
    %c2_i32_203 = arith.constant 2 : i32
    %c0_i32_204 = arith.constant 0 : i32
    %197 = tpu.memref_slice %arg4[%c1_i32_199, %c2_i32_203, %c0_i32_204] : memref<2x8x128xf32, #tpu.memory_space<vmem>> -> memref<1x1x128xf32, #tpu.memory_space<vmem>>
    %198 = tpu.memref_squeeze %197 : memref<1x1x128xf32, #tpu.memory_space<vmem>> -> memref<1x128xf32, #tpu.memory_space<vmem>>
    %199 = tpu.memref_slice %arg5[%c1_i32_200, %c2_i32_201] : memref<2x8x!tpu.dma_semaphore, #tpu.memory_space<semaphore_mem>> -> memref<1x1x!tpu.dma_semaphore, #tpu.memory_space<semaphore_mem>>
    %200 = tpu.memref_squeeze %199 : memref<1x1x!tpu.dma_semaphore, #tpu.memory_space<semaphore_mem>> -> memref<!tpu.dma_semaphore, #tpu.memory_space<semaphore_mem>>
    tpu.wait_dma2 semaphore(%200 : memref<!tpu.dma_semaphore, #tpu.memory_space<semaphore_mem>>) src(%196 : memref<1x128xf32, #tpu.memory_space<any>>) dst(%198 : memref<1x128xf32, #tpu.memory_space<vmem>>)
    %c1_i32_205 = arith.constant 1 : i32
    %c1_i32_206 = arith.constant 1 : i32
    %c3_i32_207 = arith.constant 3 : i32
    %c0_i32_208 = arith.constant 0 : i32
    %201 = tpu.memref_slice %arg2[%66, %c0_i32_208] : memref<64x128xf32, #tpu.memory_space<any>> -> memref<1x128xf32, #tpu.memory_space<any>>
    %c3_i32_209 = arith.constant 3 : i32
    %c0_i32_210 = arith.constant 0 : i32
    %202 = tpu.memref_slice %arg4[%c1_i32_205, %c3_i32_209, %c0_i32_210] : memref<2x8x128xf32, #tpu.memory_space<vmem>> -> memref<1x1x128xf32, #tpu.memory_space<vmem>>
    %203 = tpu.memref_squeeze %202 : memref<1x1x128xf32, #tpu.memory_space<vmem>> -> memref<1x128xf32, #tpu.memory_space<vmem>>
    %204 = tpu.memref_slice %arg5[%c1_i32_206, %c3_i32_207] : memref<2x8x!tpu.dma_semaphore, #tpu.memory_space<semaphore_mem>> -> memref<1x1x!tpu.dma_semaphore, #tpu.memory_space<semaphore_mem>>
    %205 = tpu.memref_squeeze %204 : memref<1x1x!tpu.dma_semaphore, #tpu.memory_space<semaphore_mem>> -> memref<!tpu.dma_semaphore, #tpu.memory_space<semaphore_mem>>
    tpu.wait_dma2 semaphore(%205 : memref<!tpu.dma_semaphore, #tpu.memory_space<semaphore_mem>>) src(%201 : memref<1x128xf32, #tpu.memory_space<any>>) dst(%203 : memref<1x128xf32, #tpu.memory_space<vmem>>)
    %c1_i32_211 = arith.constant 1 : i32
    %c1_i32_212 = arith.constant 1 : i32
    %c4_i32_213 = arith.constant 4 : i32
    %c0_i32_214 = arith.constant 0 : i32
    %206 = tpu.memref_slice %arg2[%72, %c0_i32_214] : memref<64x128xf32, #tpu.memory_space<any>> -> memref<1x128xf32, #tpu.memory_space<any>>
    %c4_i32_215 = arith.constant 4 : i32
    %c0_i32_216 = arith.constant 0 : i32
    %207 = tpu.memref_slice %arg4[%c1_i32_211, %c4_i32_215, %c0_i32_216] : memref<2x8x128xf32, #tpu.memory_space<vmem>> -> memref<1x1x128xf32, #tpu.memory_space<vmem>>
    %208 = tpu.memref_squeeze %207 : memref<1x1x128xf32, #tpu.memory_space<vmem>> -> memref<1x128xf32, #tpu.memory_space<vmem>>
    %209 = tpu.memref_slice %arg5[%c1_i32_212, %c4_i32_213] : memref<2x8x!tpu.dma_semaphore, #tpu.memory_space<semaphore_mem>> -> memref<1x1x!tpu.dma_semaphore, #tpu.memory_space<semaphore_mem>>
    %210 = tpu.memref_squeeze %209 : memref<1x1x!tpu.dma_semaphore, #tpu.memory_space<semaphore_mem>> -> memref<!tpu.dma_semaphore, #tpu.memory_space<semaphore_mem>>
    tpu.wait_dma2 semaphore(%210 : memref<!tpu.dma_semaphore, #tpu.memory_space<semaphore_mem>>) src(%206 : memref<1x128xf32, #tpu.memory_space<any>>) dst(%208 : memref<1x128xf32, #tpu.memory_space<vmem>>)
    %c1_i32_217 = arith.constant 1 : i32
    %c1_i32_218 = arith.constant 1 : i32
    %c5_i32_219 = arith.constant 5 : i32
    %c0_i32_220 = arith.constant 0 : i32
    %211 = tpu.memref_slice %arg2[%78, %c0_i32_220] : memref<64x128xf32, #tpu.memory_space<any>> -> memref<1x128xf32, #tpu.memory_space<any>>
    %c5_i32_221 = arith.constant 5 : i32
    %c0_i32_222 = arith.constant 0 : i32
    %212 = tpu.memref_slice %arg4[%c1_i32_217, %c5_i32_221, %c0_i32_222] : memref<2x8x128xf32, #tpu.memory_space<vmem>> -> memref<1x1x128xf32, #tpu.memory_space<vmem>>
    %213 = tpu.memref_squeeze %212 : memref<1x1x128xf32, #tpu.memory_space<vmem>> -> memref<1x128xf32, #tpu.memory_space<vmem>>
    %214 = tpu.memref_slice %arg5[%c1_i32_218, %c5_i32_219] : memref<2x8x!tpu.dma_semaphore, #tpu.memory_space<semaphore_mem>> -> memref<1x1x!tpu.dma_semaphore, #tpu.memory_space<semaphore_mem>>
    %215 = tpu.memref_squeeze %214 : memref<1x1x!tpu.dma_semaphore, #tpu.memory_space<semaphore_mem>> -> memref<!tpu.dma_semaphore, #tpu.memory_space<semaphore_mem>>
    tpu.wait_dma2 semaphore(%215 : memref<!tpu.dma_semaphore, #tpu.memory_space<semaphore_mem>>) src(%211 : memref<1x128xf32, #tpu.memory_space<any>>) dst(%213 : memref<1x128xf32, #tpu.memory_space<vmem>>)
    %c1_i32_223 = arith.constant 1 : i32
    %c1_i32_224 = arith.constant 1 : i32
    %c6_i32_225 = arith.constant 6 : i32
    %c0_i32_226 = arith.constant 0 : i32
    %216 = tpu.memref_slice %arg2[%84, %c0_i32_226] : memref<64x128xf32, #tpu.memory_space<any>> -> memref<1x128xf32, #tpu.memory_space<any>>
    %c6_i32_227 = arith.constant 6 : i32
    %c0_i32_228 = arith.constant 0 : i32
    %217 = tpu.memref_slice %arg4[%c1_i32_223, %c6_i32_227, %c0_i32_228] : memref<2x8x128xf32, #tpu.memory_space<vmem>> -> memref<1x1x128xf32, #tpu.memory_space<vmem>>
    %218 = tpu.memref_squeeze %217 : memref<1x1x128xf32, #tpu.memory_space<vmem>> -> memref<1x128xf32, #tpu.memory_space<vmem>>
    %219 = tpu.memref_slice %arg5[%c1_i32_224, %c6_i32_225] : memref<2x8x!tpu.dma_semaphore, #tpu.memory_space<semaphore_mem>> -> memref<1x1x!tpu.dma_semaphore, #tpu.memory_space<semaphore_mem>>
    %220 = tpu.memref_squeeze %219 : memref<1x1x!tpu.dma_semaphore, #tpu.memory_space<semaphore_mem>> -> memref<!tpu.dma_semaphore, #tpu.memory_space<semaphore_mem>>
    tpu.wait_dma2 semaphore(%220 : memref<!tpu.dma_semaphore, #tpu.memory_space<semaphore_mem>>) src(%216 : memref<1x128xf32, #tpu.memory_space<any>>) dst(%218 : memref<1x128xf32, #tpu.memory_space<vmem>>)
    %c1_i32_229 = arith.constant 1 : i32
    %c1_i32_230 = arith.constant 1 : i32
    %c7_i32_231 = arith.constant 7 : i32
    %c0_i32_232 = arith.constant 0 : i32
    %221 = tpu.memref_slice %arg2[%90, %c0_i32_232] : memref<64x128xf32, #tpu.memory_space<any>> -> memref<1x128xf32, #tpu.memory_space<any>>
    %c7_i32_233 = arith.constant 7 : i32
    %c0_i32_234 = arith.constant 0 : i32
    %222 = tpu.memref_slice %arg4[%c1_i32_229, %c7_i32_233, %c0_i32_234] : memref<2x8x128xf32, #tpu.memory_space<vmem>> -> memref<1x1x128xf32, #tpu.memory_space<vmem>>
    %223 = tpu.memref_squeeze %222 : memref<1x1x128xf32, #tpu.memory_space<vmem>> -> memref<1x128xf32, #tpu.memory_space<vmem>>
    %224 = tpu.memref_slice %arg5[%c1_i32_230, %c7_i32_231] : memref<2x8x!tpu.dma_semaphore, #tpu.memory_space<semaphore_mem>> -> memref<1x1x!tpu.dma_semaphore, #tpu.memory_space<semaphore_mem>>
    %225 = tpu.memref_squeeze %224 : memref<1x1x!tpu.dma_semaphore, #tpu.memory_space<semaphore_mem>> -> memref<!tpu.dma_semaphore, #tpu.memory_space<semaphore_mem>>
    tpu.wait_dma2 semaphore(%225 : memref<!tpu.dma_semaphore, #tpu.memory_space<semaphore_mem>>) src(%221 : memref<1x128xf32, #tpu.memory_space<any>>) dst(%223 : memref<1x128xf32, #tpu.memory_space<vmem>>)
    %c1_235 = arith.constant 1 : index
    %c0_236 = arith.constant 0 : index
    %c0_237 = arith.constant 0 : index
    %226 = vector.load %arg4[%c1_235, %c0_236, %c0_237] : memref<2x8x128xf32, #tpu.memory_space<vmem>>, vector<1x8x128xf32>
    %227 = vector.shape_cast %226 : vector<1x8x128xf32> to vector<8x128xf32>
    %228 = arith.addf %137, %227 : vector<8x128xf32>
    %c3 = arith.constant 3 : index
    %229 = memref.load %arg1[%c3] : memref<32xi32, #tpu.memory_space<smem>>
    %c1_i32_238 = arith.constant 1 : i32
    %c1_i32_239 = arith.constant 1 : i32
    %c0_i32_240 = arith.constant 0 : i32
    %c0_i32_241 = arith.constant 0 : i32
    %230 = tpu.memref_slice %arg2[%229, %c0_i32_241] : memref<64x128xf32, #tpu.memory_space<any>> -> memref<1x128xf32, #tpu.memory_space<any>>
    %c0_i32_242 = arith.constant 0 : i32
    %c0_i32_243 = arith.constant 0 : i32
    %231 = tpu.memref_slice %arg4[%c1_i32_238, %c0_i32_242, %c0_i32_243] : memref<2x8x128xf32, #tpu.memory_space<vmem>> -> memref<1x1x128xf32, #tpu.memory_space<vmem>>
    %232 = tpu.memref_squeeze %231 : memref<1x1x128xf32, #tpu.memory_space<vmem>> -> memref<1x128xf32, #tpu.memory_space<vmem>>
    %233 = tpu.memref_slice %arg5[%c1_i32_239, %c0_i32_240] : memref<2x8x!tpu.dma_semaphore, #tpu.memory_space<semaphore_mem>> -> memref<1x1x!tpu.dma_semaphore, #tpu.memory_space<semaphore_mem>>
    %234 = tpu.memref_squeeze %233 : memref<1x1x!tpu.dma_semaphore, #tpu.memory_space<semaphore_mem>> -> memref<!tpu.dma_semaphore, #tpu.memory_space<semaphore_mem>>
    tpu.enqueue_dma source(%230 : memref<1x128xf32, #tpu.memory_space<any>>) target(%232 : memref<1x128xf32, #tpu.memory_space<vmem>>) target_semaphore(%234 : memref<!tpu.dma_semaphore, #tpu.memory_space<semaphore_mem>>)
    %c7 = arith.constant 7 : index
    %235 = memref.load %arg1[%c7] : memref<32xi32, #tpu.memory_space<smem>>
    %c1_i32_244 = arith.constant 1 : i32
    %c1_i32_245 = arith.constant 1 : i32
    %c1_i32_246 = arith.constant 1 : i32
    %c0_i32_247 = arith.constant 0 : i32
    %236 = tpu.memref_slice %arg2[%235, %c0_i32_247] : memref<64x128xf32, #tpu.memory_space<any>> -> memref<1x128xf32, #tpu.memory_space<any>>
    %c1_i32_248 = arith.constant 1 : i32
    %c0_i32_249 = arith.constant 0 : i32
    %237 = tpu.memref_slice %arg4[%c1_i32_244, %c1_i32_248, %c0_i32_249] : memref<2x8x128xf32, #tpu.memory_space<vmem>> -> memref<1x1x128xf32, #tpu.memory_space<vmem>>
    %238 = tpu.memref_squeeze %237 : memref<1x1x128xf32, #tpu.memory_space<vmem>> -> memref<1x128xf32, #tpu.memory_space<vmem>>
    %239 = tpu.memref_slice %arg5[%c1_i32_245, %c1_i32_246] : memref<2x8x!tpu.dma_semaphore, #tpu.memory_space<semaphore_mem>> -> memref<1x1x!tpu.dma_semaphore, #tpu.memory_space<semaphore_mem>>
    %240 = tpu.memref_squeeze %239 : memref<1x1x!tpu.dma_semaphore, #tpu.memory_space<semaphore_mem>> -> memref<!tpu.dma_semaphore, #tpu.memory_space<semaphore_mem>>
    tpu.enqueue_dma source(%236 : memref<1x128xf32, #tpu.memory_space<any>>) target(%238 : memref<1x128xf32, #tpu.memory_space<vmem>>) target_semaphore(%240 : memref<!tpu.dma_semaphore, #tpu.memory_space<semaphore_mem>>)
    %c11 = arith.constant 11 : index
    %241 = memref.load %arg1[%c11] : memref<32xi32, #tpu.memory_space<smem>>
    %c1_i32_250 = arith.constant 1 : i32
    %c1_i32_251 = arith.constant 1 : i32
    %c2_i32_252 = arith.constant 2 : i32
    %c0_i32_253 = arith.constant 0 : i32
    %242 = tpu.memref_slice %arg2[%241, %c0_i32_253] : memref<64x128xf32, #tpu.memory_space<any>> -> memref<1x128xf32, #tpu.memory_space<any>>
    %c2_i32_254 = arith.constant 2 : i32
    %c0_i32_255 = arith.constant 0 : i32
    %243 = tpu.memref_slice %arg4[%c1_i32_250, %c2_i32_254, %c0_i32_255] : memref<2x8x128xf32, #tpu.memory_space<vmem>> -> memref<1x1x128xf32, #tpu.memory_space<vmem>>
    %244 = tpu.memref_squeeze %243 : memref<1x1x128xf32, #tpu.memory_space<vmem>> -> memref<1x128xf32, #tpu.memory_space<vmem>>
    %245 = tpu.memref_slice %arg5[%c1_i32_251, %c2_i32_252] : memref<2x8x!tpu.dma_semaphore, #tpu.memory_space<semaphore_mem>> -> memref<1x1x!tpu.dma_semaphore, #tpu.memory_space<semaphore_mem>>
    %246 = tpu.memref_squeeze %245 : memref<1x1x!tpu.dma_semaphore, #tpu.memory_space<semaphore_mem>> -> memref<!tpu.dma_semaphore, #tpu.memory_space<semaphore_mem>>
    tpu.enqueue_dma source(%242 : memref<1x128xf32, #tpu.memory_space<any>>) target(%244 : memref<1x128xf32, #tpu.memory_space<vmem>>) target_semaphore(%246 : memref<!tpu.dma_semaphore, #tpu.memory_space<semaphore_mem>>)
    %c15 = arith.constant 15 : index
    %247 = memref.load %arg1[%c15] : memref<32xi32, #tpu.memory_space<smem>>
    %c1_i32_256 = arith.constant 1 : i32
    %c1_i32_257 = arith.constant 1 : i32
    %c3_i32_258 = arith.constant 3 : i32
    %c0_i32_259 = arith.constant 0 : i32
    %248 = tpu.memref_slice %arg2[%247, %c0_i32_259] : memref<64x128xf32, #tpu.memory_space<any>> -> memref<1x128xf32, #tpu.memory_space<any>>
    %c3_i32_260 = arith.constant 3 : i32
    %c0_i32_261 = arith.constant 0 : i32
    %249 = tpu.memref_slice %arg4[%c1_i32_256, %c3_i32_260, %c0_i32_261] : memref<2x8x128xf32, #tpu.memory_space<vmem>> -> memref<1x1x128xf32, #tpu.memory_space<vmem>>
    %250 = tpu.memref_squeeze %249 : memref<1x1x128xf32, #tpu.memory_space<vmem>> -> memref<1x128xf32, #tpu.memory_space<vmem>>
    %251 = tpu.memref_slice %arg5[%c1_i32_257, %c3_i32_258] : memref<2x8x!tpu.dma_semaphore, #tpu.memory_space<semaphore_mem>> -> memref<1x1x!tpu.dma_semaphore, #tpu.memory_space<semaphore_mem>>
    %252 = tpu.memref_squeeze %251 : memref<1x1x!tpu.dma_semaphore, #tpu.memory_space<semaphore_mem>> -> memref<!tpu.dma_semaphore, #tpu.memory_space<semaphore_mem>>
    tpu.enqueue_dma source(%248 : memref<1x128xf32, #tpu.memory_space<any>>) target(%250 : memref<1x128xf32, #tpu.memory_space<vmem>>) target_semaphore(%252 : memref<!tpu.dma_semaphore, #tpu.memory_space<semaphore_mem>>)
    %c19 = arith.constant 19 : index
    %253 = memref.load %arg1[%c19] : memref<32xi32, #tpu.memory_space<smem>>
    %c1_i32_262 = arith.constant 1 : i32
    %c1_i32_263 = arith.constant 1 : i32
    %c4_i32_264 = arith.constant 4 : i32
    %c0_i32_265 = arith.constant 0 : i32
    %254 = tpu.memref_slice %arg2[%253, %c0_i32_265] : memref<64x128xf32, #tpu.memory_space<any>> -> memref<1x128xf32, #tpu.memory_space<any>>
    %c4_i32_266 = arith.constant 4 : i32
    %c0_i32_267 = arith.constant 0 : i32
    %255 = tpu.memref_slice %arg4[%c1_i32_262, %c4_i32_266, %c0_i32_267] : memref<2x8x128xf32, #tpu.memory_space<vmem>> -> memref<1x1x128xf32, #tpu.memory_space<vmem>>
    %256 = tpu.memref_squeeze %255 : memref<1x1x128xf32, #tpu.memory_space<vmem>> -> memref<1x128xf32, #tpu.memory_space<vmem>>
    %257 = tpu.memref_slice %arg5[%c1_i32_263, %c4_i32_264] : memref<2x8x!tpu.dma_semaphore, #tpu.memory_space<semaphore_mem>> -> memref<1x1x!tpu.dma_semaphore, #tpu.memory_space<semaphore_mem>>
    %258 = tpu.memref_squeeze %257 : memref<1x1x!tpu.dma_semaphore, #tpu.memory_space<semaphore_mem>> -> memref<!tpu.dma_semaphore, #tpu.memory_space<semaphore_mem>>
    tpu.enqueue_dma source(%254 : memref<1x128xf32, #tpu.memory_space<any>>) target(%256 : memref<1x128xf32, #tpu.memory_space<vmem>>) target_semaphore(%258 : memref<!tpu.dma_semaphore, #tpu.memory_space<semaphore_mem>>)
    %c23 = arith.constant 23 : index
    %259 = memref.load %arg1[%c23] : memref<32xi32, #tpu.memory_space<smem>>
    %c1_i32_268 = arith.constant 1 : i32
    %c1_i32_269 = arith.constant 1 : i32
    %c5_i32_270 = arith.constant 5 : i32
    %c0_i32_271 = arith.constant 0 : i32
    %260 = tpu.memref_slice %arg2[%259, %c0_i32_271] : memref<64x128xf32, #tpu.memory_space<any>> -> memref<1x128xf32, #tpu.memory_space<any>>
    %c5_i32_272 = arith.constant 5 : i32
    %c0_i32_273 = arith.constant 0 : i32
    %261 = tpu.memref_slice %arg4[%c1_i32_268, %c5_i32_272, %c0_i32_273] : memref<2x8x128xf32, #tpu.memory_space<vmem>> -> memref<1x1x128xf32, #tpu.memory_space<vmem>>
    %262 = tpu.memref_squeeze %261 : memref<1x1x128xf32, #tpu.memory_space<vmem>> -> memref<1x128xf32, #tpu.memory_space<vmem>>
    %263 = tpu.memref_slice %arg5[%c1_i32_269, %c5_i32_270] : memref<2x8x!tpu.dma_semaphore, #tpu.memory_space<semaphore_mem>> -> memref<1x1x!tpu.dma_semaphore, #tpu.memory_space<semaphore_mem>>
    %264 = tpu.memref_squeeze %263 : memref<1x1x!tpu.dma_semaphore, #tpu.memory_space<semaphore_mem>> -> memref<!tpu.dma_semaphore, #tpu.memory_space<semaphore_mem>>
    tpu.enqueue_dma source(%260 : memref<1x128xf32, #tpu.memory_space<any>>) target(%262 : memref<1x128xf32, #tpu.memory_space<vmem>>) target_semaphore(%264 : memref<!tpu.dma_semaphore, #tpu.memory_space<semaphore_mem>>)
    %c27 = arith.constant 27 : index
    %265 = memref.load %arg1[%c27] : memref<32xi32, #tpu.memory_space<smem>>
    %c1_i32_274 = arith.constant 1 : i32
    %c1_i32_275 = arith.constant 1 : i32
    %c6_i32_276 = arith.constant 6 : i32
    %c0_i32_277 = arith.constant 0 : i32
    %266 = tpu.memref_slice %arg2[%265, %c0_i32_277] : memref<64x128xf32, #tpu.memory_space<any>> -> memref<1x128xf32, #tpu.memory_space<any>>
    %c6_i32_278 = arith.constant 6 : i32
    %c0_i32_279 = arith.constant 0 : i32
    %267 = tpu.memref_slice %arg4[%c1_i32_274, %c6_i32_278, %c0_i32_279] : memref<2x8x128xf32, #tpu.memory_space<vmem>> -> memref<1x1x128xf32, #tpu.memory_space<vmem>>
    %268 = tpu.memref_squeeze %267 : memref<1x1x128xf32, #tpu.memory_space<vmem>> -> memref<1x128xf32, #tpu.memory_space<vmem>>
    %269 = tpu.memref_slice %arg5[%c1_i32_275, %c6_i32_276] : memref<2x8x!tpu.dma_semaphore, #tpu.memory_space<semaphore_mem>> -> memref<1x1x!tpu.dma_semaphore, #tpu.memory_space<semaphore_mem>>
    %270 = tpu.memref_squeeze %269 : memref<1x1x!tpu.dma_semaphore, #tpu.memory_space<semaphore_mem>> -> memref<!tpu.dma_semaphore, #tpu.memory_space<semaphore_mem>>
    tpu.enqueue_dma source(%266 : memref<1x128xf32, #tpu.memory_space<any>>) target(%268 : memref<1x128xf32, #tpu.memory_space<vmem>>) target_semaphore(%270 : memref<!tpu.dma_semaphore, #tpu.memory_space<semaphore_mem>>)
    %c31 = arith.constant 31 : index
    %271 = memref.load %arg1[%c31] : memref<32xi32, #tpu.memory_space<smem>>
    %c1_i32_280 = arith.constant 1 : i32
    %c1_i32_281 = arith.constant 1 : i32
    %c7_i32_282 = arith.constant 7 : i32
    %c0_i32_283 = arith.constant 0 : i32
    %272 = tpu.memref_slice %arg2[%271, %c0_i32_283] : memref<64x128xf32, #tpu.memory_space<any>> -> memref<1x128xf32, #tpu.memory_space<any>>
    %c7_i32_284 = arith.constant 7 : i32
    %c0_i32_285 = arith.constant 0 : i32
    %273 = tpu.memref_slice %arg4[%c1_i32_280, %c7_i32_284, %c0_i32_285] : memref<2x8x128xf32, #tpu.memory_space<vmem>> -> memref<1x1x128xf32, #tpu.memory_space<vmem>>
    %274 = tpu.memref_squeeze %273 : memref<1x1x128xf32, #tpu.memory_space<vmem>> -> memref<1x128xf32, #tpu.memory_space<vmem>>
    %275 = tpu.memref_slice %arg5[%c1_i32_281, %c7_i32_282] : memref<2x8x!tpu.dma_semaphore, #tpu.memory_space<semaphore_mem>> -> memref<1x1x!tpu.dma_semaphore, #tpu.memory_space<semaphore_mem>>
    %276 = tpu.memref_squeeze %275 : memref<1x1x!tpu.dma_semaphore, #tpu.memory_space<semaphore_mem>> -> memref<!tpu.dma_semaphore, #tpu.memory_space<semaphore_mem>>
    tpu.enqueue_dma source(%272 : memref<1x128xf32, #tpu.memory_space<any>>) target(%274 : memref<1x128xf32, #tpu.memory_space<vmem>>) target_semaphore(%276 : memref<!tpu.dma_semaphore, #tpu.memory_space<semaphore_mem>>)
    %c0_i32_286 = arith.constant 0 : i32
    %c0_i32_287 = arith.constant 0 : i32
    %c0_i32_288 = arith.constant 0 : i32
    %c0_i32_289 = arith.constant 0 : i32
    %277 = tpu.memref_slice %arg2[%138, %c0_i32_289] : memref<64x128xf32, #tpu.memory_space<any>> -> memref<1x128xf32, #tpu.memory_space<any>>
    %c0_i32_290 = arith.constant 0 : i32
    %c0_i32_291 = arith.constant 0 : i32
    %278 = tpu.memref_slice %arg4[%c0_i32_286, %c0_i32_290, %c0_i32_291] : memref<2x8x128xf32, #tpu.memory_space<vmem>> -> memref<1x1x128xf32, #tpu.memory_space<vmem>>
    %279 = tpu.memref_squeeze %278 : memref<1x1x128xf32, #tpu.memory_space<vmem>> -> memref<1x128xf32, #tpu.memory_space<vmem>>
    %280 = tpu.memref_slice %arg5[%c0_i32_287, %c0_i32_288] : memref<2x8x!tpu.dma_semaphore, #tpu.memory_space<semaphore_mem>> -> memref<1x1x!tpu.dma_semaphore, #tpu.memory_space<semaphore_mem>>
    %281 = tpu.memref_squeeze %280 : memref<1x1x!tpu.dma_semaphore, #tpu.memory_space<semaphore_mem>> -> memref<!tpu.dma_semaphore, #tpu.memory_space<semaphore_mem>>
    tpu.wait_dma2 semaphore(%281 : memref<!tpu.dma_semaphore, #tpu.memory_space<semaphore_mem>>) src(%277 : memref<1x128xf32, #tpu.memory_space<any>>) dst(%279 : memref<1x128xf32, #tpu.memory_space<vmem>>)
    %c0_i32_292 = arith.constant 0 : i32
    %c0_i32_293 = arith.constant 0 : i32
    %c1_i32_294 = arith.constant 1 : i32
    %c0_i32_295 = arith.constant 0 : i32
    %282 = tpu.memref_slice %arg2[%144, %c0_i32_295] : memref<64x128xf32, #tpu.memory_space<any>> -> memref<1x128xf32, #tpu.memory_space<any>>
    %c1_i32_296 = arith.constant 1 : i32
    %c0_i32_297 = arith.constant 0 : i32
    %283 = tpu.memref_slice %arg4[%c0_i32_292, %c1_i32_296, %c0_i32_297] : memref<2x8x128xf32, #tpu.memory_space<vmem>> -> memref<1x1x128xf32, #tpu.memory_space<vmem>>
    %284 = tpu.memref_squeeze %283 : memref<1x1x128xf32, #tpu.memory_space<vmem>> -> memref<1x128xf32, #tpu.memory_space<vmem>>
    %285 = tpu.memref_slice %arg5[%c0_i32_293, %c1_i32_294] : memref<2x8x!tpu.dma_semaphore, #tpu.memory_space<semaphore_mem>> -> memref<1x1x!tpu.dma_semaphore, #tpu.memory_space<semaphore_mem>>
    %286 = tpu.memref_squeeze %285 : memref<1x1x!tpu.dma_semaphore, #tpu.memory_space<semaphore_mem>> -> memref<!tpu.dma_semaphore, #tpu.memory_space<semaphore_mem>>
    tpu.wait_dma2 semaphore(%286 : memref<!tpu.dma_semaphore, #tpu.memory_space<semaphore_mem>>) src(%282 : memref<1x128xf32, #tpu.memory_space<any>>) dst(%284 : memref<1x128xf32, #tpu.memory_space<vmem>>)
    %c0_i32_298 = arith.constant 0 : i32
    %c0_i32_299 = arith.constant 0 : i32
    %c2_i32_300 = arith.constant 2 : i32
    %c0_i32_301 = arith.constant 0 : i32
    %287 = tpu.memref_slice %arg2[%150, %c0_i32_301] : memref<64x128xf32, #tpu.memory_space<any>> -> memref<1x128xf32, #tpu.memory_space<any>>
    %c2_i32_302 = arith.constant 2 : i32
    %c0_i32_303 = arith.constant 0 : i32
    %288 = tpu.memref_slice %arg4[%c0_i32_298, %c2_i32_302, %c0_i32_303] : memref<2x8x128xf32, #tpu.memory_space<vmem>> -> memref<1x1x128xf32, #tpu.memory_space<vmem>>
    %289 = tpu.memref_squeeze %288 : memref<1x1x128xf32, #tpu.memory_space<vmem>> -> memref<1x128xf32, #tpu.memory_space<vmem>>
    %290 = tpu.memref_slice %arg5[%c0_i32_299, %c2_i32_300] : memref<2x8x!tpu.dma_semaphore, #tpu.memory_space<semaphore_mem>> -> memref<1x1x!tpu.dma_semaphore, #tpu.memory_space<semaphore_mem>>
    %291 = tpu.memref_squeeze %290 : memref<1x1x!tpu.dma_semaphore, #tpu.memory_space<semaphore_mem>> -> memref<!tpu.dma_semaphore, #tpu.memory_space<semaphore_mem>>
    tpu.wait_dma2 semaphore(%291 : memref<!tpu.dma_semaphore, #tpu.memory_space<semaphore_mem>>) src(%287 : memref<1x128xf32, #tpu.memory_space<any>>) dst(%289 : memref<1x128xf32, #tpu.memory_space<vmem>>)
    %c0_i32_304 = arith.constant 0 : i32
    %c0_i32_305 = arith.constant 0 : i32
    %c3_i32_306 = arith.constant 3 : i32
    %c0_i32_307 = arith.constant 0 : i32
    %292 = tpu.memref_slice %arg2[%156, %c0_i32_307] : memref<64x128xf32, #tpu.memory_space<any>> -> memref<1x128xf32, #tpu.memory_space<any>>
    %c3_i32_308 = arith.constant 3 : i32
    %c0_i32_309 = arith.constant 0 : i32
    %293 = tpu.memref_slice %arg4[%c0_i32_304, %c3_i32_308, %c0_i32_309] : memref<2x8x128xf32, #tpu.memory_space<vmem>> -> memref<1x1x128xf32, #tpu.memory_space<vmem>>
    %294 = tpu.memref_squeeze %293 : memref<1x1x128xf32, #tpu.memory_space<vmem>> -> memref<1x128xf32, #tpu.memory_space<vmem>>
    %295 = tpu.memref_slice %arg5[%c0_i32_305, %c3_i32_306] : memref<2x8x!tpu.dma_semaphore, #tpu.memory_space<semaphore_mem>> -> memref<1x1x!tpu.dma_semaphore, #tpu.memory_space<semaphore_mem>>
    %296 = tpu.memref_squeeze %295 : memref<1x1x!tpu.dma_semaphore, #tpu.memory_space<semaphore_mem>> -> memref<!tpu.dma_semaphore, #tpu.memory_space<semaphore_mem>>
    tpu.wait_dma2 semaphore(%296 : memref<!tpu.dma_semaphore, #tpu.memory_space<semaphore_mem>>) src(%292 : memref<1x128xf32, #tpu.memory_space<any>>) dst(%294 : memref<1x128xf32, #tpu.memory_space<vmem>>)
    %c0_i32_310 = arith.constant 0 : i32
    %c0_i32_311 = arith.constant 0 : i32
    %c4_i32_312 = arith.constant 4 : i32
    %c0_i32_313 = arith.constant 0 : i32
    %297 = tpu.memref_slice %arg2[%162, %c0_i32_313] : memref<64x128xf32, #tpu.memory_space<any>> -> memref<1x128xf32, #tpu.memory_space<any>>
    %c4_i32_314 = arith.constant 4 : i32
    %c0_i32_315 = arith.constant 0 : i32
    %298 = tpu.memref_slice %arg4[%c0_i32_310, %c4_i32_314, %c0_i32_315] : memref<2x8x128xf32, #tpu.memory_space<vmem>> -> memref<1x1x128xf32, #tpu.memory_space<vmem>>
    %299 = tpu.memref_squeeze %298 : memref<1x1x128xf32, #tpu.memory_space<vmem>> -> memref<1x128xf32, #tpu.memory_space<vmem>>
    %300 = tpu.memref_slice %arg5[%c0_i32_311, %c4_i32_312] : memref<2x8x!tpu.dma_semaphore, #tpu.memory_space<semaphore_mem>> -> memref<1x1x!tpu.dma_semaphore, #tpu.memory_space<semaphore_mem>>
    %301 = tpu.memref_squeeze %300 : memref<1x1x!tpu.dma_semaphore, #tpu.memory_space<semaphore_mem>> -> memref<!tpu.dma_semaphore, #tpu.memory_space<semaphore_mem>>
    tpu.wait_dma2 semaphore(%301 : memref<!tpu.dma_semaphore, #tpu.memory_space<semaphore_mem>>) src(%297 : memref<1x128xf32, #tpu.memory_space<any>>) dst(%299 : memref<1x128xf32, #tpu.memory_space<vmem>>)
    %c0_i32_316 = arith.constant 0 : i32
    %c0_i32_317 = arith.constant 0 : i32
    %c5_i32_318 = arith.constant 5 : i32
    %c0_i32_319 = arith.constant 0 : i32
    %302 = tpu.memref_slice %arg2[%168, %c0_i32_319] : memref<64x128xf32, #tpu.memory_space<any>> -> memref<1x128xf32, #tpu.memory_space<any>>
    %c5_i32_320 = arith.constant 5 : i32
    %c0_i32_321 = arith.constant 0 : i32
    %303 = tpu.memref_slice %arg4[%c0_i32_316, %c5_i32_320, %c0_i32_321] : memref<2x8x128xf32, #tpu.memory_space<vmem>> -> memref<1x1x128xf32, #tpu.memory_space<vmem>>
    %304 = tpu.memref_squeeze %303 : memref<1x1x128xf32, #tpu.memory_space<vmem>> -> memref<1x128xf32, #tpu.memory_space<vmem>>
    %305 = tpu.memref_slice %arg5[%c0_i32_317, %c5_i32_318] : memref<2x8x!tpu.dma_semaphore, #tpu.memory_space<semaphore_mem>> -> memref<1x1x!tpu.dma_semaphore, #tpu.memory_space<semaphore_mem>>
    %306 = tpu.memref_squeeze %305 : memref<1x1x!tpu.dma_semaphore, #tpu.memory_space<semaphore_mem>> -> memref<!tpu.dma_semaphore, #tpu.memory_space<semaphore_mem>>
    tpu.wait_dma2 semaphore(%306 : memref<!tpu.dma_semaphore, #tpu.memory_space<semaphore_mem>>) src(%302 : memref<1x128xf32, #tpu.memory_space<any>>) dst(%304 : memref<1x128xf32, #tpu.memory_space<vmem>>)
    %c0_i32_322 = arith.constant 0 : i32
    %c0_i32_323 = arith.constant 0 : i32
    %c6_i32_324 = arith.constant 6 : i32
    %c0_i32_325 = arith.constant 0 : i32
    %307 = tpu.memref_slice %arg2[%174, %c0_i32_325] : memref<64x128xf32, #tpu.memory_space<any>> -> memref<1x128xf32, #tpu.memory_space<any>>
    %c6_i32_326 = arith.constant 6 : i32
    %c0_i32_327 = arith.constant 0 : i32
    %308 = tpu.memref_slice %arg4[%c0_i32_322, %c6_i32_326, %c0_i32_327] : memref<2x8x128xf32, #tpu.memory_space<vmem>> -> memref<1x1x128xf32, #tpu.memory_space<vmem>>
    %309 = tpu.memref_squeeze %308 : memref<1x1x128xf32, #tpu.memory_space<vmem>> -> memref<1x128xf32, #tpu.memory_space<vmem>>
    %310 = tpu.memref_slice %arg5[%c0_i32_323, %c6_i32_324] : memref<2x8x!tpu.dma_semaphore, #tpu.memory_space<semaphore_mem>> -> memref<1x1x!tpu.dma_semaphore, #tpu.memory_space<semaphore_mem>>
    %311 = tpu.memref_squeeze %310 : memref<1x1x!tpu.dma_semaphore, #tpu.memory_space<semaphore_mem>> -> memref<!tpu.dma_semaphore, #tpu.memory_space<semaphore_mem>>
    tpu.wait_dma2 semaphore(%311 : memref<!tpu.dma_semaphore, #tpu.memory_space<semaphore_mem>>) src(%307 : memref<1x128xf32, #tpu.memory_space<any>>) dst(%309 : memref<1x128xf32, #tpu.memory_space<vmem>>)
    %c0_i32_328 = arith.constant 0 : i32
    %c0_i32_329 = arith.constant 0 : i32
    %c7_i32_330 = arith.constant 7 : i32
    %c0_i32_331 = arith.constant 0 : i32
    %312 = tpu.memref_slice %arg2[%180, %c0_i32_331] : memref<64x128xf32, #tpu.memory_space<any>> -> memref<1x128xf32, #tpu.memory_space<any>>
    %c7_i32_332 = arith.constant 7 : i32
    %c0_i32_333 = arith.constant 0 : i32
    %313 = tpu.memref_slice %arg4[%c0_i32_328, %c7_i32_332, %c0_i32_333] : memref<2x8x128xf32, #tpu.memory_space<vmem>> -> memref<1x1x128xf32, #tpu.memory_space<vmem>>
    %314 = tpu.memref_squeeze %313 : memref<1x1x128xf32, #tpu.memory_space<vmem>> -> memref<1x128xf32, #tpu.memory_space<vmem>>
    %315 = tpu.memref_slice %arg5[%c0_i32_329, %c7_i32_330] : memref<2x8x!tpu.dma_semaphore, #tpu.memory_space<semaphore_mem>> -> memref<1x1x!tpu.dma_semaphore, #tpu.memory_space<semaphore_mem>>
    %316 = tpu.memref_squeeze %315 : memref<1x1x!tpu.dma_semaphore, #tpu.memory_space<semaphore_mem>> -> memref<!tpu.dma_semaphore, #tpu.memory_space<semaphore_mem>>
    tpu.wait_dma2 semaphore(%316 : memref<!tpu.dma_semaphore, #tpu.memory_space<semaphore_mem>>) src(%312 : memref<1x128xf32, #tpu.memory_space<any>>) dst(%314 : memref<1x128xf32, #tpu.memory_space<vmem>>)
    %c0_334 = arith.constant 0 : index
    %c0_335 = arith.constant 0 : index
    %c0_336 = arith.constant 0 : index
    %317 = vector.load %arg4[%c0_334, %c0_335, %c0_336] : memref<2x8x128xf32, #tpu.memory_space<vmem>>, vector<1x8x128xf32>
    %318 = vector.shape_cast %317 : vector<1x8x128xf32> to vector<8x128xf32>
    %319 = arith.addf %228, %318 : vector<8x128xf32>
    %c1_i32_337 = arith.constant 1 : i32
    %c1_i32_338 = arith.constant 1 : i32
    %c0_i32_339 = arith.constant 0 : i32
    %c0_i32_340 = arith.constant 0 : i32
    %320 = tpu.memref_slice %arg2[%229, %c0_i32_340] : memref<64x128xf32, #tpu.memory_space<any>> -> memref<1x128xf32, #tpu.memory_space<any>>
    %c0_i32_341 = arith.constant 0 : i32
    %c0_i32_342 = arith.constant 0 : i32
    %321 = tpu.memref_slice %arg4[%c1_i32_337, %c0_i32_341, %c0_i32_342] : memref<2x8x128xf32, #tpu.memory_space<vmem>> -> memref<1x1x128xf32, #tpu.memory_space<vmem>>
    %322 = tpu.memref_squeeze %321 : memref<1x1x128xf32, #tpu.memory_space<vmem>> -> memref<1x128xf32, #tpu.memory_space<vmem>>
    %323 = tpu.memref_slice %arg5[%c1_i32_338, %c0_i32_339] : memref<2x8x!tpu.dma_semaphore, #tpu.memory_space<semaphore_mem>> -> memref<1x1x!tpu.dma_semaphore, #tpu.memory_space<semaphore_mem>>
    %324 = tpu.memref_squeeze %323 : memref<1x1x!tpu.dma_semaphore, #tpu.memory_space<semaphore_mem>> -> memref<!tpu.dma_semaphore, #tpu.memory_space<semaphore_mem>>
    tpu.wait_dma2 semaphore(%324 : memref<!tpu.dma_semaphore, #tpu.memory_space<semaphore_mem>>) src(%320 : memref<1x128xf32, #tpu.memory_space<any>>) dst(%322 : memref<1x128xf32, #tpu.memory_space<vmem>>)
    %c1_i32_343 = arith.constant 1 : i32
    %c1_i32_344 = arith.constant 1 : i32
    %c1_i32_345 = arith.constant 1 : i32
    %c0_i32_346 = arith.constant 0 : i32
    %325 = tpu.memref_slice %arg2[%235, %c0_i32_346] : memref<64x128xf32, #tpu.memory_space<any>> -> memref<1x128xf32, #tpu.memory_space<any>>
    %c1_i32_347 = arith.constant 1 : i32
    %c0_i32_348 = arith.constant 0 : i32
    %326 = tpu.memref_slice %arg4[%c1_i32_343, %c1_i32_347, %c0_i32_348] : memref<2x8x128xf32, #tpu.memory_space<vmem>> -> memref<1x1x128xf32, #tpu.memory_space<vmem>>
    %327 = tpu.memref_squeeze %326 : memref<1x1x128xf32, #tpu.memory_space<vmem>> -> memref<1x128xf32, #tpu.memory_space<vmem>>
    %328 = tpu.memref_slice %arg5[%c1_i32_344, %c1_i32_345] : memref<2x8x!tpu.dma_semaphore, #tpu.memory_space<semaphore_mem>> -> memref<1x1x!tpu.dma_semaphore, #tpu.memory_space<semaphore_mem>>
    %329 = tpu.memref_squeeze %328 : memref<1x1x!tpu.dma_semaphore, #tpu.memory_space<semaphore_mem>> -> memref<!tpu.dma_semaphore, #tpu.memory_space<semaphore_mem>>
    tpu.wait_dma2 semaphore(%329 : memref<!tpu.dma_semaphore, #tpu.memory_space<semaphore_mem>>) src(%325 : memref<1x128xf32, #tpu.memory_space<any>>) dst(%327 : memref<1x128xf32, #tpu.memory_space<vmem>>)
    %c1_i32_349 = arith.constant 1 : i32
    %c1_i32_350 = arith.constant 1 : i32
    %c2_i32_351 = arith.constant 2 : i32
    %c0_i32_352 = arith.constant 0 : i32
    %330 = tpu.memref_slice %arg2[%241, %c0_i32_352] : memref<64x128xf32, #tpu.memory_space<any>> -> memref<1x128xf32, #tpu.memory_space<any>>
    %c2_i32_353 = arith.constant 2 : i32
    %c0_i32_354 = arith.constant 0 : i32
    %331 = tpu.memref_slice %arg4[%c1_i32_349, %c2_i32_353, %c0_i32_354] : memref<2x8x128xf32, #tpu.memory_space<vmem>> -> memref<1x1x128xf32, #tpu.memory_space<vmem>>
    %332 = tpu.memref_squeeze %331 : memref<1x1x128xf32, #tpu.memory_space<vmem>> -> memref<1x128xf32, #tpu.memory_space<vmem>>
    %333 = tpu.memref_slice %arg5[%c1_i32_350, %c2_i32_351] : memref<2x8x!tpu.dma_semaphore, #tpu.memory_space<semaphore_mem>> -> memref<1x1x!tpu.dma_semaphore, #tpu.memory_space<semaphore_mem>>
    %334 = tpu.memref_squeeze %333 : memref<1x1x!tpu.dma_semaphore, #tpu.memory_space<semaphore_mem>> -> memref<!tpu.dma_semaphore, #tpu.memory_space<semaphore_mem>>
    tpu.wait_dma2 semaphore(%334 : memref<!tpu.dma_semaphore, #tpu.memory_space<semaphore_mem>>) src(%330 : memref<1x128xf32, #tpu.memory_space<any>>) dst(%332 : memref<1x128xf32, #tpu.memory_space<vmem>>)
    %c1_i32_355 = arith.constant 1 : i32
    %c1_i32_356 = arith.constant 1 : i32
    %c3_i32_357 = arith.constant 3 : i32
    %c0_i32_358 = arith.constant 0 : i32
    %335 = tpu.memref_slice %arg2[%247, %c0_i32_358] : memref<64x128xf32, #tpu.memory_space<any>> -> memref<1x128xf32, #tpu.memory_space<any>>
    %c3_i32_359 = arith.constant 3 : i32
    %c0_i32_360 = arith.constant 0 : i32
    %336 = tpu.memref_slice %arg4[%c1_i32_355, %c3_i32_359, %c0_i32_360] : memref<2x8x128xf32, #tpu.memory_space<vmem>> -> memref<1x1x128xf32, #tpu.memory_space<vmem>>
    %337 = tpu.memref_squeeze %336 : memref<1x1x128xf32, #tpu.memory_space<vmem>> -> memref<1x128xf32, #tpu.memory_space<vmem>>
    %338 = tpu.memref_slice %arg5[%c1_i32_356, %c3_i32_357] : memref<2x8x!tpu.dma_semaphore, #tpu.memory_space<semaphore_mem>> -> memref<1x1x!tpu.dma_semaphore, #tpu.memory_space<semaphore_mem>>
    %339 = tpu.memref_squeeze %338 : memref<1x1x!tpu.dma_semaphore, #tpu.memory_space<semaphore_mem>> -> memref<!tpu.dma_semaphore, #tpu.memory_space<semaphore_mem>>
    tpu.wait_dma2 semaphore(%339 : memref<!tpu.dma_semaphore, #tpu.memory_space<semaphore_mem>>) src(%335 : memref<1x128xf32, #tpu.memory_space<any>>) dst(%337 : memref<1x128xf32, #tpu.memory_space<vmem>>)
    %c1_i32_361 = arith.constant 1 : i32
    %c1_i32_362 = arith.constant 1 : i32
    %c4_i32_363 = arith.constant 4 : i32
    %c0_i32_364 = arith.constant 0 : i32
    %340 = tpu.memref_slice %arg2[%253, %c0_i32_364] : memref<64x128xf32, #tpu.memory_space<any>> -> memref<1x128xf32, #tpu.memory_space<any>>
    %c4_i32_365 = arith.constant 4 : i32
    %c0_i32_366 = arith.constant 0 : i32
    %341 = tpu.memref_slice %arg4[%c1_i32_361, %c4_i32_365, %c0_i32_366] : memref<2x8x128xf32, #tpu.memory_space<vmem>> -> memref<1x1x128xf32, #tpu.memory_space<vmem>>
    %342 = tpu.memref_squeeze %341 : memref<1x1x128xf32, #tpu.memory_space<vmem>> -> memref<1x128xf32, #tpu.memory_space<vmem>>
    %343 = tpu.memref_slice %arg5[%c1_i32_362, %c4_i32_363] : memref<2x8x!tpu.dma_semaphore, #tpu.memory_space<semaphore_mem>> -> memref<1x1x!tpu.dma_semaphore, #tpu.memory_space<semaphore_mem>>
    %344 = tpu.memref_squeeze %343 : memref<1x1x!tpu.dma_semaphore, #tpu.memory_space<semaphore_mem>> -> memref<!tpu.dma_semaphore, #tpu.memory_space<semaphore_mem>>
    tpu.wait_dma2 semaphore(%344 : memref<!tpu.dma_semaphore, #tpu.memory_space<semaphore_mem>>) src(%340 : memref<1x128xf32, #tpu.memory_space<any>>) dst(%342 : memref<1x128xf32, #tpu.memory_space<vmem>>)
    %c1_i32_367 = arith.constant 1 : i32
    %c1_i32_368 = arith.constant 1 : i32
    %c5_i32_369 = arith.constant 5 : i32
    %c0_i32_370 = arith.constant 0 : i32
    %345 = tpu.memref_slice %arg2[%259, %c0_i32_370] : memref<64x128xf32, #tpu.memory_space<any>> -> memref<1x128xf32, #tpu.memory_space<any>>
    %c5_i32_371 = arith.constant 5 : i32
    %c0_i32_372 = arith.constant 0 : i32
    %346 = tpu.memref_slice %arg4[%c1_i32_367, %c5_i32_371, %c0_i32_372] : memref<2x8x128xf32, #tpu.memory_space<vmem>> -> memref<1x1x128xf32, #tpu.memory_space<vmem>>
    %347 = tpu.memref_squeeze %346 : memref<1x1x128xf32, #tpu.memory_space<vmem>> -> memref<1x128xf32, #tpu.memory_space<vmem>>
    %348 = tpu.memref_slice %arg5[%c1_i32_368, %c5_i32_369] : memref<2x8x!tpu.dma_semaphore, #tpu.memory_space<semaphore_mem>> -> memref<1x1x!tpu.dma_semaphore, #tpu.memory_space<semaphore_mem>>
    %349 = tpu.memref_squeeze %348 : memref<1x1x!tpu.dma_semaphore, #tpu.memory_space<semaphore_mem>> -> memref<!tpu.dma_semaphore, #tpu.memory_space<semaphore_mem>>
    tpu.wait_dma2 semaphore(%349 : memref<!tpu.dma_semaphore, #tpu.memory_space<semaphore_mem>>) src(%345 : memref<1x128xf32, #tpu.memory_space<any>>) dst(%347 : memref<1x128xf32, #tpu.memory_space<vmem>>)
    %c1_i32_373 = arith.constant 1 : i32
    %c1_i32_374 = arith.constant 1 : i32
    %c6_i32_375 = arith.constant 6 : i32
    %c0_i32_376 = arith.constant 0 : i32
    %350 = tpu.memref_slice %arg2[%265, %c0_i32_376] : memref<64x128xf32, #tpu.memory_space<any>> -> memref<1x128xf32, #tpu.memory_space<any>>
    %c6_i32_377 = arith.constant 6 : i32
    %c0_i32_378 = arith.constant 0 : i32
    %351 = tpu.memref_slice %arg4[%c1_i32_373, %c6_i32_377, %c0_i32_378] : memref<2x8x128xf32, #tpu.memory_space<vmem>> -> memref<1x1x128xf32, #tpu.memory_space<vmem>>
    %352 = tpu.memref_squeeze %351 : memref<1x1x128xf32, #tpu.memory_space<vmem>> -> memref<1x128xf32, #tpu.memory_space<vmem>>
    %353 = tpu.memref_slice %arg5[%c1_i32_374, %c6_i32_375] : memref<2x8x!tpu.dma_semaphore, #tpu.memory_space<semaphore_mem>> -> memref<1x1x!tpu.dma_semaphore, #tpu.memory_space<semaphore_mem>>
    %354 = tpu.memref_squeeze %353 : memref<1x1x!tpu.dma_semaphore, #tpu.memory_space<semaphore_mem>> -> memref<!tpu.dma_semaphore, #tpu.memory_space<semaphore_mem>>
    tpu.wait_dma2 semaphore(%354 : memref<!tpu.dma_semaphore, #tpu.memory_space<semaphore_mem>>) src(%350 : memref<1x128xf32, #tpu.memory_space<any>>) dst(%352 : memref<1x128xf32, #tpu.memory_space<vmem>>)
    %c1_i32_379 = arith.constant 1 : i32
    %c1_i32_380 = arith.constant 1 : i32
    %c7_i32_381 = arith.constant 7 : i32
    %c0_i32_382 = arith.constant 0 : i32
    %355 = tpu.memref_slice %arg2[%271, %c0_i32_382] : memref<64x128xf32, #tpu.memory_space<any>> -> memref<1x128xf32, #tpu.memory_space<any>>
    %c7_i32_383 = arith.constant 7 : i32
    %c0_i32_384 = arith.constant 0 : i32
    %356 = tpu.memref_slice %arg4[%c1_i32_379, %c7_i32_383, %c0_i32_384] : memref<2x8x128xf32, #tpu.memory_space<vmem>> -> memref<1x1x128xf32, #tpu.memory_space<vmem>>
    %357 = tpu.memref_squeeze %356 : memref<1x1x128xf32, #tpu.memory_space<vmem>> -> memref<1x128xf32, #tpu.memory_space<vmem>>
    %358 = tpu.memref_slice %arg5[%c1_i32_380, %c7_i32_381] : memref<2x8x!tpu.dma_semaphore, #tpu.memory_space<semaphore_mem>> -> memref<1x1x!tpu.dma_semaphore, #tpu.memory_space<semaphore_mem>>
    %359 = tpu.memref_squeeze %358 : memref<1x1x!tpu.dma_semaphore, #tpu.memory_space<semaphore_mem>> -> memref<!tpu.dma_semaphore, #tpu.memory_space<semaphore_mem>>
    tpu.wait_dma2 semaphore(%359 : memref<!tpu.dma_semaphore, #tpu.memory_space<semaphore_mem>>) src(%355 : memref<1x128xf32, #tpu.memory_space<any>>) dst(%357 : memref<1x128xf32, #tpu.memory_space<vmem>>)
    %c1_385 = arith.constant 1 : index
    %c0_386 = arith.constant 0 : index
    %c0_387 = arith.constant 0 : index
    %360 = vector.load %arg4[%c1_385, %c0_386, %c0_387] : memref<2x8x128xf32, #tpu.memory_space<vmem>>, vector<1x8x128xf32>
    %361 = vector.shape_cast %360 : vector<1x8x128xf32> to vector<8x128xf32>
    %362 = arith.addf %319, %361 : vector<8x128xf32>
    %cst = arith.constant 2.500000e-01 : f32
    %363 = vector.broadcast %cst : f32 to vector<8x128xf32>
    %364 = arith.mulf %362, %363 : vector<8x128xf32>
    %c0_388 = arith.constant 0 : index
    %c0_389 = arith.constant 0 : index
    %365 = vector.load %arg3[%c0_388, %c0_389] : memref<8x128xf32, #tpu.memory_space<vmem>>, vector<8x128xf32>
    tpu.vector_store %arg3[%c0_388, %c0_389], %364 {strides = array<i32>} : memref<8x128xf32, #tpu.memory_space<vmem>>, vector<8x128xf32>,
    return
  }
  func.func @transform_1(%arg0: i32, %arg1: memref<32xi32, #tpu.memory_space<smem>>) -> (i32, i32) {
    %c0_i32 = arith.constant 0 : i32
    %c0_i32_0 = arith.constant 0 : i32
    %c0_i32_1 = arith.constant 0 : i32
    return %c0_i32, %c0_i32_0 : i32, i32
  }
}

</mosaic_0001>

<bundles_post_ra>
// kernel: tpu_custom_call.1
= control target key start
LH: loop header
LB: loop body
LE: loop exit
PB: predicated region body
PF: predicated region fallthrough
CT: control target
= control target key end

     0   :  { %s2590_s0 = inlined_call_operand.hbm [shape: s32[32], index: 0, kind: input, shape index: {}]   ;;  %s2591_s1 = inlined_call_operand.hbm [shape: f32[64,128], index: 1, kind: input, shape index: {}]   ;;  %s2592_s2 = inlined_call_operand.hbm [shape: f32[8,128], index: 2, kind: output, shape index: {}]  }
   0x1   :  { %2674 = sst [smem:[#allocation146_spill]] %s2592_s2  ;;  %s850_s11 = scalar_lea.hbm %s2590_s0, 16 }
   0x2   :  { %p851_p0 = scmp.ne.s32.totalorder %s2590_s0, %s850_s11  ;;  %p854_p1 = scmp.lt.u32.totalorder %s850_s11, %s2590_s0 }
   0x4   :  { %p856_p2 = pnand %p854_p1, %p851_p0 }
   0x6   :  { %859 = shalt.err (!%p856_p2)  }
   0x7   :  { %s1718_s16 = smov [#allocation5]  }
   0x8   :  { %8 = dma.hbm_to_smem %s2590_s0, 16, %s1718_s16, [#allocation4] }
   0x9   :  { %1650 = dma.done.wait [#allocation4], 16 }
   0xa   :  { %1651 = vsyncadd [#allocation4], 4294967280 }
   0xb   :  { %10 = sfence }
   0xc   :  { %11 = vsyncpa [#allocation7], 0  ;;  %s12_s19 = sld [smem:[#allocation5]]  ;;  %s1719_s20 = smov [#allocation2]  }
   0xd   :  { %s22_s21 = sshll.u32 %s1719_s20, 4  ;;  %s1763_s22 = sld [smem:[#allocation5 + $0x4]]  ;;  %s1765_s21 = int_to_ptr.vmem [resolvable:$true] %s22_s21 }
   0xe   :  { %s1720_s23 = smov [#allocation2 + $0x1]   ;;  %s1767_s25 = sld [smem:[#allocation5 + $0x8]] }
   0xf   :  { %s38_s24 = sshll.u32 %s1720_s23, 4  ;;  %s1721_s26 = smov [#allocation2 + $0x2]   ;;  %s1769_s24 = int_to_ptr.vmem [resolvable:$true] %s38_s24 }
  0x10   :  { %s54_s0 = sshll.u32 %s1721_s26, 4  ;;  %s1771_s27 = sld [smem:[#allocation5 + $0xc]]  ;;  %s1773_s0 = int_to_ptr.vmem [resolvable:$true] %s54_s0 }
  0x11   :  { %s1782_s8 = scalar_lea.hbm %s2591_s1, 1024 }
  0x12   :  { %s753_s28 = sshll.u32 %s12_s19, 4 }
  0x13   :  { %s14_s3 = scalar_lea.hbm %s2591_s1, %s753_s28  ;;  %s755_s4 = sshll.u32 %s1763_s22, 4 }
  0x14   :  { %s860_s5 = scalar_lea.hbm %s14_s3, 16  ;;  %p863_p4 = scmp.lt.u32.totalorder %s14_s3, %s2591_s1 }
  0x15   :  { %p861_p3 = scmp.ne.s32.totalorder %s14_s3, %s860_s5  ;;  %p864_p5 = scmp.lt.u32.totalorder %s1782_s8, %s860_s5 }
  0x16   :  { %p866_p7 = scmp.lt.u32.totalorder %s860_s5, %s14_s3 }
  0x17   :  { %p865_p6 = por %p864_p5, %p863_p4 }
  0x19   :  { %p867_p8 = por %p866_p7, %p865_p6 }
  0x1b   :  { %p868_p9 = pnand %p867_p8, %p861_p3 }
  0x1d   :  { %871 = shalt.err (!%p868_p9)  }
  0x1e   :  { %s872_s11 = scalar_lea.vmem %s1765_s21, 16  ;;  %s1795_s13 = scalar_lea.vmem %s1765_s21, 256 }
  0x1f   :  { %p1790_p10 = scmp.ne.s32.totalorder %s1765_s21, %s872_s11  ;;  %p877_p11 = scmp.lt.s32.totalorder %s1765_s21, %s1765_s21 }
  0x20   :  { %p878_p12 = scmp.lt.s32.totalorder %s1795_s13, %s872_s11 }
  0x22   :  { %p1800_p13 = por %p878_p12, %p877_p11 }
  0x24   :  { %p2594_p0 = pnand %p1800_p13, %p1790_p10 }
  0x26   :  { %883 = shalt.err (!%p2594_p0)  }
  0x27   :  { %25 = dma.hbm_to_vmem [thread:$0]  %s14_s3, 16, %s1765_s21, [#allocation3] }
  0x28   :  { %s28_s17 = scalar_lea.hbm %s2591_s1, %s755_s4  ;;  %s757_s18 = sshll.u32 %s1767_s25, 4 }
  0x29   :  { %s884_s19 = scalar_lea.hbm %s28_s17, 16  ;;  %p887_p2 = scmp.lt.u32.totalorder %s28_s17, %s2591_s1 }
  0x2a   :  { %p885_p1 = scmp.ne.s32.totalorder %s28_s17, %s884_s19  ;;  %p888_p3 = scmp.lt.u32.totalorder %s1782_s8, %s884_s19 }
  0x2b   :  { %p890_p5 = scmp.lt.u32.totalorder %s884_s19, %s28_s17 }
  0x2c   :  { %p889_p4 = por %p888_p3, %p887_p2 }
  0x2e   :  { %p891_p6 = por %p890_p5, %p889_p4 }
  0x30   :  { %p892_p7 = pnand %p891_p6, %p885_p1 }
  0x32   :  { %895 = shalt.err (!%p892_p7)  }
  0x33   :  { %s896_s23 = scalar_lea.vmem %s1769_s24, 16  ;;  %p901_p9 = scmp.lt.s32.totalorder %s1769_s24, %s1765_s21 }
  0x34   :  { %p1824_p8 = scmp.ne.s32.totalorder %s1769_s24, %s896_s23  ;;  %p902_p11 = scmp.lt.s32.totalorder %s1795_s13, %s896_s23 }
  0x36   :  { %s2677_s25 = scalar_select %p1824_p8, 1, 0 }
  0x37   :  { %p1831_p12 = por %p902_p11, %p901_p9 }
  0x39   :  { %p2593_p1 = pnand %p1831_p12, %p1824_p8 }
  0x3b   :  { %907 = shalt.err (!%p2593_p1)  }
  0x3c   :  { %41 = dma.hbm_to_vmem [thread:$0]  %s28_s17, 16, %s1769_s24, [#allocation3 + $0x1] }
  0x3d   :  { %s44_s30 = scalar_lea.hbm %s2591_s1, %s757_s18  ;;  %s759_s3 = sshll.u32 %s1771_s27, 4 }
  0x3e   :  { %s908_s4 = scalar_lea.hbm %s44_s30, 16  ;;  %p911_p3 = scmp.lt.u32.totalorder %s44_s30, %s2591_s1 }
  0x3f   :  { %p909_p2 = scmp.ne.s32.totalorder %s44_s30, %s908_s4  ;;  %p912_p4 = scmp.lt.u32.totalorder %s1782_s8, %s908_s4 }
  0x40   :  { %p914_p6 = scmp.lt.u32.totalorder %s908_s4, %s44_s30 }
  0x41   :  { %p913_p5 = por %p912_p4, %p911_p3 }
  0x43   :  { %p915_p7 = por %p914_p6, %p913_p5 }
  0x45   :  { %p916_p9 = pnand %p915_p7, %p909_p2 }
  0x47   :  { %919 = shalt.err (!%p916_p9)  }
  0x48   :  { %s920_s7 = scalar_lea.vmem %s1773_s0, 16  ;;  %p925_p1 = scmp.lt.s32.totalorder %s1773_s0, %s1765_s21 }
  0x49   :  { %p1855_p11 = scmp.ne.s32.totalorder %s1773_s0, %s920_s7  ;;  %p926_p0 = scmp.lt.s32.totalorder %s1795_s13, %s920_s7 }
  0x4b   :  { %s2679_s27 = scalar_select %p1855_p11, 1, 0 }
  0x4c   :  { %p1862_p8 = por %p926_p0, %p925_p1 }
  0x4e   :  { %s2680_s9 = scalar_select %p1862_p8, 1, 0 }
  0x4f   :  { %p2596_p2 = pnand %p1862_p8, %p1855_p11 }
  0x51   :  { %931 = shalt.err (!%p2596_p2)  }
  0x52   :  { %57 = dma.hbm_to_vmem [thread:$0]  %s44_s30, 16, %s1773_s0, [#allocation3 + $0x2] }
  0x53   :  { %s60_s15 = scalar_lea.hbm %s2591_s1, %s759_s3  ;;  %s1722_s16 = smov [#allocation2 + $0x3]  }
  0x54   :  { %s70_s17 = sshll.u32 %s1722_s16, 4  ;;  %s1879_s18 = sld [smem:[#allocation5 + $0x10]]  ;;  %s1881_s17 = int_to_ptr.vmem [resolvable:$true] %s70_s17 }
  0x55   :  { %s932_s19 = scalar_lea.hbm %s60_s15, 16  ;;  %p935_p1 = scmp.lt.u32.totalorder %s60_s15, %s2591_s1 }
  0x56   :  { %p933_p0 = scmp.ne.s32.totalorder %s60_s15, %s932_s19  ;;  %p936_p3 = scmp.lt.u32.totalorder %s1782_s8, %s932_s19 }
  0x57   :  { %p938_p5 = scmp.lt.u32.totalorder %s932_s19, %s60_s15 }
  0x58   :  { %p937_p4 = por %p936_p3, %p935_p1 }
  0x5a   :  { %p939_p6 = por %p938_p5, %p937_p4 }
  0x5c   :  { %p940_p7 = pnand %p939_p6, %p933_p0 }
  0x5e   :  { %943 = shalt.err (!%p940_p7)  }
  0x5f   :  { %s944_s23 = scalar_lea.vmem %s1881_s17, 16  ;;  %p949_p2 = scmp.lt.s32.totalorder %s1881_s17, %s1765_s21 }
  0x60   :  { %p1889_p9 = scmp.ne.s32.totalorder %s1881_s17, %s944_s23  ;;  %p950_p11 = scmp.lt.s32.totalorder %s1795_s13, %s944_s23 }
  0x62   :  { %s2681_s28 = scalar_select %p1889_p9, 1, 0 }
  0x63   :  { %p1896_p8 = por %p950_p11, %p949_p2 }
  0x65   :  { %s2682_s29 = scalar_select %p1896_p8, 1, 0 }
  0x66   :  { %p2599_p0 = pnand %p1896_p8, %p1889_p9 }
  0x68   :  { %955 = shalt.err (!%p2599_p0)  }
  0x69   :  { %73 = dma.hbm_to_vmem [thread:$0]  %s60_s15, 16, %s1881_s17, [#allocation3 + $0x3] }
  0x6a   :  { %s1723_s30 = smov [#allocation2 + $0x4]   ;;  %s1910_s4 = sld [smem:[#allocation5 + $0x14]] }
  0x6b   :  { %s86_s3 = sshll.u32 %s1723_s30, 4  ;;  %s1724_s5 = smov [#allocation2 + $0x5]   ;;  %s1912_s3 = int_to_ptr.vmem [resolvable:$true] %s86_s3 }
  0x6c   :  { %2683 = sst [smem:[#allocation108_spill]] %s1912_s3  ;;  %s102_s6 = sshll.u32 %s1724_s5, 4  ;;  %s1917_s6 = int_to_ptr.vmem [resolvable:$true] %s102_s6 }
  0x6d   :  { %s1914_s7 = sld [smem:[#allocation5 + $0x18]]  ;;  %s761_s10 = sshll.u32 %s1879_s18, 4 }
  0x6e   :  { %2684 = sst [smem:[#allocation109_spill]] %s1917_s6  ;;  %s76_s19 = scalar_lea.hbm %s2591_s1, %s761_s10 }
  0x6f   :  { %s956_s20 = scalar_lea.hbm %s76_s19, 16  ;;  %p959_p2 = scmp.lt.u32.totalorder %s76_s19, %s2591_s1 }
  0x70   :  { %p957_p11 = scmp.ne.s32.totalorder %s76_s19, %s956_s20  ;;  %p960_p1 = scmp.lt.u32.totalorder %s1782_s8, %s956_s20 }
  0x71   :  { %p962_p4 = scmp.lt.u32.totalorder %s956_s20, %s76_s19 }
  0x72   :  { %p961_p3 = por %p960_p1, %p959_p2 }
  0x74   :  { %p963_p5 = por %p962_p4, %p961_p3 }
  0x76   :  { %p964_p6 = pnand %p963_p5, %p957_p11 }
  0x78   :  { %967 = shalt.err (!%p964_p6)  }
  0x79   :  { %s968_s18 = scalar_lea.vmem %s1912_s3, 16  ;;  %p973_p0 = scmp.lt.s32.totalorder %s1912_s3, %s1765_s21 }
  0x7a   :  { %p1928_p7 = scmp.ne.s32.totalorder %s1912_s3, %s968_s18  ;;  %p974_p9 = scmp.lt.s32.totalorder %s1795_s13, %s968_s18 }
  0x7c   :  { %s2685_s23 = scalar_select %p1928_p7, 1, 0 }
  0x7d   :  { %p1935_p8 = por %p974_p9, %p973_p0 }
  0x7e   :  { %2686 = sst [smem:[#allocation110_spill]] %s2685_s23 }
  0x7f   :  { %s2687_s30 = scalar_select %p1935_p8, 1, 0 }
  0x80   :  { %p2603_p11 = pnand %p1935_p8, %p1928_p7 }
  0x81   :  { %2688 = sst [smem:[#allocation111_spill]] %s2687_s30 }
  0x82   :  { %979 = shalt.err (!%p2603_p11)  }
  0x83   :  { %89 = dma.hbm_to_vmem [thread:$0]  %s76_s19, 16, %s1912_s3, [#allocation3 + $0x4] }
  0x84   :  { %s763_s5 = sshll.u32 %s1910_s4, 4  ;;  %s1725_s10 = smov [#allocation2 + $0x6]  }
  0x85   :  { %s118_s11 = sshll.u32 %s1725_s10, 4  ;;  %s92_s15 = scalar_lea.hbm %s2591_s1, %s763_s5  ;;  %s1953_s11 = int_to_ptr.vmem [resolvable:$true] %s118_s11 }
  0x86   :  { %2689 = sst [smem:[#allocation112_spill]] %s1953_s11  ;;  %s980_s22 = scalar_lea.hbm %s92_s15, 16 }
  0x87   :  { %p981_p9 = scmp.ne.s32.totalorder %s92_s15, %s980_s22  ;;  %p983_p0 = scmp.lt.u32.totalorder %s92_s15, %s2591_s1 }
  0x88   :  { %p984_p2 = scmp.lt.u32.totalorder %s1782_s8, %s980_s22  ;;  %p986_p3 = scmp.lt.u32.totalorder %s980_s22, %s92_s15 }
  0x8a   :  { %p985_p1 = por %p984_p2, %p983_p0 }
  0x8c   :  { %p987_p4 = por %p986_p3, %p985_p1 }
  0x8e   :  { %p988_p5 = pnand %p987_p4, %p981_p9 }
  0x90   :  { %991 = shalt.err (!%p988_p5)  }
  0x91   :  { %s992_s4 = scalar_lea.vmem %s1917_s6, 16  ;;  %p997_p11 = scmp.lt.s32.totalorder %s1917_s6, %s1765_s21 }
  0x92   :  { %p1961_p6 = scmp.ne.s32.totalorder %s1917_s6, %s992_s4  ;;  %p998_p7 = scmp.lt.s32.totalorder %s1795_s13, %s992_s4 }
  0x94   :  { %s2690_s19 = scalar_select %p1961_p6, 1, 0 }
  0x95   :  { %p1968_p8 = por %p998_p7, %p997_p11 }
  0x96   :  { %2691 = sst [smem:[#allocation113_spill]] %s2690_s19 }
  0x97   :  { %s2692_s2 = scalar_select %p1968_p8, 1, 0 }
  0x98   :  { %p2607_p9 = pnand %p1968_p8, %p1961_p6 }
  0x99   :  { %2693 = sst [smem:[#allocation114_spill]] %s2692_s2 }
  0x9a   :  { %1003 = shalt.err (!%p2607_p9)  }
  0x9b   :  { %105 = dma.hbm_to_vmem [thread:$0]  %s92_s15, 16, %s1917_s6, [#allocation3 + $0x5] }
  0x9c   :  { %s765_s5 = sshll.u32 %s1914_s7, 4  ;;  %s1983_s10 = sld [smem:[#allocation5 + $0x1c]] }
  0x9d   :  { %s108_s22 = scalar_lea.hbm %s2591_s1, %s765_s5 }
  0x9e   :  { %s1004_s18 = scalar_lea.hbm %s108_s22, 16  ;;  %p1007_p11 = scmp.lt.u32.totalorder %s108_s22, %s2591_s1 }
  0x9f   :  { %p1005_p7 = scmp.ne.s32.totalorder %s108_s22, %s1004_s18  ;;  %p1008_p0 = scmp.lt.u32.totalorder %s1782_s8, %s1004_s18 }
  0xa0   :  { %p1010_p1 = scmp.lt.u32.totalorder %s1004_s18, %s108_s22 }
  0xa1   :  { %p1009_p2 = por %p1008_p0, %p1007_p11 }
  0xa3   :  { %p1011_p3 = por %p1010_p1, %p1009_p2 }
  0xa5   :  { %p1012_p4 = pnand %p1011_p3, %p1005_p7 }
  0xa7   :  { %1015 = shalt.err (!%p1012_p4)  }
  0xa8   :  { %s1016_s7 = scalar_lea.vmem %s1953_s11, 16  ;;  %p1021_p9 = scmp.lt.s32.totalorder %s1953_s11, %s1765_s21 }
  0xa9   :  { %p1994_p5 = scmp.ne.s32.totalorder %s1953_s11, %s1016_s7  ;;  %p1022_p6 = scmp.lt.s32.totalorder %s1795_s13, %s1016_s7 }
  0xab   :  { %s2694_s15 = scalar_select %p1994_p5, 1, 0 }
  0xac   :  { %p2001_p8 = por %p1022_p6, %p1021_p9 }
  0xad   :  { %2695 = sst [smem:[#allocation115_spill]] %s2694_s15 }
  0xae   :  { %s2696_s3 = scalar_select %p2001_p8, 1, 0 }
  0xaf   :  { %p2616_p7 = pnand %p2001_p8, %p1994_p5 }
  0xb0   :  { %2697 = sst [smem:[#allocation116_spill]] %s2696_s3 }
  0xb1   :  { %1027 = shalt.err (!%p2616_p7)  }
  0xb2   :  { %121 = dma.hbm_to_vmem [thread:$0]  %s108_s22, 16, %s1953_s11, [#allocation3 + $0x6] }
  0xb3   :  { %s1726_s5 = smov [#allocation2 + $0x7]   ;;  %s2015_s20 = sld [smem:[#allocation5 + $0x1]] }
  0xb4   :  { %s134_s16 = sshll.u32 %s1726_s5, 4  ;;  %s1727_s18 = smov [#allocation2 + $0x8]   ;;  %s2017_s16 = int_to_ptr.vmem [resolvable:$true] %s134_s16 }
  0xb5   :  { %2698 = sst [smem:[#allocation117_spill]] %s2017_s16  ;;  %s150_s4 = sshll.u32 %s1727_s18, 4  ;;  %s2022_s4 = int_to_ptr.vmem [resolvable:$true] %s150_s4 }
  0xb6   :  { %s2019_s7 = sld [smem:[#allocation5 + $0x5]]  ;;  %s767_s6 = sshll.u32 %s1983_s10, 4 }
  0xb7   :  { %2699 = sst [smem:[#allocation118_spill]] %s2022_s4  ;;  %s124_s19 = scalar_lea.hbm %s2591_s1, %s767_s6 }
  0xb8   :  { %s1028_s2 = scalar_lea.hbm %s124_s19, 16  ;;  %p1031_p9 = scmp.lt.u32.totalorder %s124_s19, %s2591_s1 }
  0xb9   :  { %p1029_p6 = scmp.ne.s32.totalorder %s124_s19, %s1028_s2  ;;  %p1032_p11 = scmp.lt.u32.totalorder %s1782_s8, %s1028_s2 }
  0xba   :  { %p1034_p2 = scmp.lt.u32.totalorder %s1028_s2, %s124_s19 }
  0xbb   :  { %p1033_p0 = por %p1032_p11, %p1031_p9 }
  0xbd   :  { %p1035_p1 = por %p1034_p2, %p1033_p0 }
  0xbf   :  { %p1036_p3 = pnand %p1035_p1, %p1029_p6 }
  0xc1   :  { %1039 = shalt.err (!%p1036_p3)  }
  0xc2   :  { %s1040_s10 = scalar_lea.vmem %s2017_s16, 16  ;;  %p1045_p7 = scmp.lt.s32.totalorder %s2017_s16, %s1765_s21 }
  0xc3   :  { %p2033_p4 = scmp.ne.s32.totalorder %s2017_s16, %s1040_s10  ;;  %p1046_p5 = scmp.lt.s32.totalorder %s1795_s13, %s1040_s10 }
  0xc5   :  { %s2700_s6 = scalar_select %p2033_p4, 1, 0 }
  0xc6   :  { %p2040_p8 = por %p1046_p5, %p1045_p7 }
  0xc7   :  { %2701 = sst [smem:[#allocation119_spill]] %s2700_s6 }
  0xc8   :  { %s2702_s11 = scalar_select %p2040_p8, 1, 0 }
  0xc9   :  { %p2621_p6 = pnand %p2040_p8, %p2033_p4 }
  0xca   :  { %2703 = sst [smem:[#allocation120_spill]] %s2702_s11 }
  0xcb   :  { %1051 = shalt.err (!%p2621_p6)  }
  0xcc   :  { %137 = dma.hbm_to_vmem [thread:$0]  %s124_s19, 16, %s2017_s16, [#allocation3 + $0x7] }
  0xcd   :  { %s769_s2 = sshll.u32 %s2015_s20, 4  ;;  %s1728_s15 = smov [#allocation2 + $0x9]  }
  0xce   :  { %s166_s3 = sshll.u32 %s1728_s15, 4  ;;  %s140_s22 = scalar_lea.hbm %s2591_s1, %s769_s2  ;;  %s2058_s3 = int_to_ptr.vmem [resolvable:$true] %s166_s3 }
  0xcf   :  { %2704 = sst [smem:[#allocation121_spill]] %s2058_s3  ;;  %s1052_s10 = scalar_lea.hbm %s140_s22, 16 }
  0xd0   :  { %p1053_p5 = scmp.ne.s32.totalorder %s140_s22, %s1052_s10  ;;  %p1055_p7 = scmp.lt.u32.totalorder %s140_s22, %s2591_s1 }
  0xd1   :  { %p1056_p9 = scmp.lt.u32.totalorder %s1782_s8, %s1052_s10  ;;  %p1058_p0 = scmp.lt.u32.totalorder %s1052_s10, %s140_s22 }
  0xd3   :  { %p1057_p11 = por %p1056_p9, %p1055_p7 }
  0xd5   :  { %p1059_p2 = por %p1058_p0, %p1057_p11 }
  0xd7   :  { %p1060_p1 = pnand %p1059_p2, %p1053_p5 }
  0xd9   :  { %1063 = shalt.err (!%p1060_p1)  }
  0xda   :  { %s1064_s19 = scalar_lea.vmem %s2022_s4, 16  ;;  %p1069_p6 = scmp.lt.s32.totalorder %s2022_s4, %s1765_s21 }
  0xdb   :  { %p2066_p3 = scmp.ne.s32.totalorder %s2022_s4, %s1064_s19  ;;  %p1070_p4 = scmp.lt.s32.totalorder %s1795_s13, %s1064_s19 }
  0xdd   :  { %s2705_s20 = scalar_select %p2066_p3, 1, 0 }
  0xde   :  { %p2073_p8 = por %p1070_p4, %p1069_p6 }
  0xdf   :  { %2706 = sst [smem:[#allocation122_spill]] %s2705_s20 }
  0xe0   :  { %s2707_s23 = scalar_select %p2073_p8, 1, 0 }
  0xe1   :  { %p2625_p5 = pnand %p2073_p8, %p2066_p3 }
  0xe2   :  { %2708 = sst [smem:[#allocation123_spill]] %s2707_s23 }
  0xe3   :  { %1075 = shalt.err (!%p2625_p5)  }
  0xe4   :  { %153 = dma.hbm_to_vmem [thread:$0]  %s140_s22, 16, %s2022_s4, [#allocation3 + $0x8] }
  0xe5   :  { %s771_s11 = sshll.u32 %s2019_s7, 4  ;;  %s2088_s2 = sld [smem:[#allocation5 + $0x9]] }
  0xe6   :  { %s156_s18 = scalar_lea.hbm %s2591_s1, %s771_s11 }
  0xe7   :  { %s1076_s10 = scalar_lea.hbm %s156_s18, 16  ;;  %p1079_p6 = scmp.lt.u32.totalorder %s156_s18, %s2591_s1 }
  0xe8   :  { %p1077_p4 = scmp.ne.s32.totalorder %s156_s18, %s1076_s10  ;;  %p1080_p7 = scmp.lt.u32.totalorder %s1782_s8, %s1076_s10 }
  0xe9   :  { %p1082_p11 = scmp.lt.u32.totalorder %s1076_s10, %s156_s18 }
  0xea   :  { %p1081_p9 = por %p1080_p7, %p1079_p6 }
  0xec   :  { %p1083_p0 = por %p1082_p11, %p1081_p9 }
  0xee   :  { %p1084_p2 = pnand %p1083_p0, %p1077_p4 }
  0xf0   :  { %1087 = shalt.err (!%p1084_p2)  }
  0xf1   :  { %s1088_s7 = scalar_lea.vmem %s2058_s3, 16  ;;  %p1093_p5 = scmp.lt.s32.totalorder %s2058_s3, %s1765_s21 }
  0xf2   :  { %p2099_p1 = scmp.ne.s32.totalorder %s2058_s3, %s1088_s7  ;;  %p1094_p3 = scmp.lt.s32.totalorder %s1795_s13, %s1088_s7 }
  0xf4   :  { %s2709_s22 = scalar_select %p2099_p1, 1, 0 }
  0xf5   :  { %p2106_p8 = por %p1094_p3, %p1093_p5 }
  0xf6   :  { %2710 = sst [smem:[#allocation124_spill]] %s2709_s22 }
  0xf7   :  { %s2711_s16 = scalar_select %p2106_p8, 1, 0 }
  0xf8   :  { %p2634_p4 = pnand %p2106_p8, %p2099_p1 }
  0xf9   :  { %2712 = sst [smem:[#allocation125_spill]] %s2711_s16 }
  0xfa   :  { %1099 = shalt.err (!%p2634_p4)  }
  0xfb   :  { %169 = dma.hbm_to_vmem [thread:$0]  %s156_s18, 16, %s2058_s3, [#allocation3 + $0x9] }
  0xfc   :  { %s1729_s11 = smov [#allocation2 + $0xa]   ;;  %s2120_s5 = sld [smem:[#allocation5 + $0xd]] }
  0xfd   :  { %s182_s15 = sshll.u32 %s1729_s11, 4  ;;  %s1730_s10 = smov [#allocation2 + $0xb]   ;;  %s2122_s15 = int_to_ptr.vmem [resolvable:$true] %s182_s15 }
  0xfe   :  { %2713 = sst [smem:[#allocation126_spill]] %s2122_s15  ;;  %s198_s19 = sshll.u32 %s1730_s10, 4  ;;  %s2127_s19 = int_to_ptr.vmem [resolvable:$true] %s198_s19 }
  0xff   :  { %s2124_s7 = sld [smem:[#allocation5 + $0x11]]  ;;  %s773_s4 = sshll.u32 %s2088_s2, 4 }
 0x100   :  { %2714 = sst [smem:[#allocation127_spill]] %s2127_s19  ;;  %s172_s20 = scalar_lea.hbm %s2591_s1, %s773_s4 }
 0x101   :  { %s1100_s23 = scalar_lea.hbm %s172_s20, 16  ;;  %p1103_p5 = scmp.lt.u32.totalorder %s172_s20, %s2591_s1 }
 0x102   :  { %p1101_p3 = scmp.ne.s32.totalorder %s172_s20, %s1100_s23  ;;  %p1104_p6 = scmp.lt.u32.totalorder %s1782_s8, %s1100_s23 }
 0x103   :  { %p1106_p9 = scmp.lt.u32.totalorder %s1100_s23, %s172_s20 }
 0x104   :  { %p1105_p7 = por %p1104_p6, %p1103_p5 }
 0x106   :  { %p1107_p11 = por %p1106_p9, %p1105_p7 }
 0x108   :  { %p1108_p0 = pnand %p1107_p11, %p1101_p3 }
 0x10a   :  { %1111 = shalt.err (!%p1108_p0)  }
 0x10b   :  { %s1112_s2 = scalar_lea.vmem %s2122_s15, 16  ;;  %p1117_p4 = scmp.lt.s32.totalorder %s2122_s15, %s1765_s21 }
 0x10c   :  { %p2138_p2 = scmp.ne.s32.totalorder %s2122_s15, %s1112_s2  ;;  %p1118_p1 = scmp.lt.s32.totalorder %s1795_s13, %s1112_s2 }
 0x10e   :  { %s2715_s4 = scalar_select %p2138_p2, 1, 0 }
 0x10f   :  { %p2145_p8 = por %p1118_p1, %p1117_p4 }
 0x110   :  { %2716 = sst [smem:[#allocation128_spill]] %s2715_s4 }
 0x111   :  { %s2717_s3 = scalar_select %p2145_p8, 1, 0 }
 0x112   :  { %p2639_p3 = pnand %p2145_p8, %p2138_p2 }
 0x113   :  { %2718 = sst [smem:[#allocation129_spill]] %s2717_s3 }
 0x114   :  { %1123 = shalt.err (!%p2639_p3)  }
 0x115   :  { %185 = dma.hbm_to_vmem [thread:$0]  %s172_s20, 16, %s2122_s15, [#allocation3 + $0xa] }
 0x116   :  { %s775_s23 = sshll.u32 %s2120_s5, 4  ;;  %s1731_s22 = smov [#allocation2 + $0xc]  }
 0x117   :  { %s214_s16 = sshll.u32 %s1731_s22, 4  ;;  %s188_s18 = scalar_lea.hbm %s2591_s1, %s775_s23  ;;  %s2163_s16 = int_to_ptr.vmem [resolvable:$true] %s214_s16 }
 0x118   :  { %2719 = sst [smem:[#allocation130_spill]] %s2163_s16  ;;  %s1124_s2 = scalar_lea.hbm %s188_s18, 16 }
 0x119   :  { %p1125_p1 = scmp.ne.s32.totalorder %s188_s18, %s1124_s2  ;;  %p1127_p4 = scmp.lt.u32.totalorder %s188_s18, %s2591_s1 }
 0x11a   :  { %p1128_p5 = scmp.lt.u32.totalorder %s1782_s8, %s1124_s2  ;;  %p1130_p7 = scmp.lt.u32.totalorder %s1124_s2, %s188_s18 }
 0x11c   :  { %p1129_p6 = por %p1128_p5, %p1127_p4 }
 0x11e   :  { %p1131_p9 = por %p1130_p7, %p1129_p6 }
 0x120   :  { %p1132_p11 = pnand %p1131_p9, %p1125_p1 }
 0x122   :  { %1135 = shalt.err (!%p1132_p11)  }
 0x123   :  { %s1136_s20 = scalar_lea.vmem %s2127_s19, 16  ;;  %p1141_p3 = scmp.lt.s32.totalorder %s2127_s19, %s1765_s21 }
 0x124   :  { %p2171_p0 = scmp.ne.s32.totalorder %s2127_s19, %s1136_s20  ;;  %p1142_p2 = scmp.lt.s32.totalorder %s1795_s13, %s1136_s20 }
 0x126   :  { %s2720_s5 = scalar_select %p2171_p0, 1, 0 }
 0x127   :  { %p2178_p8 = por %p1142_p2, %p1141_p3 }
 0x128   :  { %2721 = sst [smem:[#allocation131_spill]] %s2720_s5 }
 0x129   :  { %s2722_s6 = scalar_select %p2178_p8, 1, 0 }
 0x12a   :  { %p2643_p1 = pnand %p2178_p8, %p2171_p0 }
 0x12b   :  { %2723 = sst [smem:[#allocation132_spill]] %s2722_s6 }
 0x12c   :  { %1147 = shalt.err (!%p2643_p1)  }
 0x12d   :  { %201 = dma.hbm_to_vmem [thread:$0]  %s188_s18, 16, %s2127_s19, [#allocation3 + $0xb] }
 0x12e   :  { %s777_s3 = sshll.u32 %s2124_s7, 4  ;;  %s2193_s23 = sld [smem:[#allocation5 + $0x15]] }
 0x12f   :  { %s204_s10 = scalar_lea.hbm %s2591_s1, %s777_s3 }
 0x130   :  { %s1148_s2 = scalar_lea.hbm %s204_s10, 16  ;;  %p1151_p3 = scmp.lt.u32.totalorder %s204_s10, %s2591_s1 }
 0x131   :  { %p1149_p2 = scmp.ne.s32.totalorder %s204_s10, %s1148_s2  ;;  %p1152_p4 = scmp.lt.u32.totalorder %s1782_s8, %s1148_s2 }
 0x132   :  { %p1154_p6 = scmp.lt.u32.totalorder %s1148_s2, %s204_s10 }
 0x133   :  { %p1153_p5 = por %p1152_p4, %p1151_p3 }
 0x135   :  { %p1155_p7 = por %p1154_p6, %p1153_p5 }
 0x137   :  { %p1156_p9 = pnand %p1155_p7, %p1149_p2 }
 0x139   :  { %1159 = shalt.err (!%p1156_p9)  }
 0x13a   :  { %s1160_s7 = scalar_lea.vmem %s2163_s16, 16  ;;  %p1165_p1 = scmp.lt.s32.totalorder %s2163_s16, %s1765_s21 }
 0x13b   :  { %p2204_p11 = scmp.ne.s32.totalorder %s2163_s16, %s1160_s7  ;;  %p1166_p0 = scmp.lt.s32.totalorder %s1795_s13, %s1160_s7 }
 0x13d   :  { %s2724_s18 = scalar_select %p2204_p11, 1, 0 }
 0x13e   :  { %p2211_p8 = por %p1166_p0, %p1165_p1 }
 0x13f   :  { %2725 = sst [smem:[#allocation133_spill]] %s2724_s18 }
 0x140   :  { %s2726_s15 = scalar_select %p2211_p8, 1, 0 }
 0x141   :  { %p2652_p2 = pnand %p2211_p8, %p2204_p11 }
 0x142   :  { %2727 = sst [smem:[#allocation134_spill]] %s2726_s15 }
 0x143   :  { %1171 = shalt.err (!%p2652_p2)  }
 0x144   :  { %217 = dma.hbm_to_vmem [thread:$0]  %s204_s10, 16, %s2163_s16, [#allocation3 + $0xc] }
 0x145   :  { %s1732_s3 = smov [#allocation2 + $0xd]   ;;  %s2225_s11 = sld [smem:[#allocation5 + $0x19]] }
 0x146   :  { %s230_s22 = sshll.u32 %s1732_s3, 4  ;;  %s1733_s2 = smov [#allocation2 + $0xe]   ;;  %s2227_s22 = int_to_ptr.vmem [resolvable:$true] %s230_s22 }
 0x147   :  { %2728 = sst [smem:[#allocation135_spill]] %s2227_s22  ;;  %s246_s20 = sshll.u32 %s1733_s2, 4  ;;  %s2232_s20 = int_to_ptr.vmem [resolvable:$true] %s246_s20 }
 0x148   :  { %s2229_s7 = sld [smem:[#allocation5 + $0x1d]]  ;;  %s779_s19 = sshll.u32 %s2193_s23, 4 }
 0x149   :  { %2729 = sst [smem:[#allocation136_spill]] %s2232_s20  ;;  %s220_s5 = scalar_lea.hbm %s2591_s1, %s779_s19 }
 0x14a   :  { %s1172_s6 = scalar_lea.hbm %s220_s5, 16  ;;  %p1175_p1 = scmp.lt.u32.totalorder %s220_s5, %s2591_s1 }
 0x14b   :  { %p1173_p0 = scmp.ne.s32.totalorder %s220_s5, %s1172_s6  ;;  %p1176_p3 = scmp.lt.u32.totalorder %s1782_s8, %s1172_s6 }
 0x14c   :  { %p1178_p5 = scmp.lt.u32.totalorder %s1172_s6, %s220_s5 }
 0x14d   :  { %p1177_p4 = por %p1176_p3, %p1175_p1 }
 0x14f   :  { %p1179_p6 = por %p1178_p5, %p1177_p4 }
 0x151   :  { %p1180_p7 = pnand %p1179_p6, %p1173_p0 }
 0x153   :  { %1183 = shalt.err (!%p1180_p7)  }
 0x154   :  { %s1184_s23 = scalar_lea.vmem %s2227_s22, 16  ;;  %p1189_p2 = scmp.lt.s32.totalorder %s2227_s22, %s1765_s21 }
 0x155   :  { %p2243_p9 = scmp.ne.s32.totalorder %s2227_s22, %s1184_s23  ;;  %p1190_p11 = scmp.lt.s32.totalorder %s1795_s13, %s1184_s23 }
 0x157   :  { %s2730_s19 = scalar_select %p2243_p9, 1, 0 }
 0x158   :  { %p2250_p8 = por %p1190_p11, %p1189_p2 }
 0x159   :  { %2731 = sst [smem:[#allocation137_spill]] %s2730_s19 }
 0x15a   :  { %s2732_s16 = scalar_select %p2250_p8, 1, 0 }
 0x15b   :  { %p2657_p0 = pnand %p2250_p8, %p2243_p9 }
 0x15c   :  { %2733 = sst [smem:[#allocation138_spill]] %s2732_s16 }
 0x15d   :  { %1195 = shalt.err (!%p2657_p0)  }
 0x15e   :  { %233 = dma.hbm_to_vmem [thread:$0]  %s220_s5, 16, %s2227_s22, [#allocation3 + $0xd] }
 0x15f   :  { %s781_s6 = sshll.u32 %s2225_s11, 4  ;;  %s1734_s18 = smov [#allocation2 + $0xf]  }
 0x160   :  { %s262_s15 = sshll.u32 %s1734_s18, 4  ;;  %s236_s10 = scalar_lea.hbm %s2591_s1, %s781_s6  ;;  %s2268_s15 = int_to_ptr.vmem [resolvable:$true] %s262_s15 }
 0x161   :  { %2734 = sst [smem:[#allocation139_spill]] %s2268_s15  ;;  %s1196_s23 = scalar_lea.hbm %s236_s10, 16 }
 0x162   :  { %p1197_p11 = scmp.ne.s32.totalorder %s236_s10, %s1196_s23  ;;  %p1199_p2 = scmp.lt.u32.totalorder %s236_s10, %s2591_s1 }
 0x163   :  { %p1200_p1 = scmp.lt.u32.totalorder %s1782_s8, %s1196_s23  ;;  %p1202_p4 = scmp.lt.u32.totalorder %s1196_s23, %s236_s10 }
 0x165   :  { %p1201_p3 = por %p1200_p1, %p1199_p2 }
 0x167   :  { %p1203_p5 = por %p1202_p4, %p1201_p3 }
 0x169   :  { %p1204_p6 = pnand %p1203_p5, %p1197_p11 }
 0x16b   :  { %1207 = shalt.err (!%p1204_p6)  }
 0x16c   :  { %s1208_s5 = scalar_lea.vmem %s2232_s20, 16  ;;  %p1213_p0 = scmp.lt.s32.totalorder %s2232_s20, %s1765_s21 }
 0x16d   :  { %p2276_p7 = scmp.ne.s32.totalorder %s2232_s20, %s1208_s5  ;;  %p1214_p9 = scmp.lt.s32.totalorder %s1795_s13, %s1208_s5 }
 0x16f   :  { %s2735_s11 = scalar_select %p2276_p7, 1, 0 }
 0x170   :  { %p2283_p8 = por %p1214_p9, %p1213_p0 }
 0x171   :  { %2736 = sst [smem:[#allocation140_spill]] %s2735_s11 }
 0x172   :  { %s2737_s4 = scalar_select %p2283_p8, 1, 0 }
 0x173   :  { %p2660_p11 = pnand %p2283_p8, %p2276_p7 }
 0x174   :  { %2738 = sst [smem:[#allocation141_spill]] %s2737_s4 }
 0x175   :  { %1219 = shalt.err (!%p2660_p11)  }
 0x176   :  { %249 = dma.hbm_to_vmem [thread:$0]  %s236_s10, 16, %s2232_s20, [#allocation3 + $0xe] }
 0x177   :  { %s783_s16 = sshll.u32 %s2229_s7, 4 }
 0x178   :  { %s252_s3 = scalar_lea.hbm %s2591_s1, %s783_s16 }
 0x179   :  { %s1220_s2 = scalar_lea.hbm %s252_s3, 16  ;;  %p1223_p0 = scmp.lt.u32.totalorder %s252_s3, %s2591_s1 }
 0x17a   :  { %p1221_p9 = scmp.ne.s32.totalorder %s252_s3, %s1220_s2  ;;  %p1224_p2 = scmp.lt.u32.totalorder %s1782_s8, %s1220_s2 }
 0x17b   :  { %p1226_p3 = scmp.lt.u32.totalorder %s1220_s2, %s252_s3 }
 0x17c   :  { %p1225_p1 = por %p1224_p2, %p1223_p0 }
 0x17e   :  { %p1227_p4 = por %p1226_p3, %p1225_p1 }
 0x180   :  { %p1228_p5 = pnand %p1227_p4, %p1221_p9 }
 0x182   :  { %1231 = shalt.err (!%p1228_p5)  }
 0x183   :  { %s1232_s7 = scalar_lea.vmem %s2268_s15, 16  ;;  %p1237_p11 = scmp.lt.s32.totalorder %s2268_s15, %s1765_s21 }
 0x184   :  { %p2307_p6 = scmp.ne.s32.totalorder %s2268_s15, %s1232_s7  ;;  %p1238_p7 = scmp.lt.s32.totalorder %s1795_s13, %s1232_s7 }
 0x186   :  { %s2739_s10 = scalar_select %p2307_p6, 1, 0 }
 0x187   :  { %p2314_p8 = por %p1238_p7, %p1237_p11 }
 0x188   :  { %2740 = sst [smem:[#allocation142_spill]] %s2739_s10 }
 0x189   :  { %s2741_s16 = scalar_select %p2314_p8, 1, 0 }
 0x18a   :  { %p2672_p9 = pnand %p2314_p8, %p2307_p6 }
 0x18b   :  { %2742 = sst [smem:[#allocation143_spill]] %s2741_s16 }
 0x18c   :  { %1243 = shalt.err (!%p2672_p9)  }
 0x18d   :  { %265 = dma.hbm_to_vmem [thread:$0]  %s252_s3, 16, %s2268_s15, [#allocation3 + $0xf] }
 0x18e   :  { %1652 = dma.done.wait [#allocation3], 16 }
 0x18f   :  { %1653 = vsyncadd [#allocation3], 4294967280 }
 0x190   :  { %1654 = dma.done.wait [#allocation3 + $0x1], 16 }
 0x191   :  { %1655 = vsyncadd [#allocation3 + $0x1], 4294967280 }
 0x192   :  { %1656 = dma.done.wait [#allocation3 + $0x2], 16 }
 0x193   :  { %1657 = vsyncadd [#allocation3 + $0x2], 4294967280 }
 0x194   :  { %1658 = dma.done.wait [#allocation3 + $0x3], 16 }
 0x195   :  { %1659 = vsyncadd [#allocation3 + $0x3], 4294967280 }
 0x196   :  { %1660 = dma.done.wait [#allocation3 + $0x4], 16 }
 0x197   :  { %1661 = vsyncadd [#allocation3 + $0x4], 4294967280 }
 0x198   :  { %1662 = dma.done.wait [#allocation3 + $0x5], 16 }
 0x199   :  { %1663 = vsyncadd [#allocation3 + $0x5], 4294967280 }
 0x19a   :  { %1664 = dma.done.wait [#allocation3 + $0x6], 16 }
 0x19b   :  { %1665 = vsyncadd [#allocation3 + $0x6], 4294967280 }
 0x19c   :  { %1666 = dma.done.wait [#allocation3 + $0x7], 16 }
 0x19d   :  { %1667 = vsyncadd [#allocation3 + $0x7], 4294967280  ;;  %s784_s13 = sld [smem:[#allocation5 + $0x2]]  ;;  %s786_s6 = sld [smem:[#allocation5 + $0x6]]  ;;  %v2340_v0 = vld [vmem:[#allocation2] sm:$0xff] }
 0x19e   :  { %s2328_s18 = sld [smem:[#allocation5 + $0xa]]  ;;  %s2330_s3 = sld [smem:[#allocation5 + $0xe]] }
 0x19f   :  { %s2332_s2 = sld [smem:[#allocation5 + $0x12]]  ;;  %s2334_s23 = sld [smem:[#allocation5 + $0x16]] }
 0x1a0   :  { %s2336_s5 = sld [smem:[#allocation5 + $0x1a]]  ;;  %s2338_s7 = sld [smem:[#allocation5 + $0x1e]] }
 0x1a3   :  { %s785_s15 = sshll.u32 %s784_s13, 4  ;;  %s787_s10 = sshll.u32 %s786_s6, 4 }
 0x1a4   :  { %s286_s11 = scalar_lea.hbm %s2591_s1, %s785_s15  ;;  %s300_s19 = scalar_lea.hbm %s2591_s1, %s787_s10 }
 0x1a5   :  { %2743 = sst [smem:[#allocation144_spill]] %s2332_s2  ;;  %s1244_s30 = scalar_lea.hbm %s286_s11, 16 }
 0x1a6   :  { %2744 = sst [smem:[#allocation145_spill]] %s2334_s23  ;;  %p1245_p7 = scmp.ne.s32.totalorder %s286_s11, %s1244_s30 }
 0x1a7   :  { %p1247_p11 = scmp.lt.u32.totalorder %s286_s11, %s2591_s1  ;;  %p1248_p0 = scmp.lt.u32.totalorder %s1782_s8, %s1244_s30 }
 0x1a8   :  { %p1250_p1 = scmp.lt.u32.totalorder %s1244_s30, %s286_s11 }
 0x1a9   :  { %p1249_p2 = por %p1248_p0, %p1247_p11 }
 0x1ab   :  { %p1251_p3 = por %p1250_p1, %p1249_p2 }
 0x1ad   :  { %p1252_p4 = pnand %p1251_p3, %p1245_p7 }
 0x1af   :  { %1255 = shalt.err (!%p1252_p4)  }
 0x1b0   :  { %p2745_p5 = pnand %p1800_p13, %p1790_p10 }
 0x1b2   :  { %1267 = shalt.err (!%p2745_p5)  }
 0x1b3   :  { %297 = dma.hbm_to_vmem [thread:$0]  %s286_s11, 16, %s1765_s21, [#allocation3] }
 0x1b4   :  { %s1268_s22 = scalar_lea.hbm %s300_s19, 16  ;;  %p1271_p6 = scmp.lt.u32.totalorder %s300_s19, %s2591_s1 }
 0x1b5   :  { %p1269_p9 = scmp.ne.s32.totalorder %s300_s19, %s1268_s22  ;;  %p1272_p11 = scmp.lt.u32.totalorder %s1782_s8, %s1268_s22 }
 0x1b6   :  { %p1274_p2 = scmp.lt.u32.totalorder %s1268_s22, %s300_s19 }
 0x1b7   :  { %p1273_p0 = por %p1272_p11, %p1271_p6 }
 0x1b9   :  { %p1275_p7 = por %p1274_p2, %p1273_p0 }
 0x1bb   :  { %p1276_p1 = pnand %p1275_p7, %p1269_p9 }
 0x1bd   :  { %1279 = shalt.err (!%p1276_p1)  }
 0x1be   :  { %p2746_p10 = scmp.ne.s32.totalorder %s2677_s25, 0 }
 0x1c0   :  { %p2747_p13 = pnand %p1831_p12, %p2746_p10 }
 0x1c2   :  { %1291 = shalt.err (!%p2747_p13)  }
 0x1c3   :  { %311 = dma.hbm_to_vmem [thread:$0]  %s300_s19, 16, %s1769_s24, [#allocation3 + $0x1] }
 0x1c4   :  { %s789_s21 = sshll.u32 %s2328_s18, 4  ;;  %s791_s12 = sshll.u32 %s2330_s3, 4 }
 0x1c5   :  { %s314_s11 = scalar_lea.hbm %s2591_s1, %s789_s21  ;;  %s328_s16 = scalar_lea.hbm %s2591_s1, %s791_s12 }
 0x1c6   :  { %s1292_s26 = scalar_lea.hbm %s314_s11, 16  ;;  %p1295_p12 = scmp.lt.u32.totalorder %s314_s11, %s2591_s1 }
 0x1c7   :  { %p1293_p6 = scmp.ne.s32.totalorder %s314_s11, %s1292_s26  ;;  %p1296_p9 = scmp.lt.u32.totalorder %s1782_s8, %s1292_s26 }
 0x1c8   :  { %p1298_p4 = scmp.lt.u32.totalorder %s1292_s26, %s314_s11 }
 0x1c9   :  { %p1297_p3 = por %p1296_p9, %p1295_p12 }
 0x1cb   :  { %p1299_p5 = por %p1298_p4, %p1297_p3 }
 0x1cd   :  { %p1300_p11 = pnand %p1299_p5, %p1293_p6 }
 0x1cf   :  { %1303 = shalt.err (!%p1300_p11)  }
 0x1d0   :  { %p2748_p0 = scmp.ne.s32.totalorder %s2680_s9, 0  ;;  %p2749_p2 = scmp.ne.s32.totalorder %s2679_s27, 0 }
 0x1d2   :  { %p2750_p7 = pnand %p2748_p0, %p2749_p2 }
 0x1d4   :  { %1315 = shalt.err (!%p2750_p7)  }
 0x1d5   :  { %325 = dma.hbm_to_vmem [thread:$0]  %s314_s11, 16, %s1773_s0, [#allocation3 + $0x2] }
 0x1d6   :  { %s1316_s24 = scalar_lea.hbm %s328_s16, 16  ;;  %p1319_p10 = scmp.lt.u32.totalorder %s328_s16, %s2591_s1 }
 0x1d7   :  { %p1317_p1 = scmp.ne.s32.totalorder %s328_s16, %s1316_s24  ;;  %p1320_p13 = scmp.lt.u32.totalorder %s1782_s8, %s1316_s24 }
 0x1d8   :  { %p1322_p9 = scmp.lt.u32.totalorder %s1316_s24, %s328_s16 }
 0x1d9   :  { %p1321_p12 = por %p1320_p13, %p1319_p10 }
 0x1db   :  { %p1323_p6 = por %p1322_p9, %p1321_p12 }
 0x1dd   :  { %p1324_p3 = pnand %p1323_p6, %p1317_p1 }
 0x1df   :  { %1327 = shalt.err (!%p1324_p3)  }
 0x1e0   :  { %p2751_p4 = scmp.ne.s32.totalorder %s2682_s29, 0  ;;  %p2752_p5 = scmp.ne.s32.totalorder %s2681_s28, 0 }
 0x1e2   :  { %p2753_p11 = pnand %p2751_p4, %p2752_p5 }
 0x1e4   :  { %1339 = shalt.err (!%p2753_p11)  }
 0x1e5   :  { %s2754_s0 = sld [smem:[#allocation144_spill]]  ;;  %s2755_s27 = sld [smem:[#allocation145_spill]] }
 0x1e6   :  { %339 = dma.hbm_to_vmem [thread:$0]  %s328_s16, 16, %s1881_s17, [#allocation3 + $0x3] }
 0x1eb   :  { %s793_s9 = sshll.u32 %s2754_s0, 4  ;;  %s795_s18 = sshll.u32 %s2755_s27, 4 }
 0x1ec   :  { %s342_s23 = scalar_lea.hbm %s2591_s1, %s793_s9  ;;  %s356_s15 = scalar_lea.hbm %s2591_s1, %s795_s18 }
 0x1ed   :  { %s1340_s29 = scalar_lea.hbm %s342_s23, 16  ;;  %p1343_p2 = scmp.lt.u32.totalorder %s342_s23, %s2591_s1 }
 0x1ee   :  { %p1341_p0 = scmp.ne.s32.totalorder %s342_s23, %s1340_s29  ;;  %p1344_p7 = scmp.lt.u32.totalorder %s1782_s8, %s1340_s29 }
 0x1ef   :  { %p1346_p10 = scmp.lt.u32.totalorder %s1340_s29, %s342_s23 }
 0x1f0   :  { %p1345_p1 = por %p1344_p7, %p1343_p2 }
 0x1f2   :  { %p1347_p13 = por %p1346_p10, %p1345_p1 }
 0x1f4   :  { %p1348_p12 = pnand %p1347_p13, %p1341_p0 }
 0x1f6   :  { %1351 = shalt.err (!%p1348_p12)  }
 0x1f7   :  { %s2756_s17 = sld [smem:[#allocation111_spill]]  ;;  %s2758_s12 = sld [smem:[#allocation110_spill]] }
 0x1fd   :  { %p2757_p9 = scmp.ne.s32.totalorder %s2756_s17, 0  ;;  %p2759_p6 = scmp.ne.s32.totalorder %s2758_s12, 0 }
 0x1ff   :  { %p2760_p3 = pnand %p2757_p9, %p2759_p6 }
 0x201   :  { %1363 = shalt.err (!%p2760_p3)  }
 0x202   :  { %s2761_s14 = sld [smem:[#allocation108_spill]]  ;;  %s1364_s30 = scalar_lea.hbm %s356_s15, 16 }
 0x203   :  { %p1365_p4 = scmp.ne.s32.totalorder %s356_s15, %s1364_s30  ;;  %p1367_p5 = scmp.lt.u32.totalorder %s356_s15, %s2591_s1 }
 0x204   :  { %p1368_p11 = scmp.lt.u32.totalorder %s1782_s8, %s1364_s30  ;;  %p1370_p7 = scmp.lt.u32.totalorder %s1364_s30, %s356_s15 }
 0x206   :  { %p1369_p2 = por %p1368_p11, %p1367_p5 }
 0x208   :  { %353 = dma.hbm_to_vmem [thread:$0]  %s342_s23, 16, %s2761_s14, [#allocation3 + $0x4] }
 0x209   :  { %p1371_p0 = por %p1370_p7, %p1369_p2 }
 0x20b   :  { %p1372_p1 = pnand %p1371_p0, %p1365_p4 }
 0x20d   :  { %1375 = shalt.err (!%p1372_p1)  }
 0x20e   :  { %s2762_s10 = sld [smem:[#allocation114_spill]]  ;;  %s2764_s16 = sld [smem:[#allocation113_spill]] }
 0x214   :  { %p2763_p10 = scmp.ne.s32.totalorder %s2762_s10, 0  ;;  %p2765_p13 = scmp.ne.s32.totalorder %s2764_s16, 0 }
 0x216   :  { %p2766_p12 = pnand %p2763_p10, %p2765_p13 }
 0x218   :  { %1387 = shalt.err (!%p2766_p12)  }
 0x219   :  { %s2767_s26 = sld [smem:[#allocation109_spill]]  ;;  %s797_s25 = sshll.u32 %s2336_s5, 4 }
 0x21a   :  { %s799_s13 = sshll.u32 %s2338_s7, 4  ;;  %s370_s6 = scalar_lea.hbm %s2591_s1, %s797_s25 }
 0x21b   :  { %s384_s9 = scalar_lea.hbm %s2591_s1, %s799_s13  ;;  %s1388_s18 = scalar_lea.hbm %s370_s6, 16 }
 0x21c   :  { %p1389_p9 = scmp.ne.s32.totalorder %s370_s6, %s1388_s18  ;;  %p1391_p6 = scmp.lt.u32.totalorder %s370_s6, %s2591_s1 }
 0x21d   :  { %p1392_p3 = scmp.lt.u32.totalorder %s1782_s8, %s1388_s18  ;;  %p1394_p5 = scmp.lt.u32.totalorder %s1388_s18, %s370_s6 }
 0x21f   :  { %367 = dma.hbm_to_vmem [thread:$0]  %s356_s15, 16, %s2767_s26, [#allocation3 + $0x5] }
 0x220   :  { %p1393_p4 = por %p1392_p3, %p1391_p6 }
 0x222   :  { %p1395_p11 = por %p1394_p5, %p1393_p4 }
 0x224   :  { %p1396_p2 = pnand %p1395_p11, %p1389_p9 }
 0x226   :  { %1399 = shalt.err (!%p1396_p2)  }
 0x227   :  { %s2768_s5 = sld [smem:[#allocation116_spill]]  ;;  %s2770_s7 = sld [smem:[#allocation115_spill]] }
 0x22d   :  { %p2769_p7 = scmp.ne.s32.totalorder %s2768_s5, 0  ;;  %p2771_p0 = scmp.ne.s32.totalorder %s2770_s7, 0 }
 0x22f   :  { %p2772_p1 = pnand %p2769_p7, %p2771_p0 }
 0x231   :  { %1411 = shalt.err (!%p2772_p1)  }
 0x232   :  { %s2773_s23 = sld [smem:[#allocation112_spill]]  ;;  %s1412_s22 = scalar_lea.hbm %s384_s9, 16 }
 0x233   :  { %p1413_p10 = scmp.ne.s32.totalorder %s384_s9, %s1412_s22  ;;  %p1415_p13 = scmp.lt.u32.totalorder %s384_s9, %s2591_s1 }
 0x234   :  { %p1416_p12 = scmp.lt.u32.totalorder %s1782_s8, %s1412_s22  ;;  %p1418_p3 = scmp.lt.u32.totalorder %s1412_s22, %s384_s9 }
 0x236   :  { %p1417_p6 = por %p1416_p12, %p1415_p13 }
 0x238   :  { %381 = dma.hbm_to_vmem [thread:$0]  %s370_s6, 16, %s2773_s23, [#allocation3 + $0x6] }
 0x239   :  { %p1419_p9 = por %p1418_p3, %p1417_p6 }
 0x23b   :  { %p1420_p4 = pnand %p1419_p9, %p1413_p10 }
 0x23d   :  { %1423 = shalt.err (!%p1420_p4)  }
 0x23e   :  { %s2774_s29 = sld [smem:[#allocation120_spill]]  ;;  %s2776_s28 = sld [smem:[#allocation119_spill]] }
 0x244   :  { %p2775_p5 = scmp.ne.s32.totalorder %s2774_s29, 0  ;;  %p2777_p11 = scmp.ne.s32.totalorder %s2776_s28, 0 }
 0x246   :  { %p2778_p2 = pnand %p2775_p5, %p2777_p11 }
 0x248   :  { %1435 = shalt.err (!%p2778_p2)  }
 0x249   :  { %s2779_s21 = sld [smem:[#allocation117_spill]] }
 0x24f   :  { %395 = dma.hbm_to_vmem [thread:$0]  %s384_s9, 16, %s2779_s21, [#allocation3 + $0x7] }
 0x250   :  { %1668 = dma.done.wait [#allocation3 + $0x8], 16 }
 0x251   :  { %1669 = vsyncadd [#allocation3 + $0x8], 4294967280 }
 0x252   :  { %1670 = dma.done.wait [#allocation3 + $0x9], 16 }
 0x253   :  { %1671 = vsyncadd [#allocation3 + $0x9], 4294967280 }
 0x254   :  { %1672 = dma.done.wait [#allocation3 + $0xa], 16 }
 0x255   :  { %1673 = vsyncadd [#allocation3 + $0xa], 4294967280 }
 0x256   :  { %1674 = dma.done.wait [#allocation3 + $0xb], 16 }
 0x257   :  { %1675 = vsyncadd [#allocation3 + $0xb], 4294967280 }
 0x258   :  { %1676 = dma.done.wait [#allocation3 + $0xc], 16 }
 0x259   :  { %1677 = vsyncadd [#allocation3 + $0xc], 4294967280 }
 0x25a   :  { %1678 = dma.done.wait [#allocation3 + $0xd], 16 }
 0x25b   :  { %1679 = vsyncadd [#allocation3 + $0xd], 4294967280 }
 0x25c   :  { %1680 = dma.done.wait [#allocation3 + $0xe], 16 }
 0x25d   :  { %1681 = vsyncadd [#allocation3 + $0xe], 4294967280 }
 0x25e   :  { %1682 = dma.done.wait [#allocation3 + $0xf], 16 }
 0x25f   :  { %1683 = vsyncadd [#allocation3 + $0xf], 4294967280  ;;  %s800_s17 = sld [smem:[#allocation5 + $0x3]]  ;;  %s802_s12 = sld [smem:[#allocation5 + $0x7]]  ;;  %v412_v1 = vld [vmem:[#allocation2 + $0x8] sm:$0xff] }
 0x260   :  { %s2452_s14 = sld [smem:[#allocation5 + $0xb]]  ;;  %s2454_s30 = sld [smem:[#allocation5 + $0xf]]  ;;  %v2465_v2 = vadd.f32 %v412_v1, %v2340_v0 }
 0x261   :  { %s2456_s11 = sld [smem:[#allocation5 + $0x13]]  ;;  %s2458_s4 = sld [smem:[#allocation5 + $0x17]] }
 0x262   :  { %s2460_s10 = sld [smem:[#allocation5 + $0x1b]]  ;;  %s2462_s16 = sld [smem:[#allocation5 + $0x1f]] }
 0x265   :  { %s801_s26 = sshll.u32 %s800_s17, 4  ;;  %s803_s25 = sshll.u32 %s802_s12, 4 }
 0x266   :  { %s416_s19 = scalar_lea.hbm %s2591_s1, %s801_s26  ;;  %s430_s27 = scalar_lea.hbm %s2591_s1, %s803_s25 }
 0x267   :  { %s1436_s9 = scalar_lea.hbm %s416_s19, 16  ;;  %p1439_p0 = scmp.lt.u32.totalorder %s416_s19, %s2591_s1 }
 0x268   :  { %p1437_p7 = scmp.ne.s32.totalorder %s416_s19, %s1436_s9  ;;  %p1440_p1 = scmp.lt.u32.totalorder %s1782_s8, %s1436_s9 }
 0x269   :  { %p1442_p13 = scmp.lt.u32.totalorder %s1436_s9, %s416_s19 }
 0x26a   :  { %p1441_p10 = por %p1440_p1, %p1439_p0 }
 0x26c   :  { %p1443_p12 = por %p1442_p13, %p1441_p10 }
 0x26e   :  { %p1444_p6 = pnand %p1443_p12, %p1437_p7 }
 0x270   :  { %1447 = shalt.err (!%p1444_p6)  }
 0x271   :  { %s2780_s2 = sld [smem:[#allocation123_spill]]  ;;  %s2782_s5 = sld [smem:[#allocation122_spill]] }
 0x277   :  { %p2781_p3 = scmp.ne.s32.totalorder %s2780_s2, 0  ;;  %p2783_p9 = scmp.ne.s32.totalorder %s2782_s5, 0 }
 0x279   :  { %p2784_p4 = pnand %p2781_p3, %p2783_p9 }
 0x27b   :  { %1459 = shalt.err (!%p2784_p4)  }
 0x27c   :  { %s2785_s7 = sld [smem:[#allocation118_spill]]  ;;  %s1460_s23 = scalar_lea.hbm %s430_s27, 16 }
 0x27d   :  { %p1461_p5 = scmp.ne.s32.totalorder %s430_s27, %s1460_s23  ;;  %p1463_p11 = scmp.lt.u32.totalorder %s430_s27, %s2591_s1 }
 0x27e   :  { %p1464_p2 = scmp.lt.u32.totalorder %s1782_s8, %s1460_s23  ;;  %p1466_p1 = scmp.lt.u32.totalorder %s1460_s23, %s430_s27 }
 0x280   :  { %p1465_p0 = por %p1464_p2, %p1463_p11 }
 0x282   :  { %427 = dma.hbm_to_vmem [thread:$0]  %s416_s19, 16, %s2785_s7, [#allocation3 + $0x8] }
 0x283   :  { %p1467_p7 = por %p1466_p1, %p1465_p0 }
 0x285   :  { %p1468_p10 = pnand %p1467_p7, %p1461_p5 }
 0x287   :  { %1471 = shalt.err (!%p1468_p10)  }
 0x288   :  { %s2786_s15 = sld [smem:[#allocation125_spill]]  ;;  %s2788_s29 = sld [smem:[#allocation124_spill]] }
 0x28e   :  { %p2787_p13 = scmp.ne.s32.totalorder %s2786_s15, 0  ;;  %p2789_p12 = scmp.ne.s32.totalorder %s2788_s29, 0 }
 0x290   :  { %p2790_p6 = pnand %p2787_p13, %p2789_p12 }
 0x292   :  { %1483 = shalt.err (!%p2790_p6)  }
 0x293   :  { %s2791_s28 = sld [smem:[#allocation121_spill]]  ;;  %s805_s21 = sshll.u32 %s2452_s14, 4 }
 0x294   :  { %s807_s17 = sshll.u32 %s2454_s30, 4  ;;  %s444_s25 = scalar_lea.hbm %s2591_s1, %s805_s21 }
 0x295   :  { %s458_s19 = scalar_lea.hbm %s2591_s1, %s807_s17  ;;  %s1484_s6 = scalar_lea.hbm %s444_s25, 16 }
 0x296   :  { %p1485_p3 = scmp.ne.s32.totalorder %s444_s25, %s1484_s6  ;;  %p1487_p9 = scmp.lt.u32.totalorder %s444_s25, %s2591_s1 }
 0x297   :  { %p1488_p4 = scmp.lt.u32.totalorder %s1782_s8, %s1484_s6  ;;  %p1490_p11 = scmp.lt.u32.totalorder %s1484_s6, %s444_s25 }
 0x299   :  { %441 = dma.hbm_to_vmem [thread:$0]  %s430_s27, 16, %s2791_s28, [#allocation3 + $0x9] }
 0x29a   :  { %p1489_p5 = por %p1488_p4, %p1487_p9 }
 0x29c   :  { %p1491_p2 = por %p1490_p11, %p1489_p5 }
 0x29e   :  { %p1492_p0 = pnand %p1491_p2, %p1485_p3 }
 0x2a0   :  { %1495 = shalt.err (!%p1492_p0)  }
 0x2a1   :  { %s2792_s14 = sld [smem:[#allocation129_spill]]  ;;  %s2794_s30 = sld [smem:[#allocation128_spill]] }
 0x2a7   :  { %p2793_p1 = scmp.ne.s32.totalorder %s2792_s14, 0  ;;  %p2795_p7 = scmp.ne.s32.totalorder %s2794_s30, 0 }
 0x2a9   :  { %p2796_p10 = pnand %p2793_p1, %p2795_p7 }
 0x2ab   :  { %1507 = shalt.err (!%p2796_p10)  }
 0x2ac   :  { %s2797_s27 = sld [smem:[#allocation126_spill]]  ;;  %s1508_s18 = scalar_lea.hbm %s458_s19, 16 }
 0x2ad   :  { %p1509_p13 = scmp.ne.s32.totalorder %s458_s19, %s1508_s18  ;;  %p1511_p12 = scmp.lt.u32.totalorder %s458_s19, %s2591_s1 }
 0x2ae   :  { %p1512_p6 = scmp.lt.u32.totalorder %s1782_s8, %s1508_s18  ;;  %p1514_p4 = scmp.lt.u32.totalorder %s1508_s18, %s458_s19 }
 0x2b0   :  { %p1513_p9 = por %p1512_p6, %p1511_p12 }
 0x2b2   :  { %455 = dma.hbm_to_vmem [thread:$0]  %s444_s25, 16, %s2797_s27, [#allocation3 + $0xa] }
 0x2b3   :  { %p1515_p3 = por %p1514_p4, %p1513_p9 }
 0x2b5   :  { %p1516_p5 = pnand %p1515_p3, %p1509_p13 }
 0x2b7   :  { %1519 = shalt.err (!%p1516_p5)  }
 0x2b8   :  { %s2798_s5 = sld [smem:[#allocation132_spill]]  ;;  %s2800_s7 = sld [smem:[#allocation131_spill]] }
 0x2be   :  { %p2799_p11 = scmp.ne.s32.totalorder %s2798_s5, 0  ;;  %p2801_p2 = scmp.ne.s32.totalorder %s2800_s7, 0 }
 0x2c0   :  { %p2802_p0 = pnand %p2799_p11, %p2801_p2 }
 0x2c2   :  { %1531 = shalt.err (!%p2802_p0)  }
 0x2c3   :  { %s2803_s23 = sld [smem:[#allocation127_spill]]  ;;  %s809_s22 = sshll.u32 %s2456_s11, 4 }
 0x2c4   :  { %s811_s20 = sshll.u32 %s2458_s4, 4  ;;  %s472_s28 = scalar_lea.hbm %s2591_s1, %s809_s22 }
 0x2c5   :  { %s486_s12 = scalar_lea.hbm %s2591_s1, %s811_s20  ;;  %s1532_s26 = scalar_lea.hbm %s472_s28, 16 }
 0x2c6   :  { %p1533_p1 = scmp.ne.s32.totalorder %s472_s28, %s1532_s26  ;;  %p1535_p7 = scmp.lt.u32.totalorder %s472_s28, %s2591_s1 }
 0x2c7   :  { %p1536_p10 = scmp.lt.u32.totalorder %s1782_s8, %s1532_s26  ;;  %p1538_p12 = scmp.lt.u32.totalorder %s1532_s26, %s472_s28 }
 0x2c9   :  { %469 = dma.hbm_to_vmem [thread:$0]  %s458_s19, 16, %s2803_s23, [#allocation3 + $0xb] }
 0x2ca   :  { %p1537_p13 = por %p1536_p10, %p1535_p7 }
 0x2cc   :  { %p1539_p6 = por %p1538_p12, %p1537_p13 }
 0x2ce   :  { %p1540_p9 = pnand %p1539_p6, %p1533_p1 }
 0x2d0   :  { %1543 = shalt.err (!%p1540_p9)  }
 0x2d1   :  { %s2804_s11 = sld [smem:[#allocation134_spill]]  ;;  %s2806_s4 = sld [smem:[#allocation133_spill]] }
 0x2d7   :  { %p2805_p4 = scmp.ne.s32.totalorder %s2804_s11, 0  ;;  %p2807_p3 = scmp.ne.s32.totalorder %s2806_s4, 0 }
 0x2d9   :  { %p2808_p5 = pnand %p2805_p4, %p2807_p3 }
 0x2db   :  { %1555 = shalt.err (!%p2808_p5)  }
 0x2dc   :  { %s2809_s24 = sld [smem:[#allocation130_spill]]  ;;  %s1556_s19 = scalar_lea.hbm %s486_s12, 16 }
 0x2dd   :  { %p1557_p11 = scmp.ne.s32.totalorder %s486_s12, %s1556_s19  ;;  %p1559_p2 = scmp.lt.u32.totalorder %s486_s12, %s2591_s1 }
 0x2de   :  { %p1560_p0 = scmp.lt.u32.totalorder %s1782_s8, %s1556_s19  ;;  %p1562_p10 = scmp.lt.u32.totalorder %s1556_s19, %s486_s12 }
 0x2e0   :  { %p1561_p7 = por %p1560_p0, %p1559_p2 }
 0x2e2   :  { %483 = dma.hbm_to_vmem [thread:$0]  %s472_s28, 16, %s2809_s24, [#allocation3 + $0xc] }
 0x2e3   :  { %p1563_p1 = por %p1562_p10, %p1561_p7 }
 0x2e5   :  { %p1564_p13 = pnand %p1563_p1, %p1557_p11 }
 0x2e7   :  { %1567 = shalt.err (!%p1564_p13)  }
 0x2e8   :  { %s2810_s9 = sld [smem:[#allocation138_spill]]  ;;  %s2812_s14 = sld [smem:[#allocation137_spill]] }
 0x2ee   :  { %p2811_p12 = scmp.ne.s32.totalorder %s2810_s9, 0  ;;  %p2813_p6 = scmp.ne.s32.totalorder %s2812_s14, 0 }
 0x2f0   :  { %p2814_p9 = pnand %p2811_p12, %p2813_p6 }
 0x2f2   :  { %1579 = shalt.err (!%p2814_p9)  }
 0x2f3   :  { %s2815_s30 = sld [smem:[#allocation135_spill]]  ;;  %s813_s27 = sshll.u32 %s2460_s10, 4 }
 0x2f4   :  { %s815_s18 = sshll.u32 %s2462_s16, 4  ;;  %s500_s5 = scalar_lea.hbm %s2591_s1, %s813_s27 }
 0x2f5   :  { %s514_s22 = scalar_lea.hbm %s2591_s1, %s815_s18  ;;  %s1580_s20 = scalar_lea.hbm %s500_s5, 16 }
 0x2f6   :  { %p1581_p4 = scmp.ne.s32.totalorder %s500_s5, %s1580_s20  ;;  %p1583_p3 = scmp.lt.u32.totalorder %s500_s5, %s2591_s1 }
 0x2f7   :  { %p1584_p5 = scmp.lt.u32.totalorder %s1782_s8, %s1580_s20  ;;  %p1586_p2 = scmp.lt.u32.totalorder %s1580_s20, %s500_s5 }
 0x2f9   :  { %497 = dma.hbm_to_vmem [thread:$0]  %s486_s12, 16, %s2815_s30, [#allocation3 + $0xd] }
 0x2fa   :  { %p1585_p11 = por %p1584_p5, %p1583_p3 }
 0x2fc   :  { %p1587_p0 = por %p1586_p2, %p1585_p11 }
 0x2fe   :  { %p1588_p7 = pnand %p1587_p0, %p1581_p4 }
 0x300   :  { %1591 = shalt.err (!%p1588_p7)  }
 0x301   :  { %s2816_s10 = sld [smem:[#allocation141_spill]]  ;;  %s2818_s16 = sld [smem:[#allocation140_spill]] }
 0x307   :  { %p2817_p10 = scmp.ne.s32.totalorder %s2816_s10, 0  ;;  %p2819_p1 = scmp.ne.s32.totalorder %s2818_s16, 0 }
 0x309   :  { %p2820_p13 = pnand %p2817_p10, %p2819_p1 }
 0x30b   :  { %1603 = shalt.err (!%p2820_p13)  }
 0x30c   :  { %s2821_s28 = sld [smem:[#allocation136_spill]]  ;;  %s1604_s21 = scalar_lea.hbm %s514_s22, 16 }
 0x30d   :  { %p1605_p12 = scmp.ne.s32.totalorder %s514_s22, %s1604_s21  ;;  %p1607_p6 = scmp.lt.u32.totalorder %s514_s22, %s2591_s1 }
 0x30e   :  { %p1608_p9 = scmp.lt.u32.totalorder %s1782_s8, %s1604_s21  ;;  %p1610_p5 = scmp.lt.u32.totalorder %s1604_s21, %s514_s22 }
 0x310   :  { %p1609_p3 = por %p1608_p9, %p1607_p6 }
 0x312   :  { %511 = dma.hbm_to_vmem [thread:$0]  %s500_s5, 16, %s2821_s28, [#allocation3 + $0xe] }
 0x313   :  { %p1611_p4 = por %p1610_p5, %p1609_p3 }
 0x315   :  { %p1612_p11 = pnand %p1611_p4, %p1605_p12 }
 0x317   :  { %1615 = shalt.err (!%p1612_p11)  }
 0x318   :  { %s2823_s25 = sld [smem:[#allocation142_spill]] }
 0x31e   :  { %p2824_p2 = scmp.ne.s32.totalorder %s2823_s25, 0 }
 0x320   :  { %p2825_p0 = pnand %p2314_p8, %p2824_p2 }
 0x322   :  { %1627 = shalt.err (!%p2825_p0)  }
 0x323   :  { %s2826_s13 = sld [smem:[#allocation139_spill]] }
 0x329   :  { %525 = dma.hbm_to_vmem [thread:$0]  %s514_s22, 16, %s2826_s13, [#allocation3 + $0xf] }
 0x32a   :  { %1684 = dma.done.wait [#allocation3], 16 }
 0x32b   :  { %1685 = vsyncadd [#allocation3], 4294967280 }
 0x32c   :  { %1686 = dma.done.wait [#allocation3 + $0x1], 16 }
 0x32d   :  { %1687 = vsyncadd [#allocation3 + $0x1], 4294967280 }
 0x32e   :  { %1688 = dma.done.wait [#allocation3 + $0x2], 16 }
 0x32f   :  { %1689 = vsyncadd [#allocation3 + $0x2], 4294967280 }
 0x330   :  { %1690 = dma.done.wait [#allocation3 + $0x3], 16 }
 0x331   :  { %1691 = vsyncadd [#allocation3 + $0x3], 4294967280 }
 0x332   :  { %1692 = dma.done.wait [#allocation3 + $0x4], 16 }
 0x333   :  { %1693 = vsyncadd [#allocation3 + $0x4], 4294967280 }
 0x334   :  { %1694 = dma.done.wait [#allocation3 + $0x5], 16 }
 0x335   :  { %1695 = vsyncadd [#allocation3 + $0x5], 4294967280 }
 0x336   :  { %1696 = dma.done.wait [#allocation3 + $0x6], 16 }
 0x337   :  { %1697 = vsyncadd [#allocation3 + $0x6], 4294967280 }
 0x338   :  { %1698 = dma.done.wait [#allocation3 + $0x7], 16 }
 0x339   :  { %1699 = vsyncadd [#allocation3 + $0x7], 4294967280  ;;  %v542_v3 = vld [vmem:[#allocation2] sm:$0xff] }
 0x33a   :  { %v543_v4 = vadd.f32 %v542_v3, %v2465_v2 }
 0x33b   :  { %1700 = dma.done.wait [#allocation3 + $0x8], 16 }
 0x33c   :  { %1701 = vsyncadd [#allocation3 + $0x8], 4294967280 }
 0x33d   :  { %1702 = dma.done.wait [#allocation3 + $0x9], 16 }
 0x33e   :  { %1703 = vsyncadd [#allocation3 + $0x9], 4294967280 }
 0x33f   :  { %1704 = dma.done.wait [#allocation3 + $0xa], 16 }
 0x340   :  { %1705 = vsyncadd [#allocation3 + $0xa], 4294967280 }
 0x341   :  { %1706 = dma.done.wait [#allocation3 + $0xb], 16 }
 0x342   :  { %1707 = vsyncadd [#allocation3 + $0xb], 4294967280 }
 0x343   :  { %1708 = dma.done.wait [#allocation3 + $0xc], 16 }
 0x344   :  { %1709 = vsyncadd [#allocation3 + $0xc], 4294967280 }
 0x345   :  { %1710 = dma.done.wait [#allocation3 + $0xd], 16 }
 0x346   :  { %1711 = vsyncadd [#allocation3 + $0xd], 4294967280 }
 0x347   :  { %1712 = dma.done.wait [#allocation3 + $0xe], 16 }
 0x348   :  { %1713 = vsyncadd [#allocation3 + $0xe], 4294967280 }
 0x349   :  { %1714 = dma.done.wait [#allocation3 + $0xf], 16 }
 0x34a   :  { %1715 = vsyncadd [#allocation3 + $0xf], 4294967280  ;;  %v560_v5 = vld [vmem:[#allocation2 + $0x8] sm:$0xff]  ;;  %s1735_s1 = smov [#allocation6]  }
 0x34b   :  { %s570_s8 = sshll.u32 %s1735_s1, 4  ;;  %v561_v6 = vadd.f32 %v560_v5, %v543_v4  ;;  %s571_s8 = int_to_ptr.vmem [resolvable:$true] %s570_s8 }
 0x34c   :  { %s1628_s11 = scalar_lea.vmem %s571_s8, 128  ;;  %p1633_p7 = scmp.lt.s32.totalorder %s571_s8, %s571_s8 }
 0x34d   :  { %v562_v7 = vmul.f32 0.25, %v561_v6  ;;  %p1629_p8 = scmp.ne.s32.totalorder %s571_s8, %s1628_s11  ;;  %p1634_p10 = scmp.lt.s32.totalorder %s1628_s11, %s1628_s11 }
 0x34f   :  { %563 = vst [vmem:[#allocation6] sm:$0xff] %v562_v7  ;;  %p1635_p1 = por %p1634_p10, %p1633_p7 }
 0x351   :  { %p1636_p13 = pnand %p1635_p1, %p1629_p8 }
 0x353   :  { %1639 = shalt.err (!%p1636_p13)
}
 0x354   :  { %s2827_s19 = sld [smem:[#allocation146_spill]] }
 0x35a   :  { %s1640_s6 = scalar_lea.hbm %s2827_s19, 128 }
 0x35b   :  { %p1641_p12 = scmp.ne.s32.totalorder %s2827_s19, %s1640_s6  ;;  %p1644_p6 = scmp.lt.u32.totalorder %s1640_s6, %s2827_s19 }
 0x35d   :  { %p1646_p9 = pnand %p1644_p6, %p1641_p12 }
 0x35f   :  { %1649 = shalt.err (!%p1646_p9)
}
 0x360   :  { %573 = dma.vmem_to_hbm [thread:$0]  %s571_s8, 128, %s2827_s19, [#allocation7]  }
 0x361   :  { %1716 = dma.done.wait [#allocation7], 128  }
 0x362   :  { %1717 = vsyncadd [#allocation7], 4294967168 }
 0x363   :  { %577 = vsyncpa [#allocation7], 1 }
 0x364   :  { %578 = vsyncmov [#allocation3] }
 0x367   :  { %s579_s3 = vpop.sfrf %578 }
 0x368   :  { %p816_p3 = scmp.ne.s32.totalorder %s579_s3, 0 }
 0x36a   :  { %583 = shalt.err (%p816_p3)  }
 0x36b   :  { %585 = vsyncmov [#allocation3 + $0x1] }
 0x36e   :  { %s586_s2 = vpop.sfrf %585 }
 0x36f   :  { %p817_p5 = scmp.ne.s32.totalorder %s586_s2, 0 }
 0x371   :  { %590 = shalt.err (%p817_p5)  }
 0x372   :  { %592 = vsyncmov [#allocation3 + $0x2] }
 0x375   :  { %s593_s5 = vpop.sfrf %592 }
 0x376   :  { %p818_p4 = scmp.ne.s32.totalorder %s593_s5, 0 }
 0x378   :  { %597 = shalt.err (%p818_p4)  }
 0x379   :  { %599 = vsyncmov [#allocation3 + $0x3] }
 0x37c   :  { %s600_s7 = vpop.sfrf %599 }
 0x37d   :  { %p819_p11 = scmp.ne.s32.totalorder %s600_s7, 0 }
 0x37f   :  { %604 = shalt.err (%p819_p11)  }
 0x380   :  { %606 = vsyncmov [#allocation3 + $0x4] }
 0x383   :  { %s607_s23 = vpop.sfrf %606 }
 0x384   :  { %p820_p2 = scmp.ne.s32.totalorder %s607_s23, 0 }
 0x386   :  { %611 = shalt.err (%p820_p2)  }
 0x387   :  { %613 = vsyncmov [#allocation3 + $0x5] }
 0x38a   :  { %s614_s22 = vpop.sfrf %613 }
 0x38b   :  { %p821_p0 = scmp.ne.s32.totalorder %s614_s22, 0 }
 0x38d   :  { %618 = shalt.err (%p821_p0)  }
 0x38e   :  { %620 = vsyncmov [#allocation3 + $0x6] }
 0x391   :  { %s621_s20 = vpop.sfrf %620 }
 0x392   :  { %p822_p8 = scmp.ne.s32.totalorder %s621_s20, 0 }
 0x394   :  { %625 = shalt.err (%p822_p8)  }
 0x395   :  { %627 = vsyncmov [#allocation3 + $0x7] }
 0x398   :  { %s628_s15 = vpop.sfrf %627 }
 0x399   :  { %p823_p7 = scmp.ne.s32.totalorder %s628_s15, 0 }
 0x39b   :  { %632 = shalt.err (%p823_p7)  }
 0x39c   :  { %634 = vsyncmov [#allocation3 + $0x8] }
 0x39f   :  { %s635_s29 = vpop.sfrf %634 }
 0x3a0   :  { %p824_p10 = scmp.ne.s32.totalorder %s635_s29, 0 }
 0x3a2   :  { %639 = shalt.err (%p824_p10)  }
 0x3a3   :  { %641 = vsyncmov [#allocation3 + $0x9] }
 0x3a6   :  { %s642_s10 = vpop.sfrf %641 }
 0x3a7   :  { %p825_p1 = scmp.ne.s32.totalorder %s642_s10, 0 }
 0x3a9   :  { %646 = shalt.err (%p825_p1)  }
 0x3aa   :  { %648 = vsyncmov [#allocation3 + $0xa] }
 0x3ad   :  { %s649_s16 = vpop.sfrf %648 }
 0x3ae   :  { %p826_p13 = scmp.ne.s32.totalorder %s649_s16, 0 }
 0x3b0   :  { %653 = shalt.err (%p826_p13)  }
 0x3b1   :  { %655 = vsyncmov [#allocation3 + $0xb] }
 0x3b4   :  { %s656_s28 = vpop.sfrf %655 }
 0x3b5   :  { %p827_p12 = scmp.ne.s32.totalorder %s656_s28, 0 }
 0x3b7   :  { %660 = shalt.err (%p827_p12)  }
 0x3b8   :  { %662 = vsyncmov [#allocation3 + $0xc] }
 0x3bb   :  { %s663_s21 = vpop.sfrf %662 }
 0x3bc   :  { %p828_p6 = scmp.ne.s32.totalorder %s663_s21, 0 }
 0x3be   :  { %667 = shalt.err (%p828_p6)  }
 0x3bf   :  { %669 = vsyncmov [#allocation3 + $0xd] }
 0x3c2   :  { %s670_s17 = vpop.sfrf %669 }
 0x3c3   :  { %p829_p9 = scmp.ne.s32.totalorder %s670_s17, 0 }
 0x3c5   :  { %674 = shalt.err (%p829_p9)  }
 0x3c6   :  { %676 = vsyncmov [#allocation3 + $0xe] }
 0x3c9   :  { %s677_s12 = vpop.sfrf %676 }
 0x3ca   :  { %p830_p3 = scmp.ne.s32.totalorder %s677_s12, 0 }
 0x3cc   :  { %681 = shalt.err (%p830_p3)  }
 0x3cd   :  { %683 = vsyncmov [#allocation3 + $0xf] }
 0x3d0   :  { %s684_s26 = vpop.sfrf %683 }
 0x3d1   :  { %p831_p5 = scmp.ne.s32.totalorder %s684_s26, 0 }
 0x3d3   :  { %688 = shalt.err (%p831_p5)  }

</bundles_post_ra>
